<compile_context>
chip_gen: v7x
topology: tpu7x:2x2x1
jax: 0.10.0
libtpu: 0.0.40
codegen_flags: <defaults>
</compile_context>

<pallas_src>
import functools

import numpy as np

import jax
import jax.numpy as jnp
from jax.experimental import pallas as pl
from jax.experimental.pallas import tpu as pltpu

# ----------------------------- configuration -----------------------------
RES = 16          # spherical map resolution (stand-in for 64)
DS_RATE = 2
DS_RES = RES // DS_RATE          # 8
B = 2             # batch
N_PTS = 256       # points per cloud
CIN = 4           # scatter features actually used (dis + rgb)
CIN_PAD = 8       # padded to a full sublane group (aligned im2col concat)
C1 = 32           # FPN stage-1 channels
FEAT = 64         # FPN output channels (stand-in for 256)
VHID = 64         # V-branch hidden
IHID = 64         # I-branch hidden
PACK = 128        # packed, lane-dense output row width

F32 = jnp.float32
BF16 = jnp.bfloat16


# ============================ the fused kernel ============================
def _vinet_kernel(cell_ref, vals_ref, mask1_ref, mask2_ref,
                  w1_ref, b1_ref, pool_ref, w2_ref, b2_ref,
                  w3_ref, b3_ref, vw1_ref, vb1_ref, paxis_ref,
                  hw_ref, hb_ref, gmean_ref, iw1g_ref, iw1r_ref,
                  ib1_ref, iw2_ref, ib2_ref, trig_ref,
                  out_ref, *, bsz, res, ds):
    """Entire VI-Net forward (whole folded batch) in one launch."""
    BG = bsz * res * res            # batch-folded lanes, stage 1 (= B * grid)
    BN = cell_ref.shape[0]          # bsz * n_pts

    # ---- Feat2Smap: scatter-mean via ONE block-diagonal membership matmul.
    # vals carries a ones row, so per-cell sums and counts come from the same
    # MXU pass; means use exact f32 division (bf16 only on the point values).
    col = jax.lax.broadcasted_iota(jnp.int32, (BN, BG), 1)
    mem = jnp.where(cell_ref[...] == col, 1.0, 0.0).astype(BF16)     # (BN, BG)
    sums = jnp.dot(vals_ref[...], mem,
                   preferred_element_type=jnp.float32)               # (9, BG)
    cnt = jnp.maximum(sums[CIN_PAD:CIN_PAD + 1, :], 1.0)
    smap = sums[0:CIN_PAD, :] / cnt                                  # (8, BG) f32

    # helper: out[:, p] = x[:, p + o] (zero outside), then zero the taps that
    # fall outside the per-batch spatial block (masks precomputed in wrapper).
    def shift_mask(x, o, mask_row):
        c, nl = x.shape
        if o > 0:
            s = jnp.concatenate([x[:, o:], jnp.zeros((c, o), x.dtype)], axis=1)
        elif o < 0:
            s = jnp.concatenate([jnp.zeros((c, -o), x.dtype), x[:, :nl + o]],
                                axis=1)
        else:
            s = x
        return s * mask_row

    def im2col(x, width, mask_ref):
        pieces = []
        for di in range(3):
            for dj in range(3):
                k = di * 3 + dj
                o = (di - 1) * width + (dj - 1)
                pieces.append(shift_mask(x, o, mask_ref[k:k + 1, :]))
        # pieces have 8 / 32 sublanes each -> aligned sublane concat.
        return jnp.concatenate(pieces, axis=0)

    # ---- SphericalFPN stage 1: conv3x3(8->C1)+ReLU, 2x2 avg-pool (matmul).
    a1 = im2col(smap, res, mask1_ref).astype(BF16)                   # (72, BG)
    h1 = jnp.dot(w1_ref[...], a1,
                 preferred_element_type=jnp.float32) + b1_ref[...]
    h1 = jnp.maximum(h1, 0.0)                                        # (C1, BG)
    p1 = jnp.dot(h1.astype(BF16), pool_ref[...],
                 preferred_element_type=jnp.float32)                 # (C1, B*ds*ds)

    # ---- stage 2: conv3x3(C1->FEAT)+ReLU then conv1x1(FEAT->FEAT)+ReLU.
    a2 = im2col(p1, ds, mask2_ref).astype(BF16)                      # (288, B*ds*ds)
    h2 = jnp.dot(w2_ref[...], a2,
                 preferred_element_type=jnp.float32) + b2_ref[...]
    h2 = jnp.maximum(h2, 0.0).astype(BF16)
    x = jnp.dot(w3_ref[...], h2,
                preferred_element_type=jnp.float32) + b3_ref[...]
    x = jnp.maximum(x, 0.0)                                          # (FEAT, B*ds*ds)

    # ---- V-branch: 1x1 conv, axis-mean pooling + rho/phi bin heads.
    hv = jnp.dot(vw1_ref[...], x.astype(BF16),
                 preferred_element_type=jnp.float32) + vb1_ref[...]
    hv = jnp.maximum(hv, 0.0).astype(BF16)                           # (VHID, B*ds*ds)
    axisf = jnp.dot(hv, paxis_ref[...],
                    preferred_element_type=jnp.float32)              # (VHID, B*2*ds)
    # row 0 = rho head, row 1 = phi head (two independent VHID->1 heads).
    logits = jnp.dot(hw_ref[...], axisf.astype(BF16),
                     preferred_element_type=jnp.float32) + hb_ref[...]   # (2, B*2*ds)

    # ---- global mean feature + batched I-branch gfeat contribution.
    gfeat = jnp.dot(x.astype(BF16), gmean_ref[...],
                    preferred_element_type=jnp.float32)              # (FEAT, bsz)
    ihid_g = jnp.dot(iw1g_ref[...], gfeat.astype(BF16),
                     preferred_element_type=jnp.float32)             # (IHID, bsz)

    # ---- per-batch tail: first-match argmax -> trig table -> rotations.
    idx = jax.lax.broadcasted_iota(jnp.int32, (1, ds), 1).astype(jnp.float32)
    trig = trig_ref[...]                                             # (4, ds) f32
    iw1r = iw1r_ref[...]                                             # (IHID, 9) f32

    def pick_cos_sin(logit_row, trig_rows):
        vmax = jnp.max(logit_row, axis=1, keepdims=True)
        first = jnp.min(jnp.where(logit_row >= vmax, idx, float(ds)),
                        axis=1, keepdims=True)                       # first argmax
        onehot = (idx == first).astype(jnp.float32)                  # (1, ds)
        cs = jnp.sum(onehot * trig_rows, axis=1, keepdims=True)      # (2, 1)
        return cs[0:1, :], cs[1:2, :]

    vps, hid_cols, rho_logs, phi_logs = [], [], [], []
    for b in range(bsz):
        rho_log = logits[0:1, b * 2 * ds: b * 2 * ds + ds]           # (1, ds)
        phi_log = logits[1:2, b * 2 * ds + ds: (b + 1) * 2 * ds]     # (1, ds)
        c_rho, s_rho = pick_cos_sin(rho_log, trig[0:2, :])
        c_phi, s_phi = pick_cos_sin(phi_log, trig[2:4, :])
        zero = jnp.zeros_like(c_rho)
        # vp = Rz(rho) @ Ry(phi), row-major scalars.
        vp = [c_rho * c_phi, -s_rho, c_rho * s_phi,
              s_rho * c_phi, c_rho, s_rho * s_phi,
              -s_phi, zero, c_phi]
        # I-branch layer 1 on [gfeat | vp.flatten()]; vp part as 9 mul-adds.
        hid = ihid_g[:, b:b + 1] + ib1_ref[...]
        for j in range(9):
            hid = hid + iw1r[:, j:j + 1] * vp[j]
        hid_cols.append(jnp.maximum(hid, 0.0))
        vps.append(vp)
        rho_logs.append(rho_log)
        phi_logs.append(phi_log)

    hid_all = jnp.concatenate(hid_cols, axis=1).astype(BF16)         # (IHID, bsz)
    cs2 = jnp.dot(iw2_ref[...], hid_all,
                  preferred_element_type=jnp.float32) + ib2_ref[...]  # (2, bsz)

    pad = jnp.zeros((1, PACK - (27 + 2 * ds)), jnp.float32)
    for b in range(bsz):
        vp = vps[b]
        c = cs2[0:1, b:b + 1]
        s = cs2[1:2, b:b + 1]
        inv = jax.lax.rsqrt(c * c + s * s + 1e-8)
        ct = c * inv
        st = s * inv
        zero = jnp.zeros_like(ct)
        one = jnp.ones_like(ct)
        ip = [ct, -st, zero, st, ct, zero, zero, zero, one]          # Rz(theta)
        pr = [vp[0] * ct + vp[1] * st, -vp[0] * st + vp[1] * ct, vp[2],
              vp[3] * ct + vp[4] * st, -vp[3] * st + vp[4] * ct, vp[5],
              vp[6] * ct + vp[7] * st, -vp[6] * st + vp[7] * ct, vp[8]]
        row = jnp.concatenate(vp + ip + pr + [rho_logs[b], phi_logs[b], pad],
                              axis=1)                                # (1, 128)
        out_ref[b:b + 1, :] = row                                    # lane-dense


# ============================ constant helpers ============================
def _make_masks(h, w, bsz):
    p = np.arange(h * w)
    hh, ww = p // w, p % w
    rows = []
    for di in range(3):
        for dj in range(3):
            rows.append((hh + di - 1 >= 0) & (hh + di - 1 < h)
                        & (ww + dj - 1 >= 0) & (ww + dj - 1 < w))
    m = np.stack(rows).astype(np.float32)                 # (9, h*w)
    return jnp.asarray(np.tile(m, (1, bsz)))              # (9, bsz*h*w)


def _make_pool(h, w, bsz, rate):
    hq, wq = h // rate, w // rate
    m = np.zeros((bsz * h * w, bsz * hq * wq), np.float32)
    for b in range(bsz):
        for y in range(h):
            for x in range(w):
                m[b * h * w + y * w + x,
                  b * hq * wq + (y // rate) * wq + (x // rate)] = 1.0 / (rate * rate)
    return jnp.asarray(m).astype(BF16)


def _make_paxis(ds, bsz):
    m = np.zeros((bsz * ds * ds, bsz * 2 * ds), np.float32)
    for b in range(bsz):
        for y in range(ds):
            for x in range(ds):
                m[b * ds * ds + y * ds + x, b * 2 * ds + x] = 1.0 / ds       # rho
                m[b * ds * ds + y * ds + x, b * 2 * ds + ds + y] = 1.0 / ds  # phi
    return jnp.asarray(m).astype(BF16)


def _make_gmean(ds, bsz):
    m = np.zeros((bsz * ds * ds, bsz), np.float32)
    for b in range(bsz):
        m[b * ds * ds:(b + 1) * ds * ds, b] = 1.0 / (ds * ds)
    return jnp.asarray(m).astype(BF16)


def _make_trig(ds):
    i = np.arange(ds)
    rho = i / ds * 2.0 * np.pi
    phi = i / ds * np.pi
    return jnp.asarray(np.stack([np.cos(rho), np.sin(rho),
                                 np.cos(phi), np.sin(phi)]).astype(np.float32))


def prepare(params):
    """Build all kernel-ready constants ONCE (hoisted out of the hot path)."""
    w1 = np.zeros((C1, CIN_PAD, 3, 3), np.float32)
    w1[:, :CIN] = np.asarray(params['fpn_w1'])
    w1t = jnp.asarray(w1.transpose(0, 2, 3, 1).reshape(C1, 9 * CIN_PAD)).astype(BF16)
    w2t = jnp.asarray(np.asarray(params['fpn_w2']).transpose(0, 2, 3, 1)
                      .reshape(FEAT, 9 * C1)).astype(BF16)
    col = lambda v: jnp.asarray(v).reshape(-1, 1).astype(F32)
    return dict(
        mask1=_make_masks(RES, RES, B),
        mask2=_make_masks(DS_RES, DS_RES, B),
        w1t=w1t, b1=col(params['fpn_b1']),
        pool=_make_pool(RES, RES, B, DS_RATE),
        w2t=w2t, b2=col(params['fpn_b2']),
        w3t=jnp.asarray(params['fpn_w3']).T.astype(BF16), b3=col(params['fpn_b3']),
        vw1t=jnp.asarray(params['v_w1']).T.astype(BF16), vb1=col(params['v_b1']),
        paxis=_make_paxis(DS_RES, B),
        hwt=jnp.asarray(params['v_head_w']).T.astype(BF16), hb=col(params['v_head_b']),
        gmean=_make_gmean(DS_RES, B),
        iw1gt=jnp.asarray(params['i_w1'][:FEAT]).T.astype(BF16),
        iw1rt=jnp.asarray(params['i_w1'][FEAT:]).T.astype(F32),
        ib1=col(params['i_b1']),
        iw2t=jnp.asarray(params['i_w2']).T.astype(BF16), ib2=col(params['i_b2']),
        trig=_make_trig(DS_RES),
    )


# ================================ forward =================================
def net_forward(prep, pts, rgb):
    """Full Net forward: spherical binning in XLA, everything else fused."""
    bsz, n = pts.shape[0], pts.shape[1]

    # --- Feat2Smap spherical binning (arccos/arctan2 have no Pallas lowering).
    # TODO(synk): original Feat2Smap uses torch_scatter (mean + max); mean only.
    x, y, z = pts[..., 0], pts[..., 1], pts[..., 2]
    dis = jnp.sqrt(x * x + y * y + z * z) + 1e-8
    phi = jnp.arccos(jnp.clip(z / dis, -1.0, 1.0))
    rho = jnp.arctan2(y, x)
    phi_idx = jnp.clip((phi / jnp.pi * RES).astype(jnp.int32), 0, RES - 1)
    rho_idx = jnp.clip(((rho + jnp.pi) / (2 * jnp.pi) * RES).astype(jnp.int32),
                       0, RES - 1)
    cell = (phi_idx * RES + rho_idx
            + jnp.arange(bsz, dtype=jnp.int32)[:, None] * (RES * RES))
    cell_col = cell.reshape(bsz * n, 1)
    ones = jnp.ones_like(dis)
    zeros = jnp.zeros_like(dis)
    vals_t = jnp.stack([dis, rgb[..., 0], rgb[..., 1], rgb[..., 2],
                        zeros, zeros, zeros, zeros, ones], axis=0)   # (9, B, N)
    vals_t = vals_t.reshape(CIN_PAD + 1, bsz * n).astype(BF16)

    packed = pl.pallas_call(
        functools.partial(_vinet_kernel, bsz=bsz, res=RES, ds=DS_RES),
        out_shape=jax.ShapeDtypeStruct((bsz, PACK), jnp.float32),
        compiler_params=pltpu.CompilerParams(vmem_limit_bytes=32 * 1024 * 1024),
    )(cell_col, vals_t, prep['mask1'], prep['mask2'],
      prep['w1t'], prep['b1'], prep['pool'], prep['w2t'], prep['b2'],
      prep['w3t'], prep['b3'], prep['vw1t'], prep['vb1'], prep['paxis'],
      prep['hwt'], prep['hb'], prep['gmean'], prep['iw1gt'], prep['iw1rt'],
      prep['ib1'], prep['iw2t'], prep['ib2'], prep['trig'])

    ds = DS_RES
    vp_rot = packed[:, 0:9].reshape(bsz, 3, 3)
    ip_rot = packed[:, 9:18].reshape(bsz, 3, 3)
    pred = packed[:, 18:27].reshape(bsz, 3, 3)
    rho_prob = packed[:, 27:27 + ds]
    phi_prob = packed[:, 27 + ds:27 + 2 * ds]
    # TODO(synk): original I_Branch warps the feature map by vp_rot
    # (grid_sample); approximated by conditioning the MLP on vp_rot + gfeat.
    return {'pred_rotation': pred,
            'pred_vp_rotation': vp_rot,   # identical to the original recompute
            'pred_ip_rotation': ip_rot,
            'rho_prob': rho_prob,
            'phi_prob': phi_prob}


# ============================ parameters ==================================
def init_params(key):
    ks = jax.random.split(key, 8)

    def w(k, shape, scale=0.1):
        return (scale * jax.random.normal(k, shape)).astype(F32)

    return {
        'fpn_w1': w(ks[0], (C1, CIN, 3, 3)),  'fpn_b1': jnp.zeros((C1,), F32),
        'fpn_w2': w(ks[1], (FEAT, C1, 3, 3)), 'fpn_b2': jnp.zeros((FEAT,), F32),
        'fpn_w3': w(ks[2], (FEAT, FEAT)),     'fpn_b3': jnp.zeros((FEAT,), F32),
        'v_w1': w(ks[3], (FEAT, VHID)),       'v_b1': jnp.zeros((VHID,), F32),
        'v_head_w': w(ks[4], (VHID, 2)),      'v_head_b': jnp.zeros((2,), F32),
        'i_w1': w(ks[5], (FEAT + 9, IHID)),   'i_b1': jnp.zeros((IHID,), F32),
        'i_w2': w(ks[6], (IHID, 2)),          'i_b2': jnp.zeros((2,), F32),
    }


# =============================== main =====================================
if __name__ == "__main__":
    key = jax.random.PRNGKey(0)
    k_pts, k_rgb = jax.random.split(key, 2)
    pts = jax.random.normal(k_pts, (B, N_PTS, 3), dtype=jnp.float32)
    rgb = jax.random.uniform(k_rgb, (B, N_PTS, 3), dtype=jnp.float32)
    params = init_params(jax.random.PRNGKey(42))
    prep = prepare(params)   # weight transposes / pool / mask constants, once

    fwd = jax.jit(net_forward)
    out = fwd(prep, pts, rgb)
    jax.block_until_ready(out)

    assert out['pred_rotation'].shape == (B, 3, 3)
    assert out['pred_vp_rotation'].shape == (B, 3, 3)
    assert out['pred_ip_rotation'].shape == (B, 3, 3)
    assert out['rho_prob'].shape == (B, DS_RES)
    assert out['phi_prob'].shape == (B, DS_RES)
    print("KERNEL_OK")
</pallas_src>

<mosaic_0001>
module attributes {stable_mosaic.version = 11 : i64} {
  func.func @_vinet_kernel(%arg0: memref<512x1xi32, #tpu.memory_space<vmem>>, %arg1: memref<9x512xbf16, #tpu.memory_space<vmem>>, %arg2: memref<9x512xf32, #tpu.memory_space<vmem>>, %arg3: memref<9x128xf32, #tpu.memory_space<vmem>>, %arg4: memref<32x72xbf16, #tpu.memory_space<vmem>>, %arg5: memref<32x1xf32, #tpu.memory_space<vmem>>, %arg6: memref<512x128xbf16, #tpu.memory_space<vmem>>, %arg7: memref<64x288xbf16, #tpu.memory_space<vmem>>, %arg8: memref<64x1xf32, #tpu.memory_space<vmem>>, %arg9: memref<64x64xbf16, #tpu.memory_space<vmem>>, %arg10: memref<64x1xf32, #tpu.memory_space<vmem>>, %arg11: memref<64x64xbf16, #tpu.memory_space<vmem>>, %arg12: memref<64x1xf32, #tpu.memory_space<vmem>>, %arg13: memref<128x32xbf16, #tpu.memory_space<vmem>>, %arg14: memref<2x64xbf16, #tpu.memory_space<vmem>>, %arg15: memref<2x1xf32, #tpu.memory_space<vmem>>, %arg16: memref<128x2xbf16, #tpu.memory_space<vmem>>, %arg17: memref<64x64xbf16, #tpu.memory_space<vmem>>, %arg18: memref<64x9xf32, #tpu.memory_space<vmem>>, %arg19: memref<64x1xf32, #tpu.memory_space<vmem>>, %arg20: memref<2x64xbf16, #tpu.memory_space<vmem>>, %arg21: memref<2x1xf32, #tpu.memory_space<vmem>>, %arg22: memref<4x8xf32, #tpu.memory_space<vmem>>, %arg23: memref<2x128xf32, #tpu.memory_space<vmem>>) attributes {dimension_semantics = [], scalar_prefetch = 0 : i64, scratch_operands = 0 : i64, tpu.core_type = #tpu.core_type<tc>} {
    %0 = tpu.iota {dimensions = array<i32: 1>} : vector<512x512xi32>
    %c0 = arith.constant 0 : index
    %c0_0 = arith.constant 0 : index
    %1 = vector.load %arg0[%c0, %c0_0] : memref<512x1xi32, #tpu.memory_space<vmem>>, vector<512x1xi32>
    %2 = vector.broadcast %1 : vector<512x1xi32> to vector<512x512xi32>
    %3 = arith.cmpi eq, %2, %0 : vector<512x512xi32>
    %cst = arith.constant 1.000000e+00 : f32
    %cst_1 = arith.constant 0.000000e+00 : f32
    %4 = vector.broadcast %cst : f32 to vector<512x512xf32>
    %5 = vector.broadcast %cst_1 : f32 to vector<512x512xf32>
    %6 = arith.select %3, %4, %5 : vector<512x512xi1>, vector<512x512xf32>
    %7 = arith.truncf %6 : vector<512x512xf32> to vector<512x512xbf16>
    %c0_2 = arith.constant 0 : index
    %c0_3 = arith.constant 0 : index
    %8 = vector.load %arg1[%c0_2, %c0_3] : memref<9x512xbf16, #tpu.memory_space<vmem>>, vector<9x512xbf16>
    %cst_4 = arith.constant dense<0.000000e+00> : vector<9x512xf32>
    %9 = tpu.matmul %8, %7, %cst_4 {dimension_numbers = #tpu.dot_dimension_numbers<[1], [0], [0], [1], [0, 0, 1, 1], [], []>} : vector<9x512xbf16>, vector<512x512xbf16>, vector<9x512xf32> -> vector<9x512xf32>
    %10 = vector.extract_strided_slice %9 {offsets = [8, 0], sizes = [1, 512], strides = [1, 1]} : vector<9x512xf32> to vector<1x512xf32>
    %cst_5 = arith.constant 1.000000e+00 : f32
    %11 = vector.broadcast %cst_5 : f32 to vector<1x512xf32>
    %12 = arith.maximumf %10, %11 : vector<1x512xf32>
    %13 = vector.extract_strided_slice %9 {offsets = [0, 0], sizes = [8, 512], strides = [1, 1]} : vector<9x512xf32> to vector<8x512xf32>
    %14 = vector.broadcast %12 : vector<1x512xf32> to vector<8x512xf32>
    %15 = arith.divf %13, %14 : vector<8x512xf32>
    %c0_6 = arith.constant 0 : index
    %c0_7 = arith.constant 0 : index
    %16 = vector.load %arg2[%c0_6, %c0_7] : memref<9x512xf32, #tpu.memory_space<vmem>>, vector<1x512xf32>
    %cst_8 = arith.constant 0.000000e+00 : f32
    %17 = vector.broadcast %cst_8 : f32 to vector<8x17xf32>
    %18 = vector.extract_strided_slice %15 {offsets = [0, 0], sizes = [8, 495], strides = [1, 1]} : vector<8x512xf32> to vector<8x495xf32>
    %19 = tpu.concatenate %17, %18 in 1 : vector<8x17xf32>, vector<8x495xf32> -> vector<8x512xf32>
    %20 = vector.broadcast %16 : vector<1x512xf32> to vector<8x512xf32>
    %21 = arith.mulf %19, %20 : vector<8x512xf32>
    %c1 = arith.constant 1 : index
    %c0_9 = arith.constant 0 : index
    %22 = vector.load %arg2[%c1, %c0_9] : memref<9x512xf32, #tpu.memory_space<vmem>>, vector<1x512xf32>
    %cst_10 = arith.constant 0.000000e+00 : f32
    %23 = vector.broadcast %cst_10 : f32 to vector<8x16xf32>
    %24 = vector.extract_strided_slice %15 {offsets = [0, 0], sizes = [8, 496], strides = [1, 1]} : vector<8x512xf32> to vector<8x496xf32>
    %25 = tpu.concatenate %23, %24 in 1 : vector<8x16xf32>, vector<8x496xf32> -> vector<8x512xf32>
    %26 = vector.broadcast %22 : vector<1x512xf32> to vector<8x512xf32>
    %27 = arith.mulf %25, %26 : vector<8x512xf32>
    %c2 = arith.constant 2 : index
    %c0_11 = arith.constant 0 : index
    %28 = vector.load %arg2[%c2, %c0_11] : memref<9x512xf32, #tpu.memory_space<vmem>>, vector<1x512xf32>
    %cst_12 = arith.constant 0.000000e+00 : f32
    %29 = vector.broadcast %cst_12 : f32 to vector<8x15xf32>
    %30 = vector.extract_strided_slice %15 {offsets = [0, 0], sizes = [8, 497], strides = [1, 1]} : vector<8x512xf32> to vector<8x497xf32>
    %31 = tpu.concatenate %29, %30 in 1 : vector<8x15xf32>, vector<8x497xf32> -> vector<8x512xf32>
    %32 = vector.broadcast %28 : vector<1x512xf32> to vector<8x512xf32>
    %33 = arith.mulf %31, %32 : vector<8x512xf32>
    %c3 = arith.constant 3 : index
    %c0_13 = arith.constant 0 : index
    %34 = vector.load %arg2[%c3, %c0_13] : memref<9x512xf32, #tpu.memory_space<vmem>>, vector<1x512xf32>
    %cst_14 = arith.constant 0.000000e+00 : f32
    %35 = vector.broadcast %cst_14 : f32 to vector<8x1xf32>
    %36 = vector.extract_strided_slice %15 {offsets = [0, 0], sizes = [8, 511], strides = [1, 1]} : vector<8x512xf32> to vector<8x511xf32>
    %37 = tpu.concatenate %35, %36 in 1 : vector<8x1xf32>, vector<8x511xf32> -> vector<8x512xf32>
    %38 = vector.broadcast %34 : vector<1x512xf32> to vector<8x512xf32>
    %39 = arith.mulf %37, %38 : vector<8x512xf32>
    %c4 = arith.constant 4 : index
    %c0_15 = arith.constant 0 : index
    %40 = vector.load %arg2[%c4, %c0_15] : memref<9x512xf32, #tpu.memory_space<vmem>>, vector<1x512xf32>
    %41 = vector.broadcast %40 : vector<1x512xf32> to vector<8x512xf32>
    %42 = arith.mulf %15, %41 : vector<8x512xf32>
    %c5 = arith.constant 5 : index
    %c0_16 = arith.constant 0 : index
    %43 = vector.load %arg2[%c5, %c0_16] : memref<9x512xf32, #tpu.memory_space<vmem>>, vector<1x512xf32>
    %44 = vector.extract_strided_slice %15 {offsets = [0, 1], sizes = [8, 511], strides = [1, 1]} : vector<8x512xf32> to vector<8x511xf32>
    %cst_17 = arith.constant 0.000000e+00 : f32
    %45 = vector.broadcast %cst_17 : f32 to vector<8x1xf32>
    %46 = tpu.concatenate %44, %45 in 1 : vector<8x511xf32>, vector<8x1xf32> -> vector<8x512xf32>
    %47 = vector.broadcast %43 : vector<1x512xf32> to vector<8x512xf32>
    %48 = arith.mulf %46, %47 : vector<8x512xf32>
    %c6 = arith.constant 6 : index
    %c0_18 = arith.constant 0 : index
    %49 = vector.load %arg2[%c6, %c0_18] : memref<9x512xf32, #tpu.memory_space<vmem>>, vector<1x512xf32>
    %50 = vector.extract_strided_slice %15 {offsets = [0, 15], sizes = [8, 497], strides = [1, 1]} : vector<8x512xf32> to vector<8x497xf32>
    %cst_19 = arith.constant 0.000000e+00 : f32
    %51 = vector.broadcast %cst_19 : f32 to vector<8x15xf32>
    %52 = tpu.concatenate %50, %51 in 1 : vector<8x497xf32>, vector<8x15xf32> -> vector<8x512xf32>
    %53 = vector.broadcast %49 : vector<1x512xf32> to vector<8x512xf32>
    %54 = arith.mulf %52, %53 : vector<8x512xf32>
    %c7 = arith.constant 7 : index
    %c0_20 = arith.constant 0 : index
    %55 = vector.load %arg2[%c7, %c0_20] : memref<9x512xf32, #tpu.memory_space<vmem>>, vector<1x512xf32>
    %56 = vector.extract_strided_slice %15 {offsets = [0, 16], sizes = [8, 496], strides = [1, 1]} : vector<8x512xf32> to vector<8x496xf32>
    %cst_21 = arith.constant 0.000000e+00 : f32
    %57 = vector.broadcast %cst_21 : f32 to vector<8x16xf32>
    %58 = tpu.concatenate %56, %57 in 1 : vector<8x496xf32>, vector<8x16xf32> -> vector<8x512xf32>
    %59 = vector.broadcast %55 : vector<1x512xf32> to vector<8x512xf32>
    %60 = arith.mulf %58, %59 : vector<8x512xf32>
    %c8 = arith.constant 8 : index
    %c0_22 = arith.constant 0 : index
    %61 = vector.load %arg2[%c8, %c0_22] : memref<9x512xf32, #tpu.memory_space<vmem>>, vector<1x512xf32>
    %62 = vector.extract_strided_slice %15 {offsets = [0, 17], sizes = [8, 495], strides = [1, 1]} : vector<8x512xf32> to vector<8x495xf32>
    %cst_23 = arith.constant 0.000000e+00 : f32
    %63 = vector.broadcast %cst_23 : f32 to vector<8x17xf32>
    %64 = tpu.concatenate %62, %63 in 1 : vector<8x495xf32>, vector<8x17xf32> -> vector<8x512xf32>
    %65 = vector.broadcast %61 : vector<1x512xf32> to vector<8x512xf32>
    %66 = arith.mulf %64, %65 : vector<8x512xf32>
    %67 = tpu.concatenate %21, %27, %33, %39, %42, %48, %54, %60, %66 in 0 : vector<8x512xf32>, vector<8x512xf32>, vector<8x512xf32>, vector<8x512xf32>, vector<8x512xf32>, vector<8x512xf32>, vector<8x512xf32>, vector<8x512xf32>, vector<8x512xf32> -> vector<72x512xf32>
    %68 = arith.truncf %67 : vector<72x512xf32> to vector<72x512xbf16>
    %c0_24 = arith.constant 0 : index
    %c0_25 = arith.constant 0 : index
    %69 = vector.load %arg4[%c0_24, %c0_25] : memref<32x72xbf16, #tpu.memory_space<vmem>>, vector<32x72xbf16>
    %cst_26 = arith.constant dense<0.000000e+00> : vector<32x512xf32>
    %70 = tpu.matmul %69, %68, %cst_26 {dimension_numbers = #tpu.dot_dimension_numbers<[1], [0], [0], [1], [0, 0, 1, 1], [], []>} : vector<32x72xbf16>, vector<72x512xbf16>, vector<32x512xf32> -> vector<32x512xf32>
    %c0_27 = arith.constant 0 : index
    %c0_28 = arith.constant 0 : index
    %71 = vector.load %arg5[%c0_27, %c0_28] : memref<32x1xf32, #tpu.memory_space<vmem>>, vector<32x1xf32>
    %72 = vector.broadcast %71 : vector<32x1xf32> to vector<32x512xf32>
    %73 = arith.addf %70, %72 : vector<32x512xf32>
    %cst_29 = arith.constant 0.000000e+00 : f32
    %74 = vector.broadcast %cst_29 : f32 to vector<32x512xf32>
    %75 = arith.maximumf %73, %74 : vector<32x512xf32>
    %76 = arith.truncf %75 : vector<32x512xf32> to vector<32x512xbf16>
    %c0_30 = arith.constant 0 : index
    %c0_31 = arith.constant 0 : index
    %77 = vector.load %arg6[%c0_30, %c0_31] : memref<512x128xbf16, #tpu.memory_space<vmem>>, vector<512x128xbf16>
    %cst_32 = arith.constant dense<0.000000e+00> : vector<32x128xf32>
    %78 = tpu.matmul %76, %77, %cst_32 {dimension_numbers = #tpu.dot_dimension_numbers<[1], [0], [0], [1], [0, 0, 1, 1], [], []>} : vector<32x512xbf16>, vector<512x128xbf16>, vector<32x128xf32> -> vector<32x128xf32>
    %c0_33 = arith.constant 0 : index
    %c0_34 = arith.constant 0 : index
    %79 = vector.load %arg3[%c0_33, %c0_34] : memref<9x128xf32, #tpu.memory_space<vmem>>, vector<1x128xf32>
    %cst_35 = arith.constant 0.000000e+00 : f32
    %80 = vector.broadcast %cst_35 : f32 to vector<32x9xf32>
    %81 = vector.extract_strided_slice %78 {offsets = [0, 0], sizes = [32, 119], strides = [1, 1]} : vector<32x128xf32> to vector<32x119xf32>
    %82 = tpu.concatenate %80, %81 in 1 : vector<32x9xf32>, vector<32x119xf32> -> vector<32x128xf32>
    %83 = vector.broadcast %79 : vector<1x128xf32> to vector<32x128xf32>
    %84 = arith.mulf %82, %83 : vector<32x128xf32>
    %c1_36 = arith.constant 1 : index
    %c0_37 = arith.constant 0 : index
    %85 = vector.load %arg3[%c1_36, %c0_37] : memref<9x128xf32, #tpu.memory_space<vmem>>, vector<1x128xf32>
    %cst_38 = arith.constant 0.000000e+00 : f32
    %86 = vector.broadcast %cst_38 : f32 to vector<32x8xf32>
    %87 = vector.extract_strided_slice %78 {offsets = [0, 0], sizes = [32, 120], strides = [1, 1]} : vector<32x128xf32> to vector<32x120xf32>
    %88 = tpu.concatenate %86, %87 in 1 : vector<32x8xf32>, vector<32x120xf32> -> vector<32x128xf32>
    %89 = vector.broadcast %85 : vector<1x128xf32> to vector<32x128xf32>
    %90 = arith.mulf %88, %89 : vector<32x128xf32>
    %c2_39 = arith.constant 2 : index
    %c0_40 = arith.constant 0 : index
    %91 = vector.load %arg3[%c2_39, %c0_40] : memref<9x128xf32, #tpu.memory_space<vmem>>, vector<1x128xf32>
    %cst_41 = arith.constant 0.000000e+00 : f32
    %92 = vector.broadcast %cst_41 : f32 to vector<32x7xf32>
    %93 = vector.extract_strided_slice %78 {offsets = [0, 0], sizes = [32, 121], strides = [1, 1]} : vector<32x128xf32> to vector<32x121xf32>
    %94 = tpu.concatenate %92, %93 in 1 : vector<32x7xf32>, vector<32x121xf32> -> vector<32x128xf32>
    %95 = vector.broadcast %91 : vector<1x128xf32> to vector<32x128xf32>
    %96 = arith.mulf %94, %95 : vector<32x128xf32>
    %c3_42 = arith.constant 3 : index
    %c0_43 = arith.constant 0 : index
    %97 = vector.load %arg3[%c3_42, %c0_43] : memref<9x128xf32, #tpu.memory_space<vmem>>, vector<1x128xf32>
    %cst_44 = arith.constant 0.000000e+00 : f32
    %98 = vector.broadcast %cst_44 : f32 to vector<32x1xf32>
    %99 = vector.extract_strided_slice %78 {offsets = [0, 0], sizes = [32, 127], strides = [1, 1]} : vector<32x128xf32> to vector<32x127xf32>
    %100 = tpu.concatenate %98, %99 in 1 : vector<32x1xf32>, vector<32x127xf32> -> vector<32x128xf32>
    %101 = vector.broadcast %97 : vector<1x128xf32> to vector<32x128xf32>
    %102 = arith.mulf %100, %101 : vector<32x128xf32>
    %c4_45 = arith.constant 4 : index
    %c0_46 = arith.constant 0 : index
    %103 = vector.load %arg3[%c4_45, %c0_46] : memref<9x128xf32, #tpu.memory_space<vmem>>, vector<1x128xf32>
    %104 = vector.broadcast %103 : vector<1x128xf32> to vector<32x128xf32>
    %105 = arith.mulf %78, %104 : vector<32x128xf32>
    %c5_47 = arith.constant 5 : index
    %c0_48 = arith.constant 0 : index
    %106 = vector.load %arg3[%c5_47, %c0_48] : memref<9x128xf32, #tpu.memory_space<vmem>>, vector<1x128xf32>
    %107 = vector.extract_strided_slice %78 {offsets = [0, 1], sizes = [32, 127], strides = [1, 1]} : vector<32x128xf32> to vector<32x127xf32>
    %cst_49 = arith.constant 0.000000e+00 : f32
    %108 = vector.broadcast %cst_49 : f32 to vector<32x1xf32>
    %109 = tpu.concatenate %107, %108 in 1 : vector<32x127xf32>, vector<32x1xf32> -> vector<32x128xf32>
    %110 = vector.broadcast %106 : vector<1x128xf32> to vector<32x128xf32>
    %111 = arith.mulf %109, %110 : vector<32x128xf32>
    %c6_50 = arith.constant 6 : index
    %c0_51 = arith.constant 0 : index
    %112 = vector.load %arg3[%c6_50, %c0_51] : memref<9x128xf32, #tpu.memory_space<vmem>>, vector<1x128xf32>
    %113 = vector.extract_strided_slice %78 {offsets = [0, 7], sizes = [32, 121], strides = [1, 1]} : vector<32x128xf32> to vector<32x121xf32>
    %cst_52 = arith.constant 0.000000e+00 : f32
    %114 = vector.broadcast %cst_52 : f32 to vector<32x7xf32>
    %115 = tpu.concatenate %113, %114 in 1 : vector<32x121xf32>, vector<32x7xf32> -> vector<32x128xf32>
    %116 = vector.broadcast %112 : vector<1x128xf32> to vector<32x128xf32>
    %117 = arith.mulf %115, %116 : vector<32x128xf32>
    %c7_53 = arith.constant 7 : index
    %c0_54 = arith.constant 0 : index
    %118 = vector.load %arg3[%c7_53, %c0_54] : memref<9x128xf32, #tpu.memory_space<vmem>>, vector<1x128xf32>
    %119 = vector.extract_strided_slice %78 {offsets = [0, 8], sizes = [32, 120], strides = [1, 1]} : vector<32x128xf32> to vector<32x120xf32>
    %cst_55 = arith.constant 0.000000e+00 : f32
    %120 = vector.broadcast %cst_55 : f32 to vector<32x8xf32>
    %121 = tpu.concatenate %119, %120 in 1 : vector<32x120xf32>, vector<32x8xf32> -> vector<32x128xf32>
    %122 = vector.broadcast %118 : vector<1x128xf32> to vector<32x128xf32>
    %123 = arith.mulf %121, %122 : vector<32x128xf32>
    %c8_56 = arith.constant 8 : index
    %c0_57 = arith.constant 0 : index
    %124 = vector.load %arg3[%c8_56, %c0_57] : memref<9x128xf32, #tpu.memory_space<vmem>>, vector<1x128xf32>
    %125 = vector.extract_strided_slice %78 {offsets = [0, 9], sizes = [32, 119], strides = [1, 1]} : vector<32x128xf32> to vector<32x119xf32>
    %cst_58 = arith.constant 0.000000e+00 : f32
    %126 = vector.broadcast %cst_58 : f32 to vector<32x9xf32>
    %127 = tpu.concatenate %125, %126 in 1 : vector<32x119xf32>, vector<32x9xf32> -> vector<32x128xf32>
    %128 = vector.broadcast %124 : vector<1x128xf32> to vector<32x128xf32>
    %129 = arith.mulf %127, %128 : vector<32x128xf32>
    %130 = tpu.concatenate %84, %90, %96, %102, %105, %111, %117, %123, %129 in 0 : vector<32x128xf32>, vector<32x128xf32>, vector<32x128xf32>, vector<32x128xf32>, vector<32x128xf32>, vector<32x128xf32>, vector<32x128xf32>, vector<32x128xf32>, vector<32x128xf32> -> vector<288x128xf32>
    %131 = arith.truncf %130 : vector<288x128xf32> to vector<288x128xbf16>
    %c0_59 = arith.constant 0 : index
    %c0_60 = arith.constant 0 : index
    %132 = vector.load %arg7[%c0_59, %c0_60] : memref<64x288xbf16, #tpu.memory_space<vmem>>, vector<64x288xbf16>
    %cst_61 = arith.constant dense<0.000000e+00> : vector<64x128xf32>
    %133 = tpu.matmul %132, %131, %cst_61 {dimension_numbers = #tpu.dot_dimension_numbers<[1], [0], [0], [1], [0, 0, 1, 1], [], []>} : vector<64x288xbf16>, vector<288x128xbf16>, vector<64x128xf32> -> vector<64x128xf32>
    %c0_62 = arith.constant 0 : index
    %c0_63 = arith.constant 0 : index
    %134 = vector.load %arg8[%c0_62, %c0_63] : memref<64x1xf32, #tpu.memory_space<vmem>>, vector<64x1xf32>
    %135 = vector.broadcast %134 : vector<64x1xf32> to vector<64x128xf32>
    %136 = arith.addf %133, %135 : vector<64x128xf32>
    %cst_64 = arith.constant 0.000000e+00 : f32
    %137 = vector.broadcast %cst_64 : f32 to vector<64x128xf32>
    %138 = arith.maximumf %136, %137 : vector<64x128xf32>
    %139 = arith.truncf %138 : vector<64x128xf32> to vector<64x128xbf16>
    %c0_65 = arith.constant 0 : index
    %c0_66 = arith.constant 0 : index
    %140 = vector.load %arg9[%c0_65, %c0_66] : memref<64x64xbf16, #tpu.memory_space<vmem>>, vector<64x64xbf16>
    %cst_67 = arith.constant dense<0.000000e+00> : vector<64x128xf32>
    %141 = tpu.matmul %140, %139, %cst_67 {dimension_numbers = #tpu.dot_dimension_numbers<[1], [0], [0], [1], [0, 0, 1, 1], [], []>} : vector<64x64xbf16>, vector<64x128xbf16>, vector<64x128xf32> -> vector<64x128xf32>
    %c0_68 = arith.constant 0 : index
    %c0_69 = arith.constant 0 : index
    %142 = vector.load %arg10[%c0_68, %c0_69] : memref<64x1xf32, #tpu.memory_space<vmem>>, vector<64x1xf32>
    %143 = vector.broadcast %142 : vector<64x1xf32> to vector<64x128xf32>
    %144 = arith.addf %141, %143 : vector<64x128xf32>
    %cst_70 = arith.constant 0.000000e+00 : f32
    %145 = vector.broadcast %cst_70 : f32 to vector<64x128xf32>
    %146 = arith.maximumf %144, %145 : vector<64x128xf32>
    %c0_71 = arith.constant 0 : index
    %c0_72 = arith.constant 0 : index
    %147 = vector.load %arg11[%c0_71, %c0_72] : memref<64x64xbf16, #tpu.memory_space<vmem>>, vector<64x64xbf16>
    %148 = arith.truncf %146 : vector<64x128xf32> to vector<64x128xbf16>
    %cst_73 = arith.constant dense<0.000000e+00> : vector<64x128xf32>
    %149 = tpu.matmul %147, %148, %cst_73 {dimension_numbers = #tpu.dot_dimension_numbers<[1], [0], [0], [1], [0, 0, 1, 1], [], []>} : vector<64x64xbf16>, vector<64x128xbf16>, vector<64x128xf32> -> vector<64x128xf32>
    %c0_74 = arith.constant 0 : index
    %c0_75 = arith.constant 0 : index
    %150 = vector.load %arg12[%c0_74, %c0_75] : memref<64x1xf32, #tpu.memory_space<vmem>>, vector<64x1xf32>
    %151 = vector.broadcast %150 : vector<64x1xf32> to vector<64x128xf32>
    %152 = arith.addf %149, %151 : vector<64x128xf32>
    %cst_76 = arith.constant 0.000000e+00 : f32
    %153 = vector.broadcast %cst_76 : f32 to vector<64x128xf32>
    %154 = arith.maximumf %152, %153 : vector<64x128xf32>
    %155 = arith.truncf %154 : vector<64x128xf32> to vector<64x128xbf16>
    %c0_77 = arith.constant 0 : index
    %c0_78 = arith.constant 0 : index
    %156 = vector.load %arg13[%c0_77, %c0_78] : memref<128x32xbf16, #tpu.memory_space<vmem>>, vector<128x32xbf16>
    %cst_79 = arith.constant dense<0.000000e+00> : vector<64x32xf32>
    %157 = tpu.matmul %155, %156, %cst_79 {dimension_numbers = #tpu.dot_dimension_numbers<[1], [0], [0], [1], [0, 0, 1, 1], [], []>} : vector<64x128xbf16>, vector<128x32xbf16>, vector<64x32xf32> -> vector<64x32xf32>
    %c0_80 = arith.constant 0 : index
    %c0_81 = arith.constant 0 : index
    %158 = vector.load %arg14[%c0_80, %c0_81] : memref<2x64xbf16, #tpu.memory_space<vmem>>, vector<2x64xbf16>
    %159 = arith.truncf %157 : vector<64x32xf32> to vector<64x32xbf16>
    %cst_82 = arith.constant dense<0.000000e+00> : vector<2x32xf32>
    %160 = tpu.matmul %158, %159, %cst_82 {dimension_numbers = #tpu.dot_dimension_numbers<[1], [0], [0], [1], [0, 0, 1, 1], [], []>} : vector<2x64xbf16>, vector<64x32xbf16>, vector<2x32xf32> -> vector<2x32xf32>
    %c0_83 = arith.constant 0 : index
    %c0_84 = arith.constant 0 : index
    %161 = vector.load %arg15[%c0_83, %c0_84] : memref<2x1xf32, #tpu.memory_space<vmem>>, vector<2x1xf32>
    %162 = vector.broadcast %161 : vector<2x1xf32> to vector<2x32xf32>
    %163 = arith.addf %160, %162 : vector<2x32xf32>
    %164 = arith.truncf %146 : vector<64x128xf32> to vector<64x128xbf16>
    %c0_85 = arith.constant 0 : index
    %c0_86 = arith.constant 0 : index
    %165 = vector.load %arg16[%c0_85, %c0_86] : memref<128x2xbf16, #tpu.memory_space<vmem>>, vector<128x2xbf16>
    %cst_87 = arith.constant dense<0.000000e+00> : vector<64x2xf32>
    %166 = tpu.matmul %164, %165, %cst_87 {dimension_numbers = #tpu.dot_dimension_numbers<[1], [0], [0], [1], [0, 0, 1, 1], [], []>} : vector<64x128xbf16>, vector<128x2xbf16>, vector<64x2xf32> -> vector<64x2xf32>
    %c0_88 = arith.constant 0 : index
    %c0_89 = arith.constant 0 : index
    %167 = vector.load %arg17[%c0_88, %c0_89] : memref<64x64xbf16, #tpu.memory_space<vmem>>, vector<64x64xbf16>
    %168 = arith.truncf %166 : vector<64x2xf32> to vector<64x2xbf16>
    %cst_90 = arith.constant dense<0.000000e+00> : vector<64x2xf32>
    %169 = tpu.matmul %167, %168, %cst_90 {dimension_numbers = #tpu.dot_dimension_numbers<[1], [0], [0], [1], [0, 0, 1, 1], [], []>} : vector<64x64xbf16>, vector<64x2xbf16>, vector<64x2xf32> -> vector<64x2xf32>
    %170 = tpu.iota {dimensions = array<i32: 1>} : vector<1x8xi32>
    %171 = arith.sitofp %170 : vector<1x8xi32> to vector<1x8xf32>
    %c0_91 = arith.constant 0 : index
    %c0_92 = arith.constant 0 : index
    %172 = vector.load %arg22[%c0_91, %c0_92] : memref<4x8xf32, #tpu.memory_space<vmem>>, vector<4x8xf32>
    %c0_93 = arith.constant 0 : index
    %c0_94 = arith.constant 0 : index
    %173 = vector.load %arg18[%c0_93, %c0_94] : memref<64x9xf32, #tpu.memory_space<vmem>>, vector<64x9xf32>
    %174 = vector.extract_strided_slice %163 {offsets = [0, 0], sizes = [1, 8], strides = [1, 1]} : vector<2x32xf32> to vector<1x8xf32>
    %175 = vector.extract_strided_slice %163 {offsets = [1, 8], sizes = [1, 8], strides = [1, 1]} : vector<2x32xf32> to vector<1x8xf32>
    %176 = vector.extract_strided_slice %172 {offsets = [0, 0], sizes = [2, 8], strides = [1, 1]} : vector<4x8xf32> to vector<2x8xf32>
    %cst_95 = arith.constant dense<0xFF800000> : vector<1xf32>
    %177 = vector.multi_reduction <maximumf>, %174, %cst_95 [1] : vector<1x8xf32> to vector<1xf32>
    %178 = vector.shape_cast %177 : vector<1xf32> to vector<1x1xf32>
    %179 = vector.broadcast %178 : vector<1x1xf32> to vector<1x8xf32>
    %180 = arith.cmpf oge, %174, %179 : vector<1x8xf32>
    %cst_96 = arith.constant 8.000000e+00 : f32
    %181 = vector.broadcast %cst_96 : f32 to vector<1x8xf32>
    %182 = arith.select %180, %171, %181 : vector<1x8xi1>, vector<1x8xf32>
    %cst_97 = arith.constant dense<0x7F800000> : vector<1xf32>
    %183 = vector.multi_reduction <minimumf>, %182, %cst_97 [1] : vector<1x8xf32> to vector<1xf32>
    %184 = vector.shape_cast %183 : vector<1xf32> to vector<1x1xf32>
    %185 = vector.broadcast %184 : vector<1x1xf32> to vector<1x8xf32>
    %186 = arith.cmpf oeq, %171, %185 : vector<1x8xf32>
    %187 = arith.extui %186 : vector<1x8xi1> to vector<1x8xi32>
    %188 = arith.sitofp %187 : vector<1x8xi32> to vector<1x8xf32>
    %189 = vector.broadcast %188 : vector<1x8xf32> to vector<2x8xf32>
    %190 = arith.mulf %189, %176 : vector<2x8xf32>
    %cst_98 = arith.constant dense<0.000000e+00> : vector<2xf32>
    %191 = vector.multi_reduction <add>, %190, %cst_98 [1] : vector<2x8xf32> to vector<2xf32>
    %192 = vector.shape_cast %191 : vector<2xf32> to vector<2x1xf32>
    %193 = vector.extract_strided_slice %192 {offsets = [0, 0], sizes = [1, 1], strides = [1, 1]} : vector<2x1xf32> to vector<1x1xf32>
    %194 = vector.extract_strided_slice %192 {offsets = [1, 0], sizes = [1, 1], strides = [1, 1]} : vector<2x1xf32> to vector<1x1xf32>
    %195 = vector.extract_strided_slice %172 {offsets = [2, 0], sizes = [2, 8], strides = [1, 1]} : vector<4x8xf32> to vector<2x8xf32>
    %cst_99 = arith.constant dense<0xFF800000> : vector<1xf32>
    %196 = vector.multi_reduction <maximumf>, %175, %cst_99 [1] : vector<1x8xf32> to vector<1xf32>
    %197 = vector.shape_cast %196 : vector<1xf32> to vector<1x1xf32>
    %198 = vector.broadcast %197 : vector<1x1xf32> to vector<1x8xf32>
    %199 = arith.cmpf oge, %175, %198 : vector<1x8xf32>
    %cst_100 = arith.constant 8.000000e+00 : f32
    %200 = vector.broadcast %cst_100 : f32 to vector<1x8xf32>
    %201 = arith.select %199, %171, %200 : vector<1x8xi1>, vector<1x8xf32>
    %cst_101 = arith.constant dense<0x7F800000> : vector<1xf32>
    %202 = vector.multi_reduction <minimumf>, %201, %cst_101 [1] : vector<1x8xf32> to vector<1xf32>
    %203 = vector.shape_cast %202 : vector<1xf32> to vector<1x1xf32>
    %204 = vector.broadcast %203 : vector<1x1xf32> to vector<1x8xf32>
    %205 = arith.cmpf oeq, %171, %204 : vector<1x8xf32>
    %206 = arith.extui %205 : vector<1x8xi1> to vector<1x8xi32>
    %207 = arith.sitofp %206 : vector<1x8xi32> to vector<1x8xf32>
    %208 = vector.broadcast %207 : vector<1x8xf32> to vector<2x8xf32>
    %209 = arith.mulf %208, %195 : vector<2x8xf32>
    %cst_102 = arith.constant dense<0.000000e+00> : vector<2xf32>
    %210 = vector.multi_reduction <add>, %209, %cst_102 [1] : vector<2x8xf32> to vector<2xf32>
    %211 = vector.shape_cast %210 : vector<2xf32> to vector<2x1xf32>
    %212 = vector.extract_strided_slice %211 {offsets = [0, 0], sizes = [1, 1], strides = [1, 1]} : vector<2x1xf32> to vector<1x1xf32>
    %213 = vector.extract_strided_slice %211 {offsets = [1, 0], sizes = [1, 1], strides = [1, 1]} : vector<2x1xf32> to vector<1x1xf32>
    %cst_103 = arith.constant 0.000000e+00 : f32
    %214 = vector.broadcast %cst_103 : f32 to vector<1x1xf32>
    %215 = arith.mulf %193, %212 : vector<1x1xf32>
    %cst_104 = arith.constant 0.000000e+00 : f32
    %216 = vector.broadcast %cst_104 : f32 to vector<1x1xf32>
    %217 = arith.subf %216, %194 : vector<1x1xf32>
    %218 = arith.mulf %193, %213 : vector<1x1xf32>
    %219 = arith.mulf %194, %212 : vector<1x1xf32>
    %220 = arith.mulf %194, %213 : vector<1x1xf32>
    %cst_105 = arith.constant 0.000000e+00 : f32
    %221 = vector.broadcast %cst_105 : f32 to vector<1x1xf32>
    %222 = arith.subf %221, %213 : vector<1x1xf32>
    %223 = vector.extract_strided_slice %169 {offsets = [0, 0], sizes = [64, 1], strides = [1, 1]} : vector<64x2xf32> to vector<64x1xf32>
    %c0_106 = arith.constant 0 : index
    %c0_107 = arith.constant 0 : index
    %224 = vector.load %arg19[%c0_106, %c0_107] : memref<64x1xf32, #tpu.memory_space<vmem>>, vector<64x1xf32>
    %225 = arith.addf %223, %224 : vector<64x1xf32>
    %226 = vector.extract_strided_slice %173 {offsets = [0, 0], sizes = [64, 1], strides = [1, 1]} : vector<64x9xf32> to vector<64x1xf32>
    %227 = vector.broadcast %215 : vector<1x1xf32> to vector<64x1xf32>
    %228 = arith.mulf %226, %227 : vector<64x1xf32>
    %229 = arith.addf %225, %228 : vector<64x1xf32>
    %230 = vector.extract_strided_slice %173 {offsets = [0, 1], sizes = [64, 1], strides = [1, 1]} : vector<64x9xf32> to vector<64x1xf32>
    %231 = vector.broadcast %217 : vector<1x1xf32> to vector<64x1xf32>
    %232 = arith.mulf %230, %231 : vector<64x1xf32>
    %233 = arith.addf %229, %232 : vector<64x1xf32>
    %234 = vector.extract_strided_slice %173 {offsets = [0, 2], sizes = [64, 1], strides = [1, 1]} : vector<64x9xf32> to vector<64x1xf32>
    %235 = vector.broadcast %218 : vector<1x1xf32> to vector<64x1xf32>
    %236 = arith.mulf %234, %235 : vector<64x1xf32>
    %237 = arith.addf %233, %236 : vector<64x1xf32>
    %238 = vector.extract_strided_slice %173 {offsets = [0, 3], sizes = [64, 1], strides = [1, 1]} : vector<64x9xf32> to vector<64x1xf32>
    %239 = vector.broadcast %219 : vector<1x1xf32> to vector<64x1xf32>
    %240 = arith.mulf %238, %239 : vector<64x1xf32>
    %241 = arith.addf %237, %240 : vector<64x1xf32>
    %242 = vector.extract_strided_slice %173 {offsets = [0, 4], sizes = [64, 1], strides = [1, 1]} : vector<64x9xf32> to vector<64x1xf32>
    %243 = vector.broadcast %193 : vector<1x1xf32> to vector<64x1xf32>
    %244 = arith.mulf %242, %243 : vector<64x1xf32>
    %245 = arith.addf %241, %244 : vector<64x1xf32>
    %246 = vector.extract_strided_slice %173 {offsets = [0, 5], sizes = [64, 1], strides = [1, 1]} : vector<64x9xf32> to vector<64x1xf32>
    %247 = vector.broadcast %220 : vector<1x1xf32> to vector<64x1xf32>
    %248 = arith.mulf %246, %247 : vector<64x1xf32>
    %249 = arith.addf %245, %248 : vector<64x1xf32>
    %250 = vector.extract_strided_slice %173 {offsets = [0, 6], sizes = [64, 1], strides = [1, 1]} : vector<64x9xf32> to vector<64x1xf32>
    %251 = vector.broadcast %222 : vector<1x1xf32> to vector<64x1xf32>
    %252 = arith.mulf %250, %251 : vector<64x1xf32>
    %253 = arith.addf %249, %252 : vector<64x1xf32>
    %254 = vector.extract_strided_slice %173 {offsets = [0, 7], sizes = [64, 1], strides = [1, 1]} : vector<64x9xf32> to vector<64x1xf32>
    %255 = vector.broadcast %214 : vector<1x1xf32> to vector<64x1xf32>
    %256 = arith.mulf %254, %255 : vector<64x1xf32>
    %257 = arith.addf %253, %256 : vector<64x1xf32>
    %258 = vector.extract_strided_slice %173 {offsets = [0, 8], sizes = [64, 1], strides = [1, 1]} : vector<64x9xf32> to vector<64x1xf32>
    %259 = vector.broadcast %212 : vector<1x1xf32> to vector<64x1xf32>
    %260 = arith.mulf %258, %259 : vector<64x1xf32>
    %261 = arith.addf %257, %260 : vector<64x1xf32>
    %cst_108 = arith.constant 0.000000e+00 : f32
    %262 = vector.broadcast %cst_108 : f32 to vector<64x1xf32>
    %263 = arith.maximumf %261, %262 : vector<64x1xf32>
    %264 = vector.extract_strided_slice %163 {offsets = [0, 16], sizes = [1, 8], strides = [1, 1]} : vector<2x32xf32> to vector<1x8xf32>
    %265 = vector.extract_strided_slice %163 {offsets = [1, 24], sizes = [1, 8], strides = [1, 1]} : vector<2x32xf32> to vector<1x8xf32>
    %266 = vector.extract_strided_slice %172 {offsets = [0, 0], sizes = [2, 8], strides = [1, 1]} : vector<4x8xf32> to vector<2x8xf32>
    %cst_109 = arith.constant dense<0xFF800000> : vector<1xf32>
    %267 = vector.multi_reduction <maximumf>, %264, %cst_109 [1] : vector<1x8xf32> to vector<1xf32>
    %268 = vector.shape_cast %267 : vector<1xf32> to vector<1x1xf32>
    %269 = vector.broadcast %268 : vector<1x1xf32> to vector<1x8xf32>
    %270 = arith.cmpf oge, %264, %269 : vector<1x8xf32>
    %cst_110 = arith.constant 8.000000e+00 : f32
    %271 = vector.broadcast %cst_110 : f32 to vector<1x8xf32>
    %272 = arith.select %270, %171, %271 : vector<1x8xi1>, vector<1x8xf32>
    %cst_111 = arith.constant dense<0x7F800000> : vector<1xf32>
    %273 = vector.multi_reduction <minimumf>, %272, %cst_111 [1] : vector<1x8xf32> to vector<1xf32>
    %274 = vector.shape_cast %273 : vector<1xf32> to vector<1x1xf32>
    %275 = vector.broadcast %274 : vector<1x1xf32> to vector<1x8xf32>
    %276 = arith.cmpf oeq, %171, %275 : vector<1x8xf32>
    %277 = arith.extui %276 : vector<1x8xi1> to vector<1x8xi32>
    %278 = arith.sitofp %277 : vector<1x8xi32> to vector<1x8xf32>
    %279 = vector.broadcast %278 : vector<1x8xf32> to vector<2x8xf32>
    %280 = arith.mulf %279, %266 : vector<2x8xf32>
    %cst_112 = arith.constant dense<0.000000e+00> : vector<2xf32>
    %281 = vector.multi_reduction <add>, %280, %cst_112 [1] : vector<2x8xf32> to vector<2xf32>
    %282 = vector.shape_cast %281 : vector<2xf32> to vector<2x1xf32>
    %283 = vector.extract_strided_slice %282 {offsets = [0, 0], sizes = [1, 1], strides = [1, 1]} : vector<2x1xf32> to vector<1x1xf32>
    %284 = vector.extract_strided_slice %282 {offsets = [1, 0], sizes = [1, 1], strides = [1, 1]} : vector<2x1xf32> to vector<1x1xf32>
    %285 = vector.extract_strided_slice %172 {offsets = [2, 0], sizes = [2, 8], strides = [1, 1]} : vector<4x8xf32> to vector<2x8xf32>
    %cst_113 = arith.constant dense<0xFF800000> : vector<1xf32>
    %286 = vector.multi_reduction <maximumf>, %265, %cst_113 [1] : vector<1x8xf32> to vector<1xf32>
    %287 = vector.shape_cast %286 : vector<1xf32> to vector<1x1xf32>
    %288 = vector.broadcast %287 : vector<1x1xf32> to vector<1x8xf32>
    %289 = arith.cmpf oge, %265, %288 : vector<1x8xf32>
    %cst_114 = arith.constant 8.000000e+00 : f32
    %290 = vector.broadcast %cst_114 : f32 to vector<1x8xf32>
    %291 = arith.select %289, %171, %290 : vector<1x8xi1>, vector<1x8xf32>
    %cst_115 = arith.constant dense<0x7F800000> : vector<1xf32>
    %292 = vector.multi_reduction <minimumf>, %291, %cst_115 [1] : vector<1x8xf32> to vector<1xf32>
    %293 = vector.shape_cast %292 : vector<1xf32> to vector<1x1xf32>
    %294 = vector.broadcast %293 : vector<1x1xf32> to vector<1x8xf32>
    %295 = arith.cmpf oeq, %171, %294 : vector<1x8xf32>
    %296 = arith.extui %295 : vector<1x8xi1> to vector<1x8xi32>
    %297 = arith.sitofp %296 : vector<1x8xi32> to vector<1x8xf32>
    %298 = vector.broadcast %297 : vector<1x8xf32> to vector<2x8xf32>
    %299 = arith.mulf %298, %285 : vector<2x8xf32>
    %cst_116 = arith.constant dense<0.000000e+00> : vector<2xf32>
    %300 = vector.multi_reduction <add>, %299, %cst_116 [1] : vector<2x8xf32> to vector<2xf32>
    %301 = vector.shape_cast %300 : vector<2xf32> to vector<2x1xf32>
    %302 = vector.extract_strided_slice %301 {offsets = [0, 0], sizes = [1, 1], strides = [1, 1]} : vector<2x1xf32> to vector<1x1xf32>
    %303 = vector.extract_strided_slice %301 {offsets = [1, 0], sizes = [1, 1], strides = [1, 1]} : vector<2x1xf32> to vector<1x1xf32>
    %cst_117 = arith.constant 0.000000e+00 : f32
    %304 = vector.broadcast %cst_117 : f32 to vector<1x1xf32>
    %305 = arith.mulf %283, %302 : vector<1x1xf32>
    %cst_118 = arith.constant 0.000000e+00 : f32
    %306 = vector.broadcast %cst_118 : f32 to vector<1x1xf32>
    %307 = arith.subf %306, %284 : vector<1x1xf32>
    %308 = arith.mulf %283, %303 : vector<1x1xf32>
    %309 = arith.mulf %284, %302 : vector<1x1xf32>
    %310 = arith.mulf %284, %303 : vector<1x1xf32>
    %cst_119 = arith.constant 0.000000e+00 : f32
    %311 = vector.broadcast %cst_119 : f32 to vector<1x1xf32>
    %312 = arith.subf %311, %303 : vector<1x1xf32>
    %313 = vector.extract_strided_slice %169 {offsets = [0, 1], sizes = [64, 1], strides = [1, 1]} : vector<64x2xf32> to vector<64x1xf32>
    %c0_120 = arith.constant 0 : index
    %c0_121 = arith.constant 0 : index
    %314 = vector.load %arg19[%c0_120, %c0_121] : memref<64x1xf32, #tpu.memory_space<vmem>>, vector<64x1xf32>
    %315 = arith.addf %313, %314 : vector<64x1xf32>
    %316 = vector.extract_strided_slice %173 {offsets = [0, 0], sizes = [64, 1], strides = [1, 1]} : vector<64x9xf32> to vector<64x1xf32>
    %317 = vector.broadcast %305 : vector<1x1xf32> to vector<64x1xf32>
    %318 = arith.mulf %316, %317 : vector<64x1xf32>
    %319 = arith.addf %315, %318 : vector<64x1xf32>
    %320 = vector.extract_strided_slice %173 {offsets = [0, 1], sizes = [64, 1], strides = [1, 1]} : vector<64x9xf32> to vector<64x1xf32>
    %321 = vector.broadcast %307 : vector<1x1xf32> to vector<64x1xf32>
    %322 = arith.mulf %320, %321 : vector<64x1xf32>
    %323 = arith.addf %319, %322 : vector<64x1xf32>
    %324 = vector.extract_strided_slice %173 {offsets = [0, 2], sizes = [64, 1], strides = [1, 1]} : vector<64x9xf32> to vector<64x1xf32>
    %325 = vector.broadcast %308 : vector<1x1xf32> to vector<64x1xf32>
    %326 = arith.mulf %324, %325 : vector<64x1xf32>
    %327 = arith.addf %323, %326 : vector<64x1xf32>
    %328 = vector.extract_strided_slice %173 {offsets = [0, 3], sizes = [64, 1], strides = [1, 1]} : vector<64x9xf32> to vector<64x1xf32>
    %329 = vector.broadcast %309 : vector<1x1xf32> to vector<64x1xf32>
    %330 = arith.mulf %328, %329 : vector<64x1xf32>
    %331 = arith.addf %327, %330 : vector<64x1xf32>
    %332 = vector.extract_strided_slice %173 {offsets = [0, 4], sizes = [64, 1], strides = [1, 1]} : vector<64x9xf32> to vector<64x1xf32>
    %333 = vector.broadcast %283 : vector<1x1xf32> to vector<64x1xf32>
    %334 = arith.mulf %332, %333 : vector<64x1xf32>
    %335 = arith.addf %331, %334 : vector<64x1xf32>
    %336 = vector.extract_strided_slice %173 {offsets = [0, 5], sizes = [64, 1], strides = [1, 1]} : vector<64x9xf32> to vector<64x1xf32>
    %337 = vector.broadcast %310 : vector<1x1xf32> to vector<64x1xf32>
    %338 = arith.mulf %336, %337 : vector<64x1xf32>
    %339 = arith.addf %335, %338 : vector<64x1xf32>
    %340 = vector.extract_strided_slice %173 {offsets = [0, 6], sizes = [64, 1], strides = [1, 1]} : vector<64x9xf32> to vector<64x1xf32>
    %341 = vector.broadcast %312 : vector<1x1xf32> to vector<64x1xf32>
    %342 = arith.mulf %340, %341 : vector<64x1xf32>
    %343 = arith.addf %339, %342 : vector<64x1xf32>
    %344 = vector.extract_strided_slice %173 {offsets = [0, 7], sizes = [64, 1], strides = [1, 1]} : vector<64x9xf32> to vector<64x1xf32>
    %345 = vector.broadcast %304 : vector<1x1xf32> to vector<64x1xf32>
    %346 = arith.mulf %344, %345 : vector<64x1xf32>
    %347 = arith.addf %343, %346 : vector<64x1xf32>
    %348 = vector.extract_strided_slice %173 {offsets = [0, 8], sizes = [64, 1], strides = [1, 1]} : vector<64x9xf32> to vector<64x1xf32>
    %349 = vector.broadcast %302 : vector<1x1xf32> to vector<64x1xf32>
    %350 = arith.mulf %348, %349 : vector<64x1xf32>
    %351 = arith.addf %347, %350 : vector<64x1xf32>
    %cst_122 = arith.constant 0.000000e+00 : f32
    %352 = vector.broadcast %cst_122 : f32 to vector<64x1xf32>
    %353 = arith.maximumf %351, %352 : vector<64x1xf32>
    %354 = tpu.concatenate %263, %353 in 1 : vector<64x1xf32>, vector<64x1xf32> -> vector<64x2xf32>
    %355 = arith.truncf %354 : vector<64x2xf32> to vector<64x2xbf16>
    %c0_123 = arith.constant 0 : index
    %c0_124 = arith.constant 0 : index
    %356 = vector.load %arg20[%c0_123, %c0_124] : memref<2x64xbf16, #tpu.memory_space<vmem>>, vector<2x64xbf16>
    %cst_125 = arith.constant dense<0.000000e+00> : vector<2x2xf32>
    %357 = tpu.matmul %356, %355, %cst_125 {dimension_numbers = #tpu.dot_dimension_numbers<[1], [0], [0], [1], [0, 0, 1, 1], [], []>} : vector<2x64xbf16>, vector<64x2xbf16>, vector<2x2xf32> -> vector<2x2xf32>
    %c0_126 = arith.constant 0 : index
    %c0_127 = arith.constant 0 : index
    %358 = vector.load %arg21[%c0_126, %c0_127] : memref<2x1xf32, #tpu.memory_space<vmem>>, vector<2x1xf32>
    %359 = vector.broadcast %358 : vector<2x1xf32> to vector<2x2xf32>
    %360 = arith.addf %357, %359 : vector<2x2xf32>
    %cst_128 = arith.constant 0.000000e+00 : f32
    %361 = vector.broadcast %cst_128 : f32 to vector<1x85xf32>
    %362 = vector.extract_strided_slice %360 {offsets = [0, 0], sizes = [1, 1], strides = [1, 1]} : vector<2x2xf32> to vector<1x1xf32>
    %363 = vector.extract_strided_slice %360 {offsets = [1, 0], sizes = [1, 1], strides = [1, 1]} : vector<2x2xf32> to vector<1x1xf32>
    %364 = arith.mulf %362, %362 : vector<1x1xf32>
    %365 = arith.mulf %363, %363 : vector<1x1xf32>
    %366 = arith.addf %364, %365 : vector<1x1xf32>
    %cst_129 = arith.constant 9.99999993E-9 : f32
    %367 = vector.broadcast %cst_129 : f32 to vector<1x1xf32>
    %368 = arith.addf %366, %367 : vector<1x1xf32>
    %369 = math.rsqrt %368 : vector<1x1xf32>
    %370 = arith.mulf %362, %369 : vector<1x1xf32>
    %371 = arith.mulf %363, %369 : vector<1x1xf32>
    %cst_130 = arith.constant 0.000000e+00 : f32
    %372 = vector.broadcast %cst_130 : f32 to vector<1x1xf32>
    %cst_131 = arith.constant 1.000000e+00 : f32
    %373 = vector.broadcast %cst_131 : f32 to vector<1x1xf32>
    %cst_132 = arith.constant 0.000000e+00 : f32
    %374 = vector.broadcast %cst_132 : f32 to vector<1x1xf32>
    %375 = arith.subf %374, %371 : vector<1x1xf32>
    %376 = arith.mulf %215, %370 : vector<1x1xf32>
    %377 = arith.mulf %217, %371 : vector<1x1xf32>
    %378 = arith.addf %376, %377 : vector<1x1xf32>
    %cst_133 = arith.constant 0.000000e+00 : f32
    %379 = vector.broadcast %cst_133 : f32 to vector<1x1xf32>
    %380 = arith.subf %379, %215 : vector<1x1xf32>
    %381 = arith.mulf %380, %371 : vector<1x1xf32>
    %382 = arith.mulf %217, %370 : vector<1x1xf32>
    %383 = arith.addf %381, %382 : vector<1x1xf32>
    %384 = arith.mulf %219, %370 : vector<1x1xf32>
    %385 = arith.mulf %193, %371 : vector<1x1xf32>
    %386 = arith.addf %384, %385 : vector<1x1xf32>
    %cst_134 = arith.constant 0.000000e+00 : f32
    %387 = vector.broadcast %cst_134 : f32 to vector<1x1xf32>
    %388 = arith.subf %387, %219 : vector<1x1xf32>
    %389 = arith.mulf %388, %371 : vector<1x1xf32>
    %390 = arith.mulf %193, %370 : vector<1x1xf32>
    %391 = arith.addf %389, %390 : vector<1x1xf32>
    %392 = arith.mulf %222, %370 : vector<1x1xf32>
    %393 = arith.mulf %214, %371 : vector<1x1xf32>
    %394 = arith.addf %392, %393 : vector<1x1xf32>
    %cst_135 = arith.constant 0.000000e+00 : f32
    %395 = vector.broadcast %cst_135 : f32 to vector<1x1xf32>
    %396 = arith.subf %395, %222 : vector<1x1xf32>
    %397 = arith.mulf %396, %371 : vector<1x1xf32>
    %398 = arith.mulf %214, %370 : vector<1x1xf32>
    %399 = arith.addf %397, %398 : vector<1x1xf32>
    %400 = tpu.concatenate %215, %217, %218, %219, %193, %220, %222, %214, %212, %370, %375, %372, %371, %370, %372, %372 in 1 : vector<1x1xf32>, vector<1x1xf32>, vector<1x1xf32>, vector<1x1xf32>, vector<1x1xf32>, vector<1x1xf32>, vector<1x1xf32>, vector<1x1xf32>, vector<1x1xf32>, vector<1x1xf32>, vector<1x1xf32>, vector<1x1xf32>, vector<1x1xf32>, vector<1x1xf32>, vector<1x1xf32>, vector<1x1xf32> -> vector<1x16xf32>
    %401 = tpu.concatenate %372, %373, %378, %383, %218, %386, %391, %220, %394, %399, %212, %174, %175, %361 in 1 : vector<1x1xf32>, vector<1x1xf32>, vector<1x1xf32>, vector<1x1xf32>, vector<1x1xf32>, vector<1x1xf32>, vector<1x1xf32>, vector<1x1xf32>, vector<1x1xf32>, vector<1x1xf32>, vector<1x1xf32>, vector<1x8xf32>, vector<1x8xf32>, vector<1x85xf32> -> vector<1x112xf32>
    %402 = tpu.concatenate %400, %401 in 1 : vector<1x16xf32>, vector<1x112xf32> -> vector<1x128xf32>
    %c0_136 = arith.constant 0 : index
    %c0_137 = arith.constant 0 : index
    %403 = vector.load %arg23[%c0_136, %c0_137] : memref<2x128xf32, #tpu.memory_space<vmem>>, vector<1x128xf32>
    tpu.vector_store %arg23[%c0_136, %c0_137], %402 {strides = array<i32>} : memref<2x128xf32, #tpu.memory_space<vmem>>, vector<1x128xf32>,
    %404 = vector.extract_strided_slice %360 {offsets = [0, 1], sizes = [1, 1], strides = [1, 1]} : vector<2x2xf32> to vector<1x1xf32>
    %405 = vector.extract_strided_slice %360 {offsets = [1, 1], sizes = [1, 1], strides = [1, 1]} : vector<2x2xf32> to vector<1x1xf32>
    %406 = arith.mulf %404, %404 : vector<1x1xf32>
    %407 = arith.mulf %405, %405 : vector<1x1xf32>
    %408 = arith.addf %406, %407 : vector<1x1xf32>
    %cst_138 = arith.constant 9.99999993E-9 : f32
    %409 = vector.broadcast %cst_138 : f32 to vector<1x1xf32>
    %410 = arith.addf %408, %409 : vector<1x1xf32>
    %411 = math.rsqrt %410 : vector<1x1xf32>
    %412 = arith.mulf %404, %411 : vector<1x1xf32>
    %413 = arith.mulf %405, %411 : vector<1x1xf32>
    %cst_139 = arith.constant 0.000000e+00 : f32
    %414 = vector.broadcast %cst_139 : f32 to vector<1x1xf32>
    %cst_140 = arith.constant 1.000000e+00 : f32
    %415 = vector.broadcast %cst_140 : f32 to vector<1x1xf32>
    %cst_141 = arith.constant 0.000000e+00 : f32
    %416 = vector.broadcast %cst_141 : f32 to vector<1x1xf32>
    %417 = arith.subf %416, %413 : vector<1x1xf32>
    %418 = arith.mulf %305, %412 : vector<1x1xf32>
    %419 = arith.mulf %307, %413 : vector<1x1xf32>
    %420 = arith.addf %418, %419 : vector<1x1xf32>
    %cst_142 = arith.constant 0.000000e+00 : f32
    %421 = vector.broadcast %cst_142 : f32 to vector<1x1xf32>
    %422 = arith.subf %421, %305 : vector<1x1xf32>
    %423 = arith.mulf %422, %413 : vector<1x1xf32>
    %424 = arith.mulf %307, %412 : vector<1x1xf32>
    %425 = arith.addf %423, %424 : vector<1x1xf32>
    %426 = arith.mulf %309, %412 : vector<1x1xf32>
    %427 = arith.mulf %283, %413 : vector<1x1xf32>
    %428 = arith.addf %426, %427 : vector<1x1xf32>
    %cst_143 = arith.constant 0.000000e+00 : f32
    %429 = vector.broadcast %cst_143 : f32 to vector<1x1xf32>
    %430 = arith.subf %429, %309 : vector<1x1xf32>
    %431 = arith.mulf %430, %413 : vector<1x1xf32>
    %432 = arith.mulf %283, %412 : vector<1x1xf32>
    %433 = arith.addf %431, %432 : vector<1x1xf32>
    %434 = arith.mulf %312, %412 : vector<1x1xf32>
    %435 = arith.mulf %304, %413 : vector<1x1xf32>
    %436 = arith.addf %434, %435 : vector<1x1xf32>
    %cst_144 = arith.constant 0.000000e+00 : f32
    %437 = vector.broadcast %cst_144 : f32 to vector<1x1xf32>
    %438 = arith.subf %437, %312 : vector<1x1xf32>
    %439 = arith.mulf %438, %413 : vector<1x1xf32>
    %440 = arith.mulf %304, %412 : vector<1x1xf32>
    %441 = arith.addf %439, %440 : vector<1x1xf32>
    %442 = tpu.concatenate %305, %307, %308, %309, %283, %310, %312, %304, %302, %412, %417, %414, %413, %412, %414, %414 in 1 : vector<1x1xf32>, vector<1x1xf32>, vector<1x1xf32>, vector<1x1xf32>, vector<1x1xf32>, vector<1x1xf32>, vector<1x1xf32>, vector<1x1xf32>, vector<1x1xf32>, vector<1x1xf32>, vector<1x1xf32>, vector<1x1xf32>, vector<1x1xf32>, vector<1x1xf32>, vector<1x1xf32>, vector<1x1xf32> -> vector<1x16xf32>
    %443 = tpu.concatenate %414, %415, %420, %425, %308, %428, %433, %310, %436, %441, %302, %264, %265, %361 in 1 : vector<1x1xf32>, vector<1x1xf32>, vector<1x1xf32>, vector<1x1xf32>, vector<1x1xf32>, vector<1x1xf32>, vector<1x1xf32>, vector<1x1xf32>, vector<1x1xf32>, vector<1x1xf32>, vector<1x1xf32>, vector<1x8xf32>, vector<1x8xf32>, vector<1x85xf32> -> vector<1x112xf32>
    %444 = tpu.concatenate %442, %443 in 1 : vector<1x16xf32>, vector<1x112xf32> -> vector<1x128xf32>
    %c1_145 = arith.constant 1 : index
    %c0_146 = arith.constant 0 : index
    %445 = vector.load %arg23[%c1_145, %c0_146] : memref<2x128xf32, #tpu.memory_space<vmem>>, vector<1x128xf32>
    tpu.vector_store %arg23[%c1_145, %c0_146], %444 {strides = array<i32>} : memref<2x128xf32, #tpu.memory_space<vmem>>, vector<1x128xf32>,
    return
  }
}

</mosaic_0001>

<bundles_post_ra>
// kernel: net_forward.1
= control target key start
LH: loop header
LB: loop body
LE: loop exit
PB: predicated region body
PF: predicated region fallthrough
CT: control target
= control target key end

     0   :  { %v5721_v0 = vmov 0   ;;  %s5725_s30 = smov 16   ;;  %s5726_s25 = smov 113   ;;  %s8313_s0 = inlined_call_operand.vmem [shape: s32[512,1], index: 0, kind: input, shape index: {}]   ;;  %s8314_s1 = inlined_call_operand.vmem [shape: bf16[9,512], index: 1, kind: input, shape index: {}]   ;;  %s8315_s4 = inlined_call_operand.vmem [shape: bf16[32,72], index: 4, kind: input, shape index: {}]   ;;  %s8316_s5 = inlined_call_operand.vmem [shape: f32[32,1], index: 5, kind: input, shape index: {}]   ;;  %s8317_s6 = inlined_call_operand.vmem [shape: bf16[512,128], index: 6, kind: input, shape index: {}]   ;;  %s8318_s2 = inlined_call_operand.vmem [shape: f32[9,512], index: 2, kind: input, shape index: {}]   ;;  %s8319_s3 = inlined_call_operand.vmem [shape: f32[9,128], index: 3, kind: input, shape index: {}]   ;;  %s8320_s7 = inlined_call_operand.vmem [shape: bf16[64,288], index: 7, kind: input, shape index: {}]   ;;  %s8321_s8 = inlined_call_operand.vmem [shape: f32[64,1], index: 8, kind: input, shape index: {}]   ;;  %s8322_s10 = inlined_call_operand.vmem [shape: f32[64,1], index: 10, kind: input, shape index: {}]   ;;  %s8323_s12 = inlined_call_operand.vmem [shape: f32[64,1], index: 12, kind: input, shape index: {}]   ;;  %s8324_s15 = inlined_call_operand.vmem [shape: f32[2,1], index: 15, kind: input, shape index: {}]   ;;  %s8325_s9 = inlined_call_operand.vmem [shape: bf16[64,64], index: 9, kind: input, shape index: {}]   ;;  %s8326_s11 = inlined_call_operand.vmem [shape: bf16[64,64], index: 11, kind: input, shape index: {}]   ;;  %s8327_s13 = inlined_call_operand.vmem [shape: bf16[128,32], index: 13, kind: input, shape index: {}]   ;;  %s8328_s16 = inlined_call_operand.vmem [shape: bf16[128,2], index: 16, kind: input, shape index: {}]   ;;  %s8329_s17 = inlined_call_operand.vmem [shape: bf16[64,64], index: 17, kind: input, shape index: {}]   ;;  %s8330_s19 = inlined_call_operand.vmem [shape: f32[64,1], index: 19, kind: input, shape index: {}]   ;;  %s8331_s18 = inlined_call_operand.vmem [shape: f32[64,9], index: 18, kind: input, shape index: {}]   ;;  %s8332_s14 = inlined_call_operand.vmem [shape: bf16[2,64], index: 14, kind: input, shape index: {}]   ;;  %s8333_s22 = inlined_call_operand.vmem [shape: f32[4,8], index: 22, kind: input, shape index: {}]   ;;  %s8334_s21 = inlined_call_operand.vmem [shape: f32[2,1], index: 21, kind: input, shape index: {}]   ;;  %s8335_s20 = inlined_call_operand.vmem [shape: bf16[2,64], index: 20, kind: input, shape index: {}]   ;;  %s8336_s23 = inlined_call_operand.vmem [shape: f32[2,128], index: 23, kind: output, shape index: {}]  }
   0x1   :  { %8393 = sst [smem:[#allocation75_spill]] %s8313_s0  ;;  %5610 = vset.pattern.permute.xlu1 %v5721_v0  ;;  %5609 = vset.pattern.permute.xlu0 %v5721_v0  ;;  %s5730_s26 = smov 111  }
   0x2   :  { %8394 = sst [smem:[#allocation76_spill]] %s8314_s1  ;;  %s8401_s24 = sld [smem:[#allocation75_spill]] }
   0x3   :  { %8395 = sst [smem:[#allocation77_spill]] %s8315_s4  ;;  %s5728_s1 = smov 15  }
   0x4   :  { %8396 = sst [smem:[#allocation78_spill]] %s8316_s5  ;;  %s8402_s5 = sld [smem:[#allocation76_spill]] }
   0x5   :  { %8397 = sst [smem:[#allocation79_spill]] %s8317_s6  ;;  %s8349_s6 = smov 127  }
   0x6   :  { %8398 = sst [smem:[#allocation80_spill]] %s8318_s2  ;;  %s5727_s2 = smov 112  }
   0x7   :  { %8399 = sst [smem:[#allocation81_spill]] %s8319_s3  ;;  %s8355_s3 = smov 1  }
   0x8   :  { %8400 = sst [smem:[#allocation82_spill]] %s8320_s7  ;;  %v82_v1 = vld [vmem:[%s8401_s24 + $0x10] sm:$0xff]  ;;  %v80_v2 = vld [vmem:[%s8401_s24] sm:$0xff]  ;;  %v83_v3 = vld [vmem:[%s8401_s24 + $0x18] sm:$0xff]  ;;  %s8403_s27 = sld [smem:[#allocation78_spill]] }
   0x9   :  { %151 = vperm.xlu1 %5610, %v82_v1   ;;  %145 = vperm.xlu0 %5609, %v80_v2   ;;  %v81_v4 = vld [vmem:[%s8401_s24 + $0x8] sm:$0xff]  ;;  %v84_v6 = vld [vmem:[%s8401_s24 + $0x20] sm:$0xff]  ;;  %v87_v7 = vld [vmem:[%s8401_s24 + $0x38] sm:$0xff]  ;;  %v75_v1 = vlaneseq  ;;  %s8405_s0 = sld [smem:[#allocation79_spill]]  ;;  %s8406_s4 = sld [smem:[#allocation77_spill]] }
   0xa   :  { %v85_v5 = vld [vmem:[%s8401_s24 + $0x28] sm:$0xff]  ;;  %v86_v8 = vld [vmem:[%s8401_s24 + $0x30] sm:$0xff]  ;;  %v88_v10 = vld [vmem:[%s8401_s24 + $0x40] sm:$0xff]  ;;  %s8353_s7 = smov 121   ;;  %s8345_s28 = smov 7  }
   0xb   :  { %v89_v9 = vld [vmem:[%s8401_s24 + $0x48] sm:$0xff]  ;;  %v91_v11 = vld [vmem:[%s8401_s24 + $0x58] sm:$0xff]  ;;  %v90_v12 = vld [vmem:[%s8401_s24 + $0x50] sm:$0xff]  ;;  %s5746_s29 = smov 123  }
   0xc   :  { %v93_v13 = vld [vmem:[%s8401_s24 + $0x68] sm:$0xff]  ;;  %v92_v14 = vld [vmem:[%s8401_s24 + $0x60] sm:$0xff]  ;;  %v95_v15 = vld [vmem:[%s8401_s24 + $0x78] sm:$0xff] }
   0xd   :  { %154 = vperm.xlu1 %5610, %v83_v3   ;;  %148 = vperm.xlu0 %5609, %v81_v4   ;;  %v94_v16 = vld [vmem:[%s8401_s24 + $0x70] sm:$0xff]  ;;  %v97_v17 = vld [vmem:[%s8401_s24 + $0x88] sm:$0xff]  ;;  %v96_v18 = vld [vmem:[%s8401_s24 + $0x80] sm:$0xff]  ;;  %v6073_v4 = vand.u32 127, %v75_v1 }
   0xe   :  { %v99_v19 = vld [vmem:[%s8401_s24 + $0x98] sm:$0xff]  ;;  %v98_v20 = vld [vmem:[%s8401_s24 + $0x90] sm:$0xff]  ;;  %v101_v21 = vld [vmem:[%s8401_s24 + $0xa8] sm:$0xff] }
   0xf   :  { %v100_v22 = vld [vmem:[%s8401_s24 + $0xa0] sm:$0xff]  ;;  %v103_v23 = vld [vmem:[%s8401_s24 + $0xb8] sm:$0xff]  ;;  %v102_v24 = vld [vmem:[%s8401_s24 + $0xb0] sm:$0xff] }
  0x10   :  { %v105_v25 = vld [vmem:[%s8401_s24 + $0xc8] sm:$0xff]  ;;  %v104_v26 = vld [vmem:[%s8401_s24 + $0xc0] sm:$0xff]  ;;  %v107_v27 = vld [vmem:[%s8401_s24 + $0xd8] sm:$0xff] }
  0x11   :  { %160 = vperm.xlu1 %5610, %v85_v5   ;;  %157 = vperm.xlu0 %5609, %v84_v6   ;;  %v106_v28 = vld [vmem:[%s8401_s24 + $0xd0] sm:$0xff]  ;;  %v109_v29 = vld [vmem:[%s8401_s24 + $0xe8] sm:$0xff]  ;;  %v108_v30 = vld [vmem:[%s8401_s24 + $0xe0] sm:$0xff] }
  0x12   :  { %v111_v31 = vld [vmem:[%s8401_s24 + $0xf8] sm:$0xff]  ;;  %v110_v32 = vld [vmem:[%s8401_s24 + $0xf0] sm:$0xff]  ;;  %v113_v33 = vld [vmem:[%s8401_s24 + $0x108] sm:$0xff] }
  0x13   :  { %v112_v34 = vld [vmem:[%s8401_s24 + $0x100] sm:$0xff]  ;;  %v115_v35 = vld [vmem:[%s8401_s24 + $0x118] sm:$0xff]  ;;  %v114_v36 = vld [vmem:[%s8401_s24 + $0x110] sm:$0xff] }
  0x14   :  { %v117_v37 = vld [vmem:[%s8401_s24 + $0x128] sm:$0xff]  ;;  %v116_v38 = vld [vmem:[%s8401_s24 + $0x120] sm:$0xff]  ;;  %v119_v39 = vld [vmem:[%s8401_s24 + $0x138] sm:$0xff] }
  0x15   :  { %166 = vperm.xlu1 %5610, %v87_v7   ;;  %163 = vperm.xlu0 %5609, %v86_v8   ;;  %v118_v40 = vld [vmem:[%s8401_s24 + $0x130] sm:$0xff]  ;;  %v121_v42 = vld [vmem:[%s8401_s24 + $0x148] sm:$0xff]  ;;  %v120_v43 = vld [vmem:[%s8401_s24 + $0x140] sm:$0xff]  ;;  %v6076_v7 = vadd.s32 128, %v6073_v4  ;;  %v6079_v8 = vadd.s32 384, %v6073_v4 }
  0x16   :  { %v5613_v41 = vld [vmem:[%s8402_s5 + $0x4] ss:$16 sps:$4 sm:$0x1f]   ;;  %v123_v44 = vld [vmem:[%s8401_s24 + $0x158] sm:$0xff]  ;;  %v125_v46 = vld [vmem:[%s8401_s24 + $0x168] sm:$0xff] }
  0x17   :  { %1032 = vmatprep.mubr.bf16.mxu0 %v5613_v41  ;;  %1118 = vmatprep.mubr.bf16.mxu1 %v5613_v41  ;;  %v122_v45 = vld [vmem:[%s8401_s24 + $0x150] sm:$0xff]  ;;  %v124_v47 = vld [vmem:[%s8401_s24 + $0x160] sm:$0xff]  ;;  %v127_v48 = vld [vmem:[%s8401_s24 + $0x178] sm:$0xff] }
  0x18   :  { %v126_v49 = vld [vmem:[%s8401_s24 + $0x170] sm:$0xff]  ;;  %v129_v50 = vld [vmem:[%s8401_s24 + $0x188] sm:$0xff]  ;;  %v128_v51 = vld [vmem:[%s8401_s24 + $0x180] sm:$0xff] }
  0x19   :  { %172 = vperm.xlu1 %5610, %v89_v9   ;;  %169 = vperm.xlu0 %5609, %v88_v10   ;;  %v131_v52 = vld [vmem:[%s8401_s24 + $0x198] sm:$0xff]  ;;  %v130_v53 = vld [vmem:[%s8401_s24 + $0x190] sm:$0xff]  ;;  %v133_v54 = vld [vmem:[%s8401_s24 + $0x1a8] sm:$0xff] }
  0x1a   :  { %v132_v55 = vld [vmem:[%s8401_s24 + $0x1a0] sm:$0xff]  ;;  %v135_v56 = vld [vmem:[%s8401_s24 + $0x1b8] sm:$0xff]  ;;  %v134_v57 = vld [vmem:[%s8401_s24 + $0x1b0] sm:$0xff] }
  0x1b   :  { %v137_v58 = vld [vmem:[%s8401_s24 + $0x1c8] sm:$0xff]  ;;  %v136_v59 = vld [vmem:[%s8401_s24 + $0x1c0] sm:$0xff]  ;;  %v139_v60 = vld [vmem:[%s8401_s24 + $0x1d8] sm:$0xff] }
  0x1c   :  { %v138_v61 = vld [vmem:[%s8401_s24 + $0x1d0] sm:$0xff]  ;;  %v141_v62 = vld [vmem:[%s8401_s24 + $0x1e8] sm:$0xff]  ;;  %v140_v63 = vld [vmem:[%s8401_s24 + $0x1e0] sm:$0xff] }
  0x1d   :  { %178 = vperm.xlu1 %5610, %v91_v11   ;;  %175 = vperm.xlu0 %5609, %v90_v12   ;;  %v143_v2 = vld [vmem:[%s8401_s24 + $0x1f8] sm:$0xff]  ;;  %v142_v3 = vld [vmem:[%s8401_s24 + $0x1f0] sm:$0xff]  ;;  %v6082_v11 = vadd.s32 256, %v6073_v4  ;;  %v5722_v12 = vmov 1.0|1.0   ;;  %s8347_s24 = smov 9  }
  0x21   :  { %184 = vperm.xlu1 %5610, %v93_v13   ;;  %181 = vperm.xlu0 %5609, %v92_v14  }
  0x25   :  { %190 = vperm.xlu1 %5610, %v95_v15   ;;  %187 = vperm.xlu0 %5609, %v94_v16  }
  0x29   :  { %196 = vperm.xlu1 %5610, %v97_v17   ;;  %193 = vperm.xlu0 %5609, %v96_v18  }
  0x2d   :  { %202 = vperm.xlu1 %5610, %v99_v19   ;;  %199 = vperm.xlu0 %5609, %v98_v20  }
  0x31   :  { %208 = vperm.xlu1 %5610, %v101_v21   ;;  %205 = vperm.xlu0 %5609, %v100_v22  }
  0x35   :  { %214 = vperm.xlu1 %5610, %v103_v23   ;;  %211 = vperm.xlu0 %5609, %v102_v24  }
  0x39   :  { %220 = vperm.xlu1 %5610, %v105_v25   ;;  %217 = vperm.xlu0 %5609, %v104_v26  }
  0x3d   :  { %226 = vperm.xlu1 %5610, %v107_v27   ;;  %223 = vperm.xlu0 %5609, %v106_v28  }
  0x41   :  { %232 = vperm.xlu1 %5610, %v109_v29   ;;  %229 = vperm.xlu0 %5609, %v108_v30  }
  0x45   :  { %238 = vperm.xlu1 %5610, %v111_v31   ;;  %235 = vperm.xlu0 %5609, %v110_v32  }
  0x49   :  { %244 = vperm.xlu1 %5610, %v113_v33   ;;  %241 = vperm.xlu0 %5609, %v112_v34  }
  0x4d   :  { %250 = vperm.xlu1 %5610, %v115_v35   ;;  %247 = vperm.xlu0 %5609, %v114_v36  }
  0x51   :  { %256 = vperm.xlu1 %5610, %v117_v37   ;;  %253 = vperm.xlu0 %5609, %v116_v38  }
  0x55   :  { %262 = vperm.xlu1 %5610, %v119_v39   ;;  %259 = vperm.xlu0 %5609, %v118_v40  }
  0x59   :  { %268 = vperm.xlu1 %5610, %v121_v42   ;;  %265 = vperm.xlu0 %5609, %v120_v43  }
  0x5d   :  { %274 = vperm.xlu1 %5610, %v123_v44   ;;  %271 = vperm.xlu0 %5609, %v122_v45   ;;  %v5611_v45 = vld [vmem:[%s8402_s5] ss:$16 sps:$4 sm:$0x1f]  }
  0x61   :  { %280 = vperm.xlu1 %5610, %v125_v46   ;;  %277 = vperm.xlu0 %5609, %v124_v47   ;;  %v5616_v46 = vld [vmem:[%s8402_s5 + $0xc] ss:$16 sps:$4 sm:$0x1f]  }
  0x65   :  { %286 = vperm.xlu1 %5610, %v127_v48   ;;  %283 = vperm.xlu0 %5609, %v126_v49  }
  0x69   :  { %292 = vperm.xlu1 %5610, %v129_v50   ;;  %289 = vperm.xlu0 %5609, %v128_v51  }
  0x6d   :  { %298 = vperm.xlu1 %5610, %v131_v52   ;;  %295 = vperm.xlu0 %5609, %v130_v53  }
  0x71   :  { %304 = vperm.xlu1 %5610, %v133_v54   ;;  %301 = vperm.xlu0 %5609, %v132_v55  }
  0x75   :  { %310 = vperm.xlu1 %5610, %v135_v56   ;;  %307 = vperm.xlu0 %5609, %v134_v57  }
  0x79   :  { %316 = vperm.xlu1 %5610, %v137_v58   ;;  %313 = vperm.xlu0 %5609, %v136_v59  }
  0x7d   :  { %322 = vperm.xlu1 %5610, %v139_v60   ;;  %319 = vperm.xlu0 %5609, %v138_v61  }
  0x81   :  { %328 = vperm.xlu1 %5610, %v141_v62   ;;  %325 = vperm.xlu0 %5609, %v140_v63  }
  0x85   :  { %334 = vperm.xlu1 %5610, %v143_v2   ;;  %331 = vperm.xlu0 %5609, %v142_v3  }
  0x88   :  { %v152_v5 = vpop.permute.xlu1 %151  ;;  %v146_v6 = vpop.permute.xlu0 %145 }
  0x89   :  { %vm337_vm0 = vcmp.eq.s32.totalorder %v146_v6, %v6076_v7  ;;  %vm339_vm5 = vcmp.eq.s32.totalorder %v146_v6, %v6079_v8  ;;  %vm336_vm8 = vcmp.eq.s32.totalorder %v146_v6, %v6073_v4  ;;  %vm345_vm9 = vcmp.eq.s32.totalorder %v152_v5, %v6076_v7 }
  0x8a   :  { %vm338_vm12 = vcmp.eq.s32.totalorder %v146_v6, %v6082_v11  ;;  %vm347_vm13 = vcmp.eq.s32.totalorder %v152_v5, %v6079_v8 }
  0x8c   :  { %v155_v9 = vpop.permute.xlu1 %154  ;;  %v149_v10 = vpop.permute.xlu0 %148 }
  0x8d   :  { %vm341_vm1 = vcmp.eq.s32.totalorder %v149_v10, %v6076_v7  ;;  %vm343_vm2 = vcmp.eq.s32.totalorder %v149_v10, %v6079_v8  ;;  %vm340_vm3 = vcmp.eq.s32.totalorder %v149_v10, %v6073_v4  ;;  %vm342_vm6 = vcmp.eq.s32.totalorder %v149_v10, %v6082_v11 }
  0x8e   :  { %vm4900_vm4 = vmpackc.low %vm341_vm1, %vm337_vm0  ;;  %vm349_vm10 = vcmp.eq.s32.totalorder %v155_v9, %v6076_v7  ;;  %vm351_vm14 = vcmp.eq.s32.totalorder %v155_v9, %v6079_v8  ;;  %vm344_vm0 = vcmp.eq.s32.totalorder %v152_v5, %v6073_v4  ;;  %vm348_vm1 = vcmp.eq.s32.totalorder %v155_v9, %v6073_v4 }
  0x8f   :  { %4901 = vmatprep.subr.msk.bf16.mxu0 %vm4900_vm4, %v5722_v12  ;;  %vm5028_vm7 = vmpackc.low %vm343_vm2, %vm339_vm5  ;;  %vm350_vm4 = vcmp.eq.s32.totalorder %v155_v9, %v6082_v11 }
  0x90   :  { %5029 = vmatprep.subr.msk.bf16.mxu1 %vm5028_vm7, %v5722_v12  ;;  %v161_v13 = vpop.permute.xlu1 %160  ;;  %vm4902_vm11 = vmpackc.low %vm340_vm3, %vm336_vm8  ;;  %v158_v14 = vpop.permute.xlu0 %157  ;;  %vm346_vm3 = vcmp.eq.s32.totalorder %v152_v5, %v6082_v11 }
  0x91   :  { %4903 = vmatpush1.bf16.msk.msra.mxu0 %vm4902_vm11, %v5722_v12  ;;  %vm5030_vm15 = vmpackc.low %vm342_vm6, %vm338_vm12  ;;  %vm353_vm7 = vcmp.eq.s32.totalorder %v158_v14, %v6076_v7  ;;  %vm357_vm8 = vcmp.eq.s32.totalorder %v161_v13, %v6076_v7  ;;  %vm355_vm11 = vcmp.eq.s32.totalorder %v158_v14, %v6079_v8  ;;  %vm352_vm12 = vcmp.eq.s32.totalorder %v158_v14, %v6073_v4 }
  0x92   :  { %5031 = vmatpush1.bf16.msk.msra.mxu1 %vm5030_vm15, %v5722_v12  ;;  %vm4904_vm2 = vmpackc.low %vm349_vm10, %vm345_vm9  ;;  %vm359_vm9 = vcmp.eq.s32.totalorder %v161_v13, %v6079_v8  ;;  %vm354_vm15 = vcmp.eq.s32.totalorder %v158_v14, %v6082_v11 }
  0x93   :  { %4905 = vmatprep.subr.msk.bf16.mxu0 %vm4904_vm2, %v5722_v12  ;;  %vm5032_vm5 = vmpackc.low %vm351_vm14, %vm347_vm13  ;;  %vm356_vm13 = vcmp.eq.s32.totalorder %v161_v13, %v6073_v4  ;;  %vm358_vm2 = vcmp.eq.s32.totalorder %v161_v13, %v6082_v11 }
  0x94   :  { %5033 = vmatprep.subr.msk.bf16.mxu1 %vm5032_vm5, %v5722_v12  ;;  %v167_v15 = vpop.permute.xlu1 %166  ;;  %vm4906_vm6 = vmpackc.low %vm348_vm1, %vm344_vm0  ;;  %v164_v16 = vpop.permute.xlu0 %163 }
  0x95   :  { %4907 = vmatpush1.bf16.msk.msra.mxu0 %vm4906_vm6, %v5722_v12  ;;  %vm5034_vm10 = vmpackc.low %vm350_vm4, %vm346_vm3  ;;  %vm361_vm1 = vcmp.eq.s32.totalorder %v164_v16, %v6076_v7  ;;  %vm365_vm5 = vcmp.eq.s32.totalorder %v167_v15, %v6076_v7  ;;  %vm363_vm4 = vcmp.eq.s32.totalorder %v164_v16, %v6079_v8  ;;  %vm360_vm6 = vcmp.eq.s32.totalorder %v164_v16, %v6073_v4 }
  0x96   :  { %5035 = vmatpush1.bf16.msk.msra.mxu1 %vm5034_vm10, %v5722_v12  ;;  %vm4908_vm14 = vmpackc.low %vm357_vm8, %vm353_vm7  ;;  %vm367_vm7 = vcmp.eq.s32.totalorder %v167_v15, %v6079_v8  ;;  %vm362_vm10 = vcmp.eq.s32.totalorder %v164_v16, %v6082_v11 }
  0x97   :  { %4909 = vmatprep.subr.msk.bf16.mxu0 %vm4908_vm14, %v5722_v12  ;;  %vm5036_vm0 = vmpackc.low %vm359_vm9, %vm355_vm11  ;;  %vm364_vm11 = vcmp.eq.s32.totalorder %v167_v15, %v6073_v4  ;;  %vm366_vm14 = vcmp.eq.s32.totalorder %v167_v15, %v6082_v11 }
  0x98   :  { %5037 = vmatprep.subr.msk.bf16.mxu1 %vm5036_vm0, %v5722_v12  ;;  %v173_v17 = vpop.permute.xlu1 %172  ;;  %vm4910_vm3 = vmpackc.low %vm356_vm13, %vm352_vm12  ;;  %v170_v18 = vpop.permute.xlu0 %169 }
  0x99   :  { %4911 = vmatpush1.bf16.msk.msra.mxu0 %vm4910_vm3, %v5722_v12  ;;  %vm5038_vm8 = vmpackc.low %vm358_vm2, %vm354_vm15  ;;  %vm369_vm13 = vcmp.eq.s32.totalorder %v170_v18, %v6076_v7  ;;  %vm373_vm0 = vcmp.eq.s32.totalorder %v173_v17, %v6076_v7  ;;  %vm371_vm2 = vcmp.eq.s32.totalorder %v170_v18, %v6079_v8  ;;  %vm368_vm3 = vcmp.eq.s32.totalorder %v170_v18, %v6073_v4 }
  0x9a   :  { %5039 = vmatpush1.bf16.msk.msra.mxu1 %vm5038_vm8, %v5722_v12  ;;  %vm4912_vm9 = vmpackc.low %vm365_vm5, %vm361_vm1  ;;  %vm375_vm1 = vcmp.eq.s32.totalorder %v173_v17, %v6079_v8  ;;  %vm370_vm8 = vcmp.eq.s32.totalorder %v170_v18, %v6082_v11 }
  0x9b   :  { %4913 = vmatprep.subr.msk.bf16.mxu0 %vm4912_vm9, %v5722_v12  ;;  %vm5040_vm12 = vmpackc.low %vm367_vm7, %vm363_vm4  ;;  %vm372_vm4 = vcmp.eq.s32.totalorder %v173_v17, %v6073_v4  ;;  %vm374_vm9 = vcmp.eq.s32.totalorder %v173_v17, %v6082_v11 }
  0x9c   :  { %5041 = vmatprep.subr.msk.bf16.mxu1 %vm5040_vm12, %v5722_v12  ;;  %v179_v19 = vpop.permute.xlu1 %178  ;;  %vm4914_vm15 = vmpackc.low %vm364_vm11, %vm360_vm6  ;;  %v176_v20 = vpop.permute.xlu0 %175 }
  0x9d   :  { %4915 = vmatpush1.bf16.msk.msra.mxu0 %vm4914_vm15, %v5722_v12  ;;  %vm5042_vm5 = vmpackc.low %vm366_vm14, %vm362_vm10  ;;  %vm377_vm11 = vcmp.eq.s32.totalorder %v176_v20, %v6076_v7  ;;  %vm381_vm12 = vcmp.eq.s32.totalorder %v179_v19, %v6076_v7  ;;  %vm379_vm14 = vcmp.eq.s32.totalorder %v176_v20, %v6079_v8  ;;  %vm376_vm15 = vcmp.eq.s32.totalorder %v176_v20, %v6073_v4 }
  0x9e   :  { %5043 = vmatpush1.bf16.msk.msra.mxu1 %vm5042_vm5, %v5722_v12  ;;  %vm4916_vm7 = vmpackc.low %vm373_vm0, %vm369_vm13  ;;  %vm383_vm13 = vcmp.eq.s32.totalorder %v179_v19, %v6079_v8  ;;  %vm378_vm5 = vcmp.eq.s32.totalorder %v176_v20, %v6082_v11 }
  0x9f   :  { %4917 = vmatprep.subr.msk.bf16.mxu0 %vm4916_vm7, %v5722_v12  ;;  %vm5044_vm6 = vmpackc.low %vm375_vm1, %vm371_vm2  ;;  %vm380_vm2 = vcmp.eq.s32.totalorder %v179_v19, %v6073_v4  ;;  %vm382_vm7 = vcmp.eq.s32.totalorder %v179_v19, %v6082_v11 }
  0xa0   :  { %5045 = vmatprep.subr.msk.bf16.mxu1 %vm5044_vm6, %v5722_v12  ;;  %v185_v21 = vpop.permute.xlu1 %184  ;;  %vm4918_vm10 = vmpackc.low %vm372_vm4, %vm368_vm3  ;;  %v182_v22 = vpop.permute.xlu0 %181 }
  0xa1   :  { %4919 = vmatpush1.bf16.msk.msra.mxu0 %vm4918_vm10, %v5722_v12  ;;  %vm5046_vm0 = vmpackc.low %vm374_vm9, %vm370_vm8  ;;  %vm385_vm4 = vcmp.eq.s32.totalorder %v182_v22, %v6076_v7  ;;  %vm389_vm6 = vcmp.eq.s32.totalorder %v185_v21, %v6076_v7  ;;  %vm387_vm9 = vcmp.eq.s32.totalorder %v182_v22, %v6079_v8  ;;  %vm384_vm10 = vcmp.eq.s32.totalorder %v182_v22, %v6073_v4 }
  0xa2   :  { %5047 = vmatpush1.bf16.msk.msra.mxu1 %vm5046_vm0, %v5722_v12  ;;  %vm4920_vm1 = vmpackc.low %vm381_vm12, %vm377_vm11  ;;  %vm391_vm11 = vcmp.eq.s32.totalorder %v185_v21, %v6079_v8  ;;  %vm386_vm0 = vcmp.eq.s32.totalorder %v182_v22, %v6082_v11 }
  0xa3   :  { %4921 = vmatprep.subr.msk.bf16.mxu0 %vm4920_vm1, %v5722_v12  ;;  %vm5048_vm3 = vmpackc.low %vm383_vm13, %vm379_vm14  ;;  %vm388_vm14 = vcmp.eq.s32.totalorder %v185_v21, %v6073_v4  ;;  %vm390_vm1 = vcmp.eq.s32.totalorder %v185_v21, %v6082_v11 }
  0xa4   :  { %5049 = vmatprep.subr.msk.bf16.mxu1 %vm5048_vm3, %v5722_v12  ;;  %v191_v23 = vpop.permute.xlu1 %190  ;;  %vm4922_vm8 = vmpackc.low %vm380_vm2, %vm376_vm15  ;;  %v188_v24 = vpop.permute.xlu0 %187 }
  0xa5   :  { %4923 = vmatpush1.bf16.msk.msra.mxu0 %vm4922_vm8, %v5722_v12  ;;  %vm5050_vm12 = vmpackc.low %vm382_vm7, %vm378_vm5  ;;  %vm393_vm2 = vcmp.eq.s32.totalorder %v188_v24, %v6076_v7  ;;  %vm397_vm3 = vcmp.eq.s32.totalorder %v191_v23, %v6076_v7  ;;  %vm395_vm7 = vcmp.eq.s32.totalorder %v188_v24, %v6079_v8  ;;  %vm392_vm8 = vcmp.eq.s32.totalorder %v188_v24, %v6073_v4 }
  0xa6   :  { %5051 = vmatpush1.bf16.msk.msra.mxu1 %vm5050_vm12, %v5722_v12  ;;  %vm4924_vm13 = vmpackc.low %vm389_vm6, %vm385_vm4  ;;  %vm399_vm4 = vcmp.eq.s32.totalorder %v191_v23, %v6079_v8  ;;  %vm394_vm12 = vcmp.eq.s32.totalorder %v188_v24, %v6082_v11 }
  0xa7   :  { %4925 = vmatprep.subr.msk.bf16.mxu0 %vm4924_vm13, %v5722_v12  ;;  %vm5052_vm15 = vmpackc.low %vm391_vm11, %vm387_vm9  ;;  %vm396_vm9 = vcmp.eq.s32.totalorder %v191_v23, %v6073_v4  ;;  %vm398_vm13 = vcmp.eq.s32.totalorder %v191_v23, %v6082_v11 }
  0xa8   :  { %5053 = vmatprep.subr.msk.bf16.mxu1 %vm5052_vm15, %v5722_v12  ;;  %v197_v25 = vpop.permute.xlu1 %196  ;;  %vm4926_vm5 = vmpackc.low %vm388_vm14, %vm384_vm10  ;;  %v194_v26 = vpop.permute.xlu0 %193 }
  0xa9   :  { %4927 = vmatpush1.bf16.msk.msra.mxu0 %vm4926_vm5, %v5722_v12  ;;  %vm5054_vm6 = vmpackc.low %vm390_vm1, %vm386_vm0  ;;  %vm401_vm14 = vcmp.eq.s32.totalorder %v194_v26, %v6076_v7  ;;  %vm405_vm15 = vcmp.eq.s32.totalorder %v197_v25, %v6076_v7  ;;  %vm403_vm1 = vcmp.eq.s32.totalorder %v194_v26, %v6079_v8  ;;  %vm400_vm5 = vcmp.eq.s32.totalorder %v194_v26, %v6073_v4 }
  0xaa   :  { %5055 = vmatpush1.bf16.msk.msra.mxu1 %vm5054_vm6, %v5722_v12  ;;  %vm4928_vm11 = vmpackc.low %vm397_vm3, %vm393_vm2  ;;  %vm407_vm2 = vcmp.eq.s32.totalorder %v197_v25, %v6079_v8  ;;  %vm402_vm6 = vcmp.eq.s32.totalorder %v194_v26, %v6082_v11 }
  0xab   :  { %4929 = vmatprep.subr.msk.bf16.mxu0 %vm4928_vm11, %v5722_v12  ;;  %vm5056_vm10 = vmpackc.low %vm399_vm4, %vm395_vm7  ;;  %vm404_vm7 = vcmp.eq.s32.totalorder %v197_v25, %v6073_v4  ;;  %vm406_vm11 = vcmp.eq.s32.totalorder %v197_v25, %v6082_v11 }
  0xac   :  { %5057 = vmatprep.subr.msk.bf16.mxu1 %vm5056_vm10, %v5722_v12  ;;  %v203_v27 = vpop.permute.xlu1 %202  ;;  %vm4930_vm0 = vmpackc.low %vm396_vm9, %vm392_vm8  ;;  %v200_v28 = vpop.permute.xlu0 %199 }
  0xad   :  { %4931 = vmatpush1.bf16.msk.msra.mxu0 %vm4930_vm0, %v5722_v12  ;;  %vm5058_vm3 = vmpackc.low %vm398_vm13, %vm394_vm12  ;;  %vm409_vm9 = vcmp.eq.s32.totalorder %v200_v28, %v6076_v7  ;;  %vm413_vm10 = vcmp.eq.s32.totalorder %v203_v27, %v6076_v7  ;;  %vm411_vm13 = vcmp.eq.s32.totalorder %v200_v28, %v6079_v8  ;;  %vm408_vm0 = vcmp.eq.s32.totalorder %v200_v28, %v6073_v4 }
  0xae   :  { %5059 = vmatpush1.bf16.msk.msra.mxu1 %vm5058_vm3, %v5722_v12  ;;  %vm4932_vm4 = vmpackc.low %vm405_vm15, %vm401_vm14  ;;  %vm415_vm14 = vcmp.eq.s32.totalorder %v203_v27, %v6079_v8  ;;  %vm410_vm3 = vcmp.eq.s32.totalorder %v200_v28, %v6082_v11 }
  0xaf   :  { %4933 = vmatprep.subr.msk.bf16.mxu0 %vm4932_vm4, %v5722_v12  ;;  %vm5060_vm8 = vmpackc.low %vm407_vm2, %vm403_vm1  ;;  %vm412_vm1 = vcmp.eq.s32.totalorder %v203_v27, %v6073_v4  ;;  %vm414_vm4 = vcmp.eq.s32.totalorder %v203_v27, %v6082_v11 }
  0xb0   :  { %5061 = vmatprep.subr.msk.bf16.mxu1 %vm5060_vm8, %v5722_v12  ;;  %v209_v29 = vpop.permute.xlu1 %208  ;;  %vm4934_vm12 = vmpackc.low %vm404_vm7, %vm400_vm5  ;;  %v206_v30 = vpop.permute.xlu0 %205 }
  0xb1   :  { %4935 = vmatpush1.bf16.msk.msra.mxu0 %vm4934_vm12, %v5722_v12  ;;  %vm5062_vm15 = vmpackc.low %vm406_vm11, %vm402_vm6  ;;  %vm417_vm7 = vcmp.eq.s32.totalorder %v206_v30, %v6076_v7  ;;  %vm421_vm8 = vcmp.eq.s32.totalorder %v209_v29, %v6076_v7  ;;  %vm419_vm11 = vcmp.eq.s32.totalorder %v206_v30, %v6079_v8  ;;  %vm416_vm12 = vcmp.eq.s32.totalorder %v206_v30, %v6073_v4 }
  0xb2   :  { %5063 = vmatpush1.bf16.msk.msra.mxu1 %vm5062_vm15, %v5722_v12  ;;  %vm4936_vm2 = vmpackc.low %vm413_vm10, %vm409_vm9  ;;  %vm423_vm9 = vcmp.eq.s32.totalorder %v209_v29, %v6079_v8  ;;  %vm418_vm15 = vcmp.eq.s32.totalorder %v206_v30, %v6082_v11 }
  0xb3   :  { %4937 = vmatprep.subr.msk.bf16.mxu0 %vm4936_vm2, %v5722_v12  ;;  %vm5064_vm5 = vmpackc.low %vm415_vm14, %vm411_vm13  ;;  %vm420_vm13 = vcmp.eq.s32.totalorder %v209_v29, %v6073_v4  ;;  %vm422_vm2 = vcmp.eq.s32.totalorder %v209_v29, %v6082_v11 }
  0xb4   :  { %5065 = vmatprep.subr.msk.bf16.mxu1 %vm5064_vm5, %v5722_v12  ;;  %v215_v31 = vpop.permute.xlu1 %214  ;;  %vm4938_vm6 = vmpackc.low %vm412_vm1, %vm408_vm0  ;;  %v212_v32 = vpop.permute.xlu0 %211 }
  0xb5   :  { %4939 = vmatpush1.bf16.msk.msra.mxu0 %vm4938_vm6, %v5722_v12  ;;  %vm5066_vm10 = vmpackc.low %vm414_vm4, %vm410_vm3  ;;  %vm425_vm1 = vcmp.eq.s32.totalorder %v212_v32, %v6076_v7  ;;  %vm429_vm5 = vcmp.eq.s32.totalorder %v215_v31, %v6076_v7  ;;  %vm427_vm4 = vcmp.eq.s32.totalorder %v212_v32, %v6079_v8  ;;  %vm424_vm6 = vcmp.eq.s32.totalorder %v212_v32, %v6073_v4 }
  0xb6   :  { %5067 = vmatpush1.bf16.msk.msra.mxu1 %vm5066_vm10, %v5722_v12  ;;  %vm4940_vm14 = vmpackc.low %vm421_vm8, %vm417_vm7  ;;  %vm431_vm7 = vcmp.eq.s32.totalorder %v215_v31, %v6079_v8  ;;  %vm426_vm10 = vcmp.eq.s32.totalorder %v212_v32, %v6082_v11 }
  0xb7   :  { %4941 = vmatprep.subr.msk.bf16.mxu0 %vm4940_vm14, %v5722_v12  ;;  %vm5068_vm0 = vmpackc.low %vm423_vm9, %vm419_vm11  ;;  %vm428_vm11 = vcmp.eq.s32.totalorder %v215_v31, %v6073_v4  ;;  %vm430_vm14 = vcmp.eq.s32.totalorder %v215_v31, %v6082_v11 }
  0xb8   :  { %5069 = vmatprep.subr.msk.bf16.mxu1 %vm5068_vm0, %v5722_v12  ;;  %v221_v33 = vpop.permute.xlu1 %220  ;;  %vm4942_vm3 = vmpackc.low %vm420_vm13, %vm416_vm12  ;;  %v218_v34 = vpop.permute.xlu0 %217 }
  0xb9   :  { %4943 = vmatpush1.bf16.msk.msra.mxu0 %vm4942_vm3, %v5722_v12  ;;  %vm5070_vm8 = vmpackc.low %vm422_vm2, %vm418_vm15  ;;  %vm433_vm13 = vcmp.eq.s32.totalorder %v218_v34, %v6076_v7  ;;  %vm437_vm0 = vcmp.eq.s32.totalorder %v221_v33, %v6076_v7  ;;  %vm435_vm2 = vcmp.eq.s32.totalorder %v218_v34, %v6079_v8  ;;  %vm432_vm3 = vcmp.eq.s32.totalorder %v218_v34, %v6073_v4 }
  0xba   :  { %5071 = vmatpush1.bf16.msk.msra.mxu1 %vm5070_vm8, %v5722_v12  ;;  %vm4944_vm9 = vmpackc.low %vm429_vm5, %vm425_vm1  ;;  %vm439_vm1 = vcmp.eq.s32.totalorder %v221_v33, %v6079_v8  ;;  %vm434_vm8 = vcmp.eq.s32.totalorder %v218_v34, %v6082_v11 }
  0xbb   :  { %4945 = vmatprep.subr.msk.bf16.mxu0 %vm4944_vm9, %v5722_v12  ;;  %vm5072_vm12 = vmpackc.low %vm431_vm7, %vm427_vm4  ;;  %vm436_vm4 = vcmp.eq.s32.totalorder %v221_v33, %v6073_v4  ;;  %vm438_vm9 = vcmp.eq.s32.totalorder %v221_v33, %v6082_v11 }
  0xbc   :  { %5073 = vmatprep.subr.msk.bf16.mxu1 %vm5072_vm12, %v5722_v12  ;;  %v227_v35 = vpop.permute.xlu1 %226  ;;  %vm4946_vm15 = vmpackc.low %vm428_vm11, %vm424_vm6  ;;  %v224_v36 = vpop.permute.xlu0 %223 }
  0xbd   :  { %4947 = vmatpush1.bf16.msk.msra.mxu0 %vm4946_vm15, %v5722_v12  ;;  %vm5074_vm5 = vmpackc.low %vm430_vm14, %vm426_vm10  ;;  %vm441_vm11 = vcmp.eq.s32.totalorder %v224_v36, %v6076_v7  ;;  %vm445_vm12 = vcmp.eq.s32.totalorder %v227_v35, %v6076_v7  ;;  %vm443_vm14 = vcmp.eq.s32.totalorder %v224_v36, %v6079_v8  ;;  %vm440_vm15 = vcmp.eq.s32.totalorder %v224_v36, %v6073_v4 }
  0xbe   :  { %5075 = vmatpush1.bf16.msk.msra.mxu1 %vm5074_vm5, %v5722_v12  ;;  %vm4948_vm7 = vmpackc.low %vm437_vm0, %vm433_vm13  ;;  %vm447_vm13 = vcmp.eq.s32.totalorder %v227_v35, %v6079_v8  ;;  %vm442_vm5 = vcmp.eq.s32.totalorder %v224_v36, %v6082_v11 }
  0xbf   :  { %4949 = vmatprep.subr.msk.bf16.mxu0 %vm4948_vm7, %v5722_v12  ;;  %vm5076_vm6 = vmpackc.low %vm439_vm1, %vm435_vm2  ;;  %vm444_vm2 = vcmp.eq.s32.totalorder %v227_v35, %v6073_v4  ;;  %vm446_vm7 = vcmp.eq.s32.totalorder %v227_v35, %v6082_v11 }
  0xc0   :  { %5077 = vmatprep.subr.msk.bf16.mxu1 %vm5076_vm6, %v5722_v12  ;;  %v233_v37 = vpop.permute.xlu1 %232  ;;  %vm4950_vm10 = vmpackc.low %vm436_vm4, %vm432_vm3  ;;  %v230_v38 = vpop.permute.xlu0 %229 }
  0xc1   :  { %4951 = vmatpush1.bf16.msk.msra.mxu0 %vm4950_vm10, %v5722_v12  ;;  %vm5078_vm0 = vmpackc.low %vm438_vm9, %vm434_vm8  ;;  %vm449_vm4 = vcmp.eq.s32.totalorder %v230_v38, %v6076_v7  ;;  %vm453_vm6 = vcmp.eq.s32.totalorder %v233_v37, %v6076_v7  ;;  %vm451_vm9 = vcmp.eq.s32.totalorder %v230_v38, %v6079_v8  ;;  %vm448_vm10 = vcmp.eq.s32.totalorder %v230_v38, %v6073_v4 }
  0xc2   :  { %5079 = vmatpush1.bf16.msk.msra.mxu1 %vm5078_vm0, %v5722_v12  ;;  %vm4952_vm1 = vmpackc.low %vm445_vm12, %vm441_vm11  ;;  %vm455_vm11 = vcmp.eq.s32.totalorder %v233_v37, %v6079_v8  ;;  %vm450_vm0 = vcmp.eq.s32.totalorder %v230_v38, %v6082_v11 }
  0xc3   :  { %4953 = vmatprep.subr.msk.bf16.mxu0 %vm4952_vm1, %v5722_v12  ;;  %vm5080_vm3 = vmpackc.low %vm447_vm13, %vm443_vm14  ;;  %vm452_vm14 = vcmp.eq.s32.totalorder %v233_v37, %v6073_v4  ;;  %vm454_vm1 = vcmp.eq.s32.totalorder %v233_v37, %v6082_v11 }
  0xc4   :  { %5081 = vmatprep.subr.msk.bf16.mxu1 %vm5080_vm3, %v5722_v12  ;;  %v239_v39 = vpop.permute.xlu1 %238  ;;  %vm4954_vm8 = vmpackc.low %vm444_vm2, %vm440_vm15  ;;  %v236_v40 = vpop.permute.xlu0 %235 }
  0xc5   :  { %4955 = vmatpush1.bf16.msk.msra.mxu0 %vm4954_vm8, %v5722_v12  ;;  %vm5082_vm12 = vmpackc.low %vm446_vm7, %vm442_vm5  ;;  %vm457_vm2 = vcmp.eq.s32.totalorder %v236_v40, %v6076_v7  ;;  %vm461_vm3 = vcmp.eq.s32.totalorder %v239_v39, %v6076_v7  ;;  %vm459_vm7 = vcmp.eq.s32.totalorder %v236_v40, %v6079_v8  ;;  %vm456_vm8 = vcmp.eq.s32.totalorder %v236_v40, %v6073_v4 }
  0xc6   :  { %5083 = vmatpush1.bf16.msk.msra.mxu1 %vm5082_vm12, %v5722_v12  ;;  %vm4956_vm13 = vmpackc.low %vm453_vm6, %vm449_vm4  ;;  %vm463_vm4 = vcmp.eq.s32.totalorder %v239_v39, %v6079_v8  ;;  %vm458_vm12 = vcmp.eq.s32.totalorder %v236_v40, %v6082_v11  ;;  %v1606_v40 = vld [vmem:[%s8403_s27] sm:$0xff] }
  0xc7   :  { %4957 = vmatprep.subr.msk.bf16.mxu0 %vm4956_vm13, %v5722_v12  ;;  %vm5084_vm15 = vmpackc.low %vm455_vm11, %vm451_vm9  ;;  %vm460_vm9 = vcmp.eq.s32.totalorder %v239_v39, %v6073_v4  ;;  %vm462_vm13 = vcmp.eq.s32.totalorder %v239_v39, %v6082_v11 }
  0xc8   :  { %5085 = vmatprep.subr.msk.bf16.mxu1 %vm5084_vm15, %v5722_v12  ;;  %v245_v41 = vpop.permute.xlu1 %244  ;;  %vm4958_vm5 = vmpackc.low %vm452_vm14, %vm448_vm10  ;;  %v242_v42 = vpop.permute.xlu0 %241 }
  0xc9   :  { %4959 = vmatpush1.bf16.msk.msra.mxu0 %vm4958_vm5, %v5722_v12  ;;  %vm5086_vm6 = vmpackc.low %vm454_vm1, %vm450_vm0  ;;  %vm465_vm14 = vcmp.eq.s32.totalorder %v242_v42, %v6076_v7  ;;  %vm469_vm15 = vcmp.eq.s32.totalorder %v245_v41, %v6076_v7  ;;  %vm467_vm1 = vcmp.eq.s32.totalorder %v242_v42, %v6079_v8  ;;  %vm464_vm5 = vcmp.eq.s32.totalorder %v242_v42, %v6073_v4 }
  0xca   :  { %5087 = vmatpush1.bf16.msk.msra.mxu1 %vm5086_vm6, %v5722_v12  ;;  %vm4960_vm11 = vmpackc.low %vm461_vm3, %vm457_vm2  ;;  %vm471_vm2 = vcmp.eq.s32.totalorder %v245_v41, %v6079_v8  ;;  %vm466_vm6 = vcmp.eq.s32.totalorder %v242_v42, %v6082_v11  ;;  %v1608_v42 = vld [vmem:[%s8403_s27 + $0x10] sm:$0xff] }
  0xcb   :  { %4961 = vmatprep.subr.msk.bf16.mxu0 %vm4960_vm11, %v5722_v12  ;;  %vm5088_vm10 = vmpackc.low %vm463_vm4, %vm459_vm7  ;;  %vm468_vm7 = vcmp.eq.s32.totalorder %v245_v41, %v6073_v4 }
  0xcc   :  { %5089 = vmatprep.subr.msk.bf16.mxu1 %vm5088_vm10, %v5722_v12  ;;  %v251_v43 = vpop.permute.xlu1 %250  ;;  %vm4962_vm0 = vmpackc.low %vm460_vm9, %vm456_vm8  ;;  %v248_v44 = vpop.permute.xlu0 %247  ;;  %vm470_vm8 = vcmp.eq.s32.totalorder %v245_v41, %v6082_v11  ;;  %v1607_v41 = vld [vmem:[%s8403_s27 + $0x8] sm:$0xff] }
  0xcd   :  { %4963 = vmatpush1.bf16.msk.msra.mxu0 %vm4962_vm0, %v5722_v12  ;;  %vm5090_vm3 = vmpackc.low %vm462_vm13, %vm458_vm12  ;;  %vm473_vm11 = vcmp.eq.s32.totalorder %v248_v44, %v6076_v7  ;;  %vm477_vm10 = vcmp.eq.s32.totalorder %v251_v43, %v6076_v7  ;;  %vm475_vm13 = vcmp.eq.s32.totalorder %v248_v44, %v6079_v8  ;;  %vm472_vm0 = vcmp.eq.s32.totalorder %v248_v44, %v6073_v4 }
  0xce   :  { %5091 = vmatpush1.bf16.msk.msra.mxu1 %vm5090_vm3, %v5722_v12  ;;  %vm4964_vm4 = vmpackc.low %vm469_vm15, %vm465_vm14  ;;  %vm479_vm14 = vcmp.eq.s32.totalorder %v251_v43, %v6079_v8  ;;  %vm474_vm3 = vcmp.eq.s32.totalorder %v248_v44, %v6082_v11 }
  0xcf   :  { %4965 = vmatprep.subr.msk.bf16.mxu0 %vm4964_vm4, %v5722_v12  ;;  %vm5092_vm9 = vmpackc.low %vm471_vm2, %vm467_vm1  ;;  %vm476_vm1 = vcmp.eq.s32.totalorder %v251_v43, %v6073_v4 }
  0xd0   :  { %5093 = vmatprep.subr.msk.bf16.mxu1 %vm5092_vm9, %v5722_v12  ;;  %v257_v47 = vpop.permute.xlu1 %256  ;;  %1033 = vmatmul.mubr.bf16.vlgmr.msra.gmra.mrb[0].mxu0 %v5611_v45  ;;  %vm4966_vm12 = vmpackc.low %vm468_vm7, %vm464_vm5  ;;  %v254_v48 = vpop.permute.xlu0 %253  ;;  %vm478_vm5 = vcmp.eq.s32.totalorder %v251_v43, %v6082_v11  ;;  %v1609_v43 = vld [vmem:[%s8403_s27 + $0x18] sm:$0xff]  ;;  %s5732_s27 = smov 8  }
  0xd1   :  { %4967 = vmatpush1.bf16.msk.msra.mxu0 %vm4966_vm12, %v5722_v12  ;;  %1119 = vmatmul.mubr.bf16.vlgmr.msra.gmra.mrb[0].mxu1 %v5611_v45  ;;  %vm5094_vm15 = vmpackc.low %vm470_vm8, %vm466_vm6  ;;  %vm481_vm4 = vcmp.eq.s32.totalorder %v254_v48, %v6076_v7  ;;  %vm485_vm6 = vcmp.eq.s32.totalorder %v257_v47, %v6076_v7  ;;  %vm483_vm9 = vcmp.eq.s32.totalorder %v254_v48, %v6079_v8 }
  0xd2   :  { %5095 = vmatpush1.bf16.msk.msra.mxu1 %vm5094_vm15, %v5722_v12  ;;  %vm4968_vm2 = vmpackc.low %vm477_vm10, %vm473_vm11  ;;  %1075 = vmatprep.mubr.bf16.mxu0 %v5616_v46  ;;  %vm487_vm11 = vcmp.eq.s32.totalorder %v257_v47, %v6079_v8  ;;  %vm480_vm12 = vcmp.eq.s32.totalorder %v254_v48, %v6073_v4  ;;  %vm482_vm15 = vcmp.eq.s32.totalorder %v254_v48, %v6082_v11 }
  0xd3   :  { %4969 = vmatprep.subr.msk.bf16.mxu0 %vm4968_vm2, %v5722_v12  ;;  %vm5096_vm7 = vmpackc.low %vm479_vm14, %vm475_vm13  ;;  %1161 = vmatprep.mubr.bf16.mxu1 %v5616_v46  ;;  %vm484_vm13 = vcmp.eq.s32.totalorder %v257_v47, %v6073_v4 }
  0xd4   :  { %5097 = vmatprep.subr.msk.bf16.mxu1 %vm5096_vm7, %v5722_v12  ;;  %v263_v49 = vpop.permute.xlu1 %262  ;;  %vm4970_vm8 = vmpackc.low %vm476_vm1, %vm472_vm0  ;;  %v260_v50 = vpop.permute.xlu0 %259  ;;  %vm486_vm0 = vcmp.eq.s32.totalorder %v257_v47, %v6082_v11 }
  0xd5   :  { %4971 = vmatpush1.bf16.msk.msra.mxu0 %vm4970_vm8, %v5722_v12  ;;  %vm5098_vm10 = vmpackc.low %vm478_vm5, %vm474_vm3  ;;  %vm489_vm2 = vcmp.eq.s32.totalorder %v260_v50, %v6076_v7  ;;  %vm493_vm3 = vcmp.eq.s32.totalorder %v263_v49, %v6076_v7  ;;  %vm491_vm7 = vcmp.eq.s32.totalorder %v260_v50, %v6079_v8  ;;  %vm488_vm8 = vcmp.eq.s32.totalorder %v260_v50, %v6073_v4 }
  0xd6   :  { %5099 = vmatpush1.bf16.msk.msra.mxu1 %vm5098_vm10, %v5722_v12  ;;  %vm4972_vm14 = vmpackc.low %vm485_vm6, %vm481_vm4  ;;  %vm495_vm4 = vcmp.eq.s32.totalorder %v263_v49, %v6079_v8  ;;  %vm490_vm10 = vcmp.eq.s32.totalorder %v260_v50, %v6082_v11 }
  0xd7   :  { %4973 = vmatprep.subr.msk.bf16.mxu0 %vm4972_vm14, %v5722_v12  ;;  %vm5100_vm1 = vmpackc.low %vm487_vm11, %vm483_vm9  ;;  %vm492_vm9 = vcmp.eq.s32.totalorder %v263_v49, %v6073_v4  ;;  %vm494_vm14 = vcmp.eq.s32.totalorder %v263_v49, %v6082_v11 }
  0xd8   :  { %5101 = vmatprep.subr.msk.bf16.mxu1 %vm5100_vm1, %v5722_v12  ;;  %v269_v51 = vpop.permute.xlu1 %268  ;;  %vm4974_vm5 = vmpackc.low %vm484_vm13, %vm480_vm12  ;;  %v266_v52 = vpop.permute.xlu0 %265 }
  0xd9   :  { %4975 = vmatpush1.bf16.msk.msra.mxu0 %vm4974_vm5, %v5722_v12  ;;  %vm5102_vm6 = vmpackc.low %vm486_vm0, %vm482_vm15  ;;  %vm497_vm13 = vcmp.eq.s32.totalorder %v266_v52, %v6076_v7  ;;  %vm501_vm1 = vcmp.eq.s32.totalorder %v269_v51, %v6076_v7  ;;  %vm499_vm0 = vcmp.eq.s32.totalorder %v266_v52, %v6079_v8  ;;  %vm496_vm5 = vcmp.eq.s32.totalorder %v266_v52, %v6073_v4 }
  0xda   :  { %5103 = vmatpush1.bf16.msk.msra.mxu1 %vm5102_vm6, %v5722_v12  ;;  %vm4976_vm11 = vmpackc.low %vm493_vm3, %vm489_vm2  ;;  %vm503_vm2 = vcmp.eq.s32.totalorder %v269_v51, %v6079_v8  ;;  %vm498_vm6 = vcmp.eq.s32.totalorder %v266_v52, %v6082_v11 }
  0xdb   :  { %4977 = vmatprep.subr.msk.bf16.mxu0 %vm4976_vm11, %v5722_v12  ;;  %vm5104_vm12 = vmpackc.low %vm495_vm4, %vm491_vm7  ;;  %vm500_vm7 = vcmp.eq.s32.totalorder %v269_v51, %v6073_v4  ;;  %vm502_vm11 = vcmp.eq.s32.totalorder %v269_v51, %v6082_v11 }
  0xdc   :  { %5105 = vmatprep.subr.msk.bf16.mxu1 %vm5104_vm12, %v5722_v12  ;;  %v275_v53 = vpop.permute.xlu1 %274  ;;  %vm4978_vm15 = vmpackc.low %vm492_vm9, %vm488_vm8  ;;  %v272_v54 = vpop.permute.xlu0 %271 }
  0xdd   :  { %4979 = vmatpush1.bf16.msk.msra.mxu0 %vm4978_vm15, %v5722_v12  ;;  %vm5106_vm3 = vmpackc.low %vm494_vm14, %vm490_vm10  ;;  %vm505_vm9 = vcmp.eq.s32.totalorder %v272_v54, %v6076_v7  ;;  %vm509_vm12 = vcmp.eq.s32.totalorder %v275_v53, %v6076_v7  ;;  %vm507_vm14 = vcmp.eq.s32.totalorder %v272_v54, %v6079_v8  ;;  %vm504_vm15 = vcmp.eq.s32.totalorder %v272_v54, %v6073_v4 }
  0xde   :  { %5107 = vmatpush1.bf16.msk.msra.mxu1 %vm5106_vm3, %v5722_v12  ;;  %vm4980_vm4 = vmpackc.low %vm501_vm1, %vm497_vm13  ;;  %vm511_vm13 = vcmp.eq.s32.totalorder %v275_v53, %v6079_v8  ;;  %vm506_vm3 = vcmp.eq.s32.totalorder %v272_v54, %v6082_v11 }
  0xdf   :  { %4981 = vmatprep.subr.msk.bf16.mxu0 %vm4980_vm4, %v5722_v12  ;;  %vm5108_vm8 = vmpackc.low %vm503_vm2, %vm499_vm0  ;;  %vm508_vm0 = vcmp.eq.s32.totalorder %v275_v53, %v6073_v4  ;;  %vm510_vm4 = vcmp.eq.s32.totalorder %v275_v53, %v6082_v11 }
  0xe0   :  { %5109 = vmatprep.subr.msk.bf16.mxu1 %vm5108_vm8, %v5722_v12  ;;  %v281_v55 = vpop.permute.xlu1 %280  ;;  %vm4982_vm10 = vmpackc.low %vm500_vm7, %vm496_vm5  ;;  %v278_v56 = vpop.permute.xlu0 %277 }
  0xe1   :  { %4983 = vmatpush1.bf16.msk.msra.mxu0 %vm4982_vm10, %v5722_v12  ;;  %vm5110_vm1 = vmpackc.low %vm502_vm11, %vm498_vm6  ;;  %vm513_vm7 = vcmp.eq.s32.totalorder %v278_v56, %v6076_v7  ;;  %vm517_vm8 = vcmp.eq.s32.totalorder %v281_v55, %v6076_v7  ;;  %vm515_vm11 = vcmp.eq.s32.totalorder %v278_v56, %v6079_v8  ;;  %vm512_vm10 = vcmp.eq.s32.totalorder %v278_v56, %v6073_v4 }
  0xe2   :  { %5111 = vmatpush1.bf16.msk.msra.mxu1 %vm5110_vm1, %v5722_v12  ;;  %vm4984_vm2 = vmpackc.low %vm509_vm12, %vm505_vm9  ;;  %vm519_vm9 = vcmp.eq.s32.totalorder %v281_v55, %v6079_v8  ;;  %vm514_vm1 = vcmp.eq.s32.totalorder %v278_v56, %v6082_v11 }
  0xe3   :  { %4985 = vmatprep.subr.msk.bf16.mxu0 %vm4984_vm2, %v5722_v12  ;;  %vm5112_vm5 = vmpackc.low %vm511_vm13, %vm507_vm14  ;;  %vm516_vm14 = vcmp.eq.s32.totalorder %v281_v55, %v6073_v4  ;;  %vm518_vm2 = vcmp.eq.s32.totalorder %v281_v55, %v6082_v11 }
  0xe4   :  { %5113 = vmatprep.subr.msk.bf16.mxu1 %vm5112_vm5, %v5722_v12  ;;  %v287_v57 = vpop.permute.xlu1 %286  ;;  %vm4986_vm6 = vmpackc.low %vm508_vm0, %vm504_vm15  ;;  %v284_v58 = vpop.permute.xlu0 %283 }
  0xe5   :  { %4987 = vmatpush1.bf16.msk.msra.mxu0 %vm4986_vm6, %v5722_v12  ;;  %vm5114_vm12 = vmpackc.low %vm510_vm4, %vm506_vm3  ;;  %vm521_vm0 = vcmp.eq.s32.totalorder %v284_v58, %v6076_v7  ;;  %vm525_vm5 = vcmp.eq.s32.totalorder %v287_v57, %v6076_v7  ;;  %vm523_vm4 = vcmp.eq.s32.totalorder %v284_v58, %v6079_v8  ;;  %vm520_vm6 = vcmp.eq.s32.totalorder %v284_v58, %v6073_v4 }
  0xe6   :  { %5115 = vmatpush1.bf16.msk.msra.mxu1 %vm5114_vm12, %v5722_v12  ;;  %vm4988_vm13 = vmpackc.low %vm517_vm8, %vm513_vm7  ;;  %vm527_vm7 = vcmp.eq.s32.totalorder %v287_v57, %v6079_v8  ;;  %vm522_vm12 = vcmp.eq.s32.totalorder %v284_v58, %v6082_v11 }
  0xe7   :  { %4989 = vmatprep.subr.msk.bf16.mxu0 %vm4988_vm13, %v5722_v12  ;;  %vm5116_vm15 = vmpackc.low %vm519_vm9, %vm515_vm11  ;;  %vm524_vm11 = vcmp.eq.s32.totalorder %v287_v57, %v6073_v4  ;;  %vm526_vm13 = vcmp.eq.s32.totalorder %v287_v57, %v6082_v11 }
  0xe8   :  { %5117 = vmatprep.subr.msk.bf16.mxu1 %vm5116_vm15, %v5722_v12  ;;  %v293_v59 = vpop.permute.xlu1 %292  ;;  %vm4990_vm3 = vmpackc.low %vm516_vm14, %vm512_vm10  ;;  %v290_v60 = vpop.permute.xlu0 %289 }
  0xe9   :  { %4991 = vmatpush1.bf16.msk.msra.mxu0 %vm4990_vm3, %v5722_v12  ;;  %vm5118_vm8 = vmpackc.low %vm518_vm2, %vm514_vm1  ;;  %vm529_vm14 = vcmp.eq.s32.totalorder %v290_v60, %v6076_v7  ;;  %vm533_vm15 = vcmp.eq.s32.totalorder %v293_v59, %v6076_v7  ;;  %vm531_vm2 = vcmp.eq.s32.totalorder %v290_v60, %v6079_v8  ;;  %vm528_vm3 = vcmp.eq.s32.totalorder %v290_v60, %v6073_v4 }
  0xea   :  { %5119 = vmatpush1.bf16.msk.msra.mxu1 %vm5118_vm8, %v5722_v12  ;;  %vm4992_vm9 = vmpackc.low %vm525_vm5, %vm521_vm0  ;;  %vm535_vm0 = vcmp.eq.s32.totalorder %v293_v59, %v6079_v8  ;;  %vm530_vm8 = vcmp.eq.s32.totalorder %v290_v60, %v6082_v11 }
  0xeb   :  { %4993 = vmatprep.subr.msk.bf16.mxu0 %vm4992_vm9, %v5722_v12  ;;  %vm5120_vm10 = vmpackc.low %vm527_vm7, %vm523_vm4  ;;  %vm532_vm4 = vcmp.eq.s32.totalorder %v293_v59, %v6073_v4  ;;  %vm534_vm9 = vcmp.eq.s32.totalorder %v293_v59, %v6082_v11 }
  0xec   :  { %5121 = vmatprep.subr.msk.bf16.mxu1 %vm5120_vm10, %v5722_v12  ;;  %v299_v61 = vpop.permute.xlu1 %298  ;;  %vm4994_vm1 = vmpackc.low %vm524_vm11, %vm520_vm6  ;;  %v296_v62 = vpop.permute.xlu0 %295 }
  0xed   :  { %4995 = vmatpush1.bf16.msk.msra.mxu0 %vm4994_vm1, %v5722_v12  ;;  %vm5122_vm5 = vmpackc.low %vm526_vm13, %vm522_vm12  ;;  %vm537_vm11 = vcmp.eq.s32.totalorder %v296_v62, %v6076_v7  ;;  %vm541_vm10 = vcmp.eq.s32.totalorder %v299_v61, %v6076_v7  ;;  %vm539_vm13 = vcmp.eq.s32.totalorder %v296_v62, %v6079_v8  ;;  %vm536_vm1 = vcmp.eq.s32.totalorder %v296_v62, %v6073_v4 }
  0xee   :  { %5123 = vmatpush1.bf16.msk.msra.mxu1 %vm5122_vm5, %v5722_v12  ;;  %vm4996_vm7 = vmpackc.low %vm533_vm15, %vm529_vm14  ;;  %vm543_vm14 = vcmp.eq.s32.totalorder %v299_v61, %v6079_v8  ;;  %vm538_vm5 = vcmp.eq.s32.totalorder %v296_v62, %v6082_v11 }
  0xef   :  { %4997 = vmatprep.subr.msk.bf16.mxu0 %vm4996_vm7, %v5722_v12  ;;  %vm5124_vm6 = vmpackc.low %vm535_vm0, %vm531_vm2  ;;  %vm540_vm2 = vcmp.eq.s32.totalorder %v299_v61, %v6073_v4  ;;  %vm542_vm7 = vcmp.eq.s32.totalorder %v299_v61, %v6082_v11 }
  0xf0   :  { %5125 = vmatprep.subr.msk.bf16.mxu1 %vm5124_vm6, %v5722_v12  ;;  %v305_v63 = vpop.permute.xlu1 %304  ;;  %vm4998_vm12 = vmpackc.low %vm532_vm4, %vm528_vm3  ;;  %v302_v2 = vpop.permute.xlu0 %301 }
  0xf1   :  { %4999 = vmatpush1.bf16.msk.msra.mxu0 %vm4998_vm12, %v5722_v12  ;;  %vm5126_vm15 = vmpackc.low %vm534_vm9, %vm530_vm8  ;;  %vm545_vm4 = vcmp.eq.s32.totalorder %v302_v2, %v6076_v7  ;;  %vm549_vm6 = vcmp.eq.s32.totalorder %v305_v63, %v6076_v7  ;;  %vm547_vm9 = vcmp.eq.s32.totalorder %v302_v2, %v6079_v8  ;;  %vm544_vm12 = vcmp.eq.s32.totalorder %v302_v2, %v6073_v4 }
  0xf2   :  { %5127 = vmatpush1.bf16.msk.msra.mxu1 %vm5126_vm15, %v5722_v12  ;;  %vm5000_vm0 = vmpackc.low %vm541_vm10, %vm537_vm11  ;;  %vm551_vm11 = vcmp.eq.s32.totalorder %v305_v63, %v6079_v8  ;;  %vm546_vm15 = vcmp.eq.s32.totalorder %v302_v2, %v6082_v11 }
  0xf3   :  { %5001 = vmatprep.subr.msk.bf16.mxu0 %vm5000_vm0, %v5722_v12  ;;  %vm5128_vm3 = vmpackc.low %vm543_vm14, %vm539_vm13  ;;  %vm548_vm13 = vcmp.eq.s32.totalorder %v305_v63, %v6073_v4  ;;  %vm550_vm0 = vcmp.eq.s32.totalorder %v305_v63, %v6082_v11 }
  0xf4   :  { %5129 = vmatprep.subr.msk.bf16.mxu1 %vm5128_vm3, %v5722_v12  ;;  %v311_v3 = vpop.permute.xlu1 %310  ;;  %vm5002_vm8 = vmpackc.low %vm540_vm2, %vm536_vm1  ;;  %v308_v5 = vpop.permute.xlu0 %307 }
  0xf5   :  { %5003 = vmatpush1.bf16.msk.msra.mxu0 %vm5002_vm8, %v5722_v12  ;;  %vm5130_vm10 = vmpackc.low %vm542_vm7, %vm538_vm5  ;;  %vm553_vm2 = vcmp.eq.s32.totalorder %v308_v5, %v6076_v7  ;;  %vm557_vm3 = vcmp.eq.s32.totalorder %v311_v3, %v6076_v7  ;;  %vm555_vm7 = vcmp.eq.s32.totalorder %v308_v5, %v6079_v8  ;;  %vm552_vm8 = vcmp.eq.s32.totalorder %v308_v5, %v6073_v4 }
  0xf6   :  { %5131 = vmatpush1.bf16.msk.msra.mxu1 %vm5130_vm10, %v5722_v12  ;;  %vm5004_vm14 = vmpackc.low %vm549_vm6, %vm545_vm4  ;;  %vm559_vm4 = vcmp.eq.s32.totalorder %v311_v3, %v6079_v8  ;;  %vm554_vm10 = vcmp.eq.s32.totalorder %v308_v5, %v6082_v11 }
  0xf7   :  { %5005 = vmatprep.subr.msk.bf16.mxu0 %vm5004_vm14, %v5722_v12  ;;  %vm5132_vm1 = vmpackc.low %vm551_vm11, %vm547_vm9  ;;  %vm556_vm9 = vcmp.eq.s32.totalorder %v311_v3, %v6073_v4  ;;  %vm558_vm14 = vcmp.eq.s32.totalorder %v311_v3, %v6082_v11 }
  0xf8   :  { %5133 = vmatprep.subr.msk.bf16.mxu1 %vm5132_vm1, %v5722_v12  ;;  %v317_v6 = vpop.permute.xlu1 %316  ;;  %vm5006_vm5 = vmpackc.low %vm548_vm13, %vm544_vm12  ;;  %v314_v9 = vpop.permute.xlu0 %313 }
  0xf9   :  { %5007 = vmatpush1.bf16.msk.msra.mxu0 %vm5006_vm5, %v5722_v12  ;;  %vm5134_vm6 = vmpackc.low %vm550_vm0, %vm546_vm15  ;;  %vm561_vm13 = vcmp.eq.s32.totalorder %v314_v9, %v6076_v7  ;;  %vm565_vm1 = vcmp.eq.s32.totalorder %v317_v6, %v6076_v7  ;;  %vm563_vm0 = vcmp.eq.s32.totalorder %v314_v9, %v6079_v8  ;;  %vm560_vm5 = vcmp.eq.s32.totalorder %v314_v9, %v6073_v4 }
  0xfa   :  { %5135 = vmatpush1.bf16.msk.msra.mxu1 %vm5134_vm6, %v5722_v12  ;;  %vm5008_vm11 = vmpackc.low %vm557_vm3, %vm553_vm2  ;;  %vm567_vm2 = vcmp.eq.s32.totalorder %v317_v6, %v6079_v8  ;;  %vm562_vm6 = vcmp.eq.s32.totalorder %v314_v9, %v6082_v11 }
  0xfb   :  { %5009 = vmatprep.subr.msk.bf16.mxu0 %vm5008_vm11, %v5722_v12  ;;  %vm5136_vm12 = vmpackc.low %vm559_vm4, %vm555_vm7  ;;  %vm564_vm7 = vcmp.eq.s32.totalorder %v317_v6, %v6073_v4  ;;  %vm566_vm11 = vcmp.eq.s32.totalorder %v317_v6, %v6082_v11 }
  0xfc   :  { %5137 = vmatprep.subr.msk.bf16.mxu1 %vm5136_vm12, %v5722_v12  ;;  %v323_v10 = vpop.permute.xlu1 %322  ;;  %vm5010_vm15 = vmpackc.low %vm556_vm9, %vm552_vm8  ;;  %v320_v13 = vpop.permute.xlu0 %319 }
  0xfd   :  { %5011 = vmatpush1.bf16.msk.msra.mxu0 %vm5010_vm15, %v5722_v12  ;;  %vm5138_vm3 = vmpackc.low %vm558_vm14, %vm554_vm10  ;;  %vm569_vm9 = vcmp.eq.s32.totalorder %v320_v13, %v6076_v7  ;;  %vm573_vm12 = vcmp.eq.s32.totalorder %v323_v10, %v6076_v7  ;;  %vm571_vm14 = vcmp.eq.s32.totalorder %v320_v13, %v6079_v8  ;;  %vm568_vm15 = vcmp.eq.s32.totalorder %v320_v13, %v6073_v4 }
  0xfe   :  { %5139 = vmatpush1.bf16.msk.msra.mxu1 %vm5138_vm3, %v5722_v12  ;;  %vm5012_vm4 = vmpackc.low %vm565_vm1, %vm561_vm13  ;;  %vm575_vm13 = vcmp.eq.s32.totalorder %v323_v10, %v6079_v8  ;;  %vm570_vm3 = vcmp.eq.s32.totalorder %v320_v13, %v6082_v11 }
  0xff   :  { %5013 = vmatprep.subr.msk.bf16.mxu0 %vm5012_vm4, %v5722_v12  ;;  %vm5140_vm8 = vmpackc.low %vm567_vm2, %vm563_vm0  ;;  %vm572_vm0 = vcmp.eq.s32.totalorder %v323_v10, %v6073_v4  ;;  %vm574_vm4 = vcmp.eq.s32.totalorder %v323_v10, %v6082_v11 }
 0x100   :  { %5141 = vmatprep.subr.msk.bf16.mxu1 %vm5140_vm8, %v5722_v12  ;;  %v329_v14 = vpop.permute.xlu1 %328  ;;  %vm5014_vm10 = vmpackc.low %vm564_vm7, %vm560_vm5  ;;  %v326_v15 = vpop.permute.xlu0 %325 }
 0x101   :  { %5015 = vmatpush1.bf16.msk.msra.mxu0 %vm5014_vm10, %v5722_v12  ;;  %vm5142_vm1 = vmpackc.low %vm566_vm11, %vm562_vm6  ;;  %vm577_vm7 = vcmp.eq.s32.totalorder %v326_v15, %v6076_v7  ;;  %vm581_vm8 = vcmp.eq.s32.totalorder %v329_v14, %v6076_v7  ;;  %vm579_vm11 = vcmp.eq.s32.totalorder %v326_v15, %v6079_v8  ;;  %vm576_vm10 = vcmp.eq.s32.totalorder %v326_v15, %v6073_v4 }
 0x102   :  { %5143 = vmatpush1.bf16.msk.msra.mxu1 %vm5142_vm1, %v5722_v12  ;;  %vm5016_vm2 = vmpackc.low %vm573_vm12, %vm569_vm9  ;;  %vm583_vm9 = vcmp.eq.s32.totalorder %v329_v14, %v6079_v8  ;;  %vm578_vm1 = vcmp.eq.s32.totalorder %v326_v15, %v6082_v11 }
 0x103   :  { %5017 = vmatprep.subr.msk.bf16.mxu0 %vm5016_vm2, %v5722_v12  ;;  %vm5144_vm5 = vmpackc.low %vm575_vm13, %vm571_vm14  ;;  %vm580_vm14 = vcmp.eq.s32.totalorder %v329_v14, %v6073_v4  ;;  %vm582_vm2 = vcmp.eq.s32.totalorder %v329_v14, %v6082_v11 }
 0x104   :  { %5145 = vmatprep.subr.msk.bf16.mxu1 %vm5144_vm5, %v5722_v12  ;;  %v335_v16 = vpop.permute.xlu1 %334  ;;  %vm5018_vm6 = vmpackc.low %vm572_vm0, %vm568_vm15  ;;  %v332_v17 = vpop.permute.xlu0 %331 }
 0x105   :  { %5019 = vmatpush1.bf16.msk.msra.mxu0 %vm5018_vm6, %v5722_v12  ;;  %vm5146_vm12 = vmpackc.low %vm574_vm4, %vm570_vm3  ;;  %vm585_vm0 = vcmp.eq.s32.totalorder %v332_v17, %v6076_v7  ;;  %vm589_vm5 = vcmp.eq.s32.totalorder %v335_v16, %v6076_v7  ;;  %vm587_vm4 = vcmp.eq.s32.totalorder %v332_v17, %v6079_v8  ;;  %vm591_vm6 = vcmp.eq.s32.totalorder %v335_v16, %v6079_v8  ;;  %v5614_v7 = vld [vmem:[%s8402_s5 + $0x8] ss:$16 sps:$4 sm:$0x1f]   ;;  %s5723_s5 = smov 17  }
 0x106   :  { %5147 = vmatpush1.bf16.msk.msra.mxu1 %vm5146_vm12, %v5722_v12  ;;  %vm5020_vm13 = vmpackc.low %vm581_vm8, %vm577_vm7  ;;  %vm584_vm8 = vcmp.eq.s32.totalorder %v332_v17, %v6073_v4  ;;  %vm588_vm12 = vcmp.eq.s32.totalorder %v335_v16, %v6073_v4  ;;  %v6494_v8 = vshrl.u32 %v75_v1, 7 }
 0x107   :  { %5021 = vmatprep.subr.msk.bf16.mxu0 %vm5020_vm13, %v5722_v12  ;;  %vm5148_vm15 = vmpackc.low %vm583_vm9, %vm579_vm11  ;;  %vm586_vm9 = vcmp.eq.s32.totalorder %v332_v17, %v6082_v11  ;;  %vm590_vm13 = vcmp.eq.s32.totalorder %v335_v16, %v6082_v11 }
 0x108   :  { %5149 = vmatprep.subr.msk.bf16.mxu1 %vm5148_vm15, %v5722_v12  ;;  %vm5022_vm3 = vmpackc.low %vm580_vm14, %vm576_vm10  ;;  %v6497_v20 = vsub.s32 0, %v6494_v8  ;;  %v6586_v57 = vsub.s32 1, %v6494_v8  ;;  %vm1213_vm15 = vcmask 138240   ;;  %v6594_v2 = vsub.s32 2, %v6494_v8 }
 0x109   :  { %5023 = vmatpush1.bf16.msk.msra.mxu0 %vm5022_vm3, %v5722_v12  ;;  %vm5150_vm7 = vmpackc.low %vm582_vm2, %vm578_vm1  ;;  %vm1257_vm2 = vcmask 130048   ;;  %v6598_v5 = vsub.s32 3, %v6494_v8  ;;  %vm1416_vm3 = vcmask 1039360  }
 0x10a   :  { %5151 = vmatpush1.bf16.msk.msra.mxu1 %vm5150_vm7, %v5722_v12  ;;  %vm5024_vm11 = vmpackc.low %vm589_vm5, %vm585_vm0  ;;  %vm1345_vm0 = vcmask 7168   ;;  %vm1301_vm5 = vcmask 121856   ;;  %vm1548_vm7 = vcmask 908288  }
 0x10b   :  { %5025 = vmatprep.subr.msk.bf16.mxu0 %vm5024_vm11, %v5722_v12  ;;  %vm5152_vm10 = vmpackc.low %vm591_vm6, %vm587_vm4  ;;  %vm1504_vm4 = vcmask 916480   ;;  %vm1460_vm6 = vcmask 924672   ;;  %vm2505_vm11 = vcmask 261120  }
 0x10c   :  { %5153 = vmatprep.subr.msk.bf16.mxu1 %vm5152_vm10, %v5722_v12  ;;  %vm5026_vm14 = vmpackc.low %vm588_vm12, %vm584_vm8  ;;  %vm1647_vm8 = vcmask 1043456   ;;  %vm1640_vm12 = vcmask 588800   ;;  %vm2298_vm10 = vcmask 990208  }
 0x10d   :  { %5027 = vmatpush1.bf16.msk.msra.mxu0 %vm5026_vm14, %v5722_v12  ;;  %vm5154_vm1 = vmpackc.low %vm590_vm13, %vm586_vm9  ;;  %vm2161_vm9 = vcmask 72704   ;;  %vm2187_vm13 = vcmask 64512   ;;  %vm2213_vm14 = vcmask 56320  }
 0x10e   :  { %5155 = vmatpush1.bf16.msk.msra.mxu1 %vm5154_vm1, %v5722_v12  ;;  %vm2324_vm1 = vcmask 982016  }
 0x110   :  { %1076 = vmatmul.mubr.bf16.vlgmr.msra.gmra.mrb[0].mxu0 %v5614_v7 }
 0x111   :  { %1162 = vmatmul.mubr.bf16.vlgmr.msra.gmra.mrb[0].mxu1 %v5614_v7  ;;  %1692 = vmatprep.mubr.bf16.mxu0 %v5721_v0 }
 0x112   :  { %1745 = vmatprep.mubr.bf16.mxu1 %v5721_v0 }
 0x1e3   :  { %v1077_v11 = vpop.f32.mrb[0].mxu0 }
 0x1e4   :  { %v1163_v18 = vpop.f32.mrb[0].mxu1  ;;  %v1079_v19 = vpop.f32.mrb[1].mxu0 }
 0x1e5   :  { %v1165_v21 = vpop.f32.mrb[1].mxu1  ;;  %v1081_v22 = vpop.f32.mrb[2].mxu0 }
 0x1e6   :  { %v1172_v23 = vmax.f32 %v1081_v22, 1.0  ;;  %v1167_v24 = vpop.f32.mrb[2].mxu1  ;;  %v1083_v12 = vpop.f32.mrb[3].mxu0 }
 0x1e7   :  { %v1174_v25 = vmax.f32 %v1167_v24, 1.0  ;;  %v1173_v26 = vmax.f32 %v1083_v12, 1.0  ;;  %v1169_v27 = vpop.f32.mrb[3].mxu1 }
 0x1e8   :  { %v1179_v28 = vrot.slane %v1172_v23, %v6497_v20  ;;  %v1175_v29 = vmax.f32 %v1169_v27, 1.0 }
 0x1e9   :  { %v1187_v1 = vrot.slane %v1174_v25, %v6497_v20  ;;  %v1183_v30 = vrot.slane %v1173_v26, %v6497_v20 }
 0x1ea   :  { %5695 = vrcp.f32 %v1179_v28  ;;  %v1191_v31 = vrot.slane %v1175_v29, %v6497_v20 }
 0x1eb   :  { %5697 = vrcp.f32 %v1187_v1 }
 0x1ec   :  { %5699 = vrcp.f32 %v1183_v30 }
 0x1ed   :  { %5701 = vrcp.f32 %v1191_v31 }
 0x1f4   :  { %v5696_v32 = vpop.eup %5695 }
 0x1f5   :  { %v5698_v33 = vpop.eup %5697  ;;  %v6503_v34 = vmul.f32 %v5696_v32, %v1077_v11 }
 0x1f6   :  { %v5700_v35 = vpop.eup %5699  ;;  %v6505_v36 = vmul.f32 %v5698_v33, %v1163_v18 }
 0x1f7   :  { %v5702_v37 = vpop.eup %5701  ;;  %v6507_v38 = vmul.f32 %v5700_v35, %v1079_v19  ;;  %1205 = vrot.lane.b32.xlu0 %v6503_v34, %s5723_s5 }
 0x1f8   :  { %v6510_v39 = vmul.f32 %v5702_v37, %v1165_v21  ;;  %1412 = vrot.lane.b32.xlu1 %v6505_v36, %s8349_s6 }
 0x1fb   :  { %1209 = vrot.lane.b32.xlu0 %v6505_v36, %s5723_s5 }
 0x1fc   :  { %1408 = vrot.lane.b32.xlu1 %v6503_v34, %s8349_s6 }
 0x1ff   :  { %1249 = vrot.lane.b32.xlu0 %v6503_v34, %s5725_s30 }
 0x200   :  { %1456 = vrot.lane.b32.xlu1 %v6505_v36, %s5726_s25 }
 0x203   :  { %1253 = vrot.lane.b32.xlu0 %v6505_v36, %s5725_s30 }
 0x204   :  { %1496 = vrot.lane.b32.xlu1 %v6503_v34, %s5727_s2 }
 0x207   :  { %1293 = vrot.lane.b32.xlu0 %v6503_v34, %s5728_s1 }
 0x208   :  { %1207 = vrot.lane.b32.xlu1 %v6507_v38, %s5723_s5 }
 0x20b   :  { %1297 = vrot.lane.b32.xlu0 %v6505_v36, %s5728_s1 }
 0x20c   :  { %1211 = vrot.lane.b32.xlu1 %v6510_v39, %s5723_s5  ;;  %s8408_s5 = sld [smem:[#allocation82_spill]] }
 0x20f   :  { %1337 = vrot.lane.b32.xlu0 %v6503_v34, %s8355_s3 }
 0x210   :  { %1251 = vrot.lane.b32.xlu1 %v6507_v38, %s5725_s30 }
 0x213   :  { %1341 = vrot.lane.b32.xlu0 %v6505_v36, %s8355_s3 }
 0x214   :  { %1255 = vrot.lane.b32.xlu1 %v6510_v39, %s5725_s30 }
 0x217   :  { %1500 = vrot.lane.b32.xlu0 %v6505_v36, %s5727_s2 }
 0x218   :  { %1295 = vrot.lane.b32.xlu1 %v6507_v38, %s5728_s1 }
 0x21b   :  { %1452 = vrot.lane.b32.xlu0 %v6503_v34, %s5726_s25 }
 0x21c   :  { %1299 = vrot.lane.b32.xlu1 %v6510_v39, %s5728_s1  ;;  %s8407_s1 = sld [smem:[#allocation81_spill]] }
 0x21f   :  { %1540 = vrot.lane.b32.xlu0 %v6503_v34, %s5730_s26 }
 0x220   :  { %1339 = vrot.lane.b32.xlu1 %v6507_v38, %s8355_s3 }
 0x223   :  { %1410 = vrot.lane.b32.xlu0 %v6507_v38, %s8349_s6 }
 0x224   :  { %1343 = vrot.lane.b32.xlu1 %v6510_v39, %s8355_s3 }
 0x227   :  { %1414 = vrot.lane.b32.xlu0 %v6510_v39, %s8349_s6 }
 0x228   :  { %1498 = vrot.lane.b32.xlu1 %v6507_v38, %s5727_s2 }
 0x22b   :  { %1454 = vrot.lane.b32.xlu0 %v6507_v38, %s5726_s25 }
 0x22c   :  { %1502 = vrot.lane.b32.xlu1 %v6510_v39, %s5727_s2 }
 0x22f   :  { %1458 = vrot.lane.b32.xlu0 %v6510_v39, %s5726_s25  ;;  %s5736_s25 = smov 119  }
 0x230   :  { %1542 = vrot.lane.b32.xlu1 %v6507_v38, %s5730_s26 }
 0x233   :  { %1544 = vrot.lane.b32.xlu0 %v6505_v36, %s5730_s26 }
 0x234   :  { %1546 = vrot.lane.b32.xlu1 %v6510_v39, %s5730_s26  ;;  %s8404_s26 = sld [smem:[#allocation80_spill]] }
 0x237   :  { %1612 = vperm.xlu0 %5609, %v1606_v40  }
 0x238   :  { %1617 = vperm.xlu1 %5610, %v1607_v41  }
 0x23a   :  { %v5156_v54 = vld [vmem:[%s8404_s26 + $0x1] ss:$8 sm:$0xf]  ;;  %v1200_v56 = vld [vmem:[%s8404_s26] ss:$8 sm:$0xf] }
 0x23b   :  { %1622 = vperm.xlu0 %5609, %v1608_v42   ;;  %v1270_v59 = vrot.slane %v5156_v54, %v6497_v20  ;;  %v1230_v61 = vrot.slane %v1200_v56, %v6586_v57  ;;  %v1274_v62 = vrot.slane %v5156_v54, %v6586_v57  ;;  %v1226_v63 = vrot.slane %v1200_v56, %v6497_v20  ;;  %v5159_v28 = vld [vmem:[%s8404_s26 + $0x4] ss:$8 sm:$0xf]  ;;  %v5158_v32 = vld [vmem:[%s8404_s26 + $0x3] ss:$8 sm:$0xf] }
 0x23c   :  { %1627 = vperm.xlu1 %5610, %v1609_v43   ;;  %v1238_v14 = vrot.slane %v1200_v56, %v6598_v5  ;;  %v1278_v15 = vrot.slane %v5156_v54, %v6594_v2  ;;  %v1282_v18 = vrot.slane %v5156_v54, %v6598_v5  ;;  %v1234_v19 = vrot.slane %v1200_v56, %v6594_v2  ;;  %v5157_v43 = vld [vmem:[%s8404_s26 + $0x2] ss:$8 sm:$0xf] }
 0x23d   :  { %v1385_v37 = vrot.slane %v5159_v28, %v6497_v20  ;;  %v1393_v41 = vrot.slane %v5159_v28, %v6594_v2  ;;  %v1389_v42 = vrot.slane %v5159_v28, %v6586_v57  ;;  %v1314_v54 = vrot.slane %v5157_v43, %v6497_v20 }
 0x23f   :  { %v6636_v56 = vmul.f32 %v1385_v37, %v6503_v34 }
 0x269   :  { %v1206_v44 = vpop.permute.xlu0 %1205 }
 0x26a   :  { %v6567_v45 = vpop.permute.xlu1 %1412  ;;  %v1221_v9 = vsel %vm1213_vm15, 0.0, %v1206_v44 }
 0x26b   :  { %v1243_v8 = vmul.f32 %v1226_v63, %v1221_v9  ;;  %v1362_v63 = vrot.slane %v5158_v32, %v6586_v57  ;;  %v1322_v9 = vrot.slane %v5157_v43, %v6594_v2 }
 0x26d   :  { %v1210_v46 = vpop.permute.xlu0 %1209 }
 0x26e   :  { %v6569_v47 = vpop.permute.xlu1 %1408 }
 0x271   :  { %v1250_v48 = vpop.permute.xlu0 %1249 }
 0x272   :  { %v6571_v49 = vpop.permute.xlu1 %1456  ;;  %v1265_v60 = vsel %vm1257_vm2, 0.0, %v1250_v48 }
 0x273   :  { %v1287_v13 = vmul.f32 %v1270_v59, %v1265_v60  ;;  %v6642_v59 = vmul.f32 %v1393_v41, %v6505_v36  ;;  %v1403_v60 = vmul.f32 %v1389_v42, %v6507_v38  ;;  %v1326_v36 = vrot.slane %v5157_v43, %v6598_v5 }
 0x274   :  { %v1366_v38 = vrot.slane %v5158_v32, %v6594_v2 }
 0x275   :  { %v1254_v50 = vpop.permute.xlu0 %1253  ;;  %v1582_v25 = vpack.c.bf16 %v1287_v13, %v1243_v8 }
 0x276   :  { %v6573_v51 = vpop.permute.xlu1 %1496 }
 0x279   :  { %v6575_v52 = vpop.permute.xlu0 %1293 }
 0x27a   :  { %v1208_v53 = vpop.permute.xlu1 %1207 }
 0x27b   :  { %v1214_v3 = vsel %vm1213_vm15, %v1206_v44, %v1208_v53  ;;  %v1215_v23 = vsel %vm1213_vm15, %v1208_v53, %v1210_v46  ;;  %v1397_v44 = vrot.slane %v5159_v28, %v6598_v5 }
 0x27c   :  { %v1244_v17 = vmul.f32 %v1230_v61, %v1214_v3  ;;  %v1245_v30 = vmul.f32 %v1234_v19, %v1215_v23  ;;  %v1309_v61 = vsel %vm1301_vm5, 0.0, %v6575_v52 }
 0x27d   :  { %v6580_v55 = vpop.permute.xlu0 %1297  ;;  %v6650_v3 = vmul.f32 %v1397_v44, %v6510_v39  ;;  %v1331_v39 = vmul.f32 %v1314_v54, %v1309_v61 }
 0x27e   :  { %v1212_v58 = vpop.permute.xlu1 %1211 }
 0x27f   :  { %v1216_v21 = vsel %vm1213_vm15, %v1210_v46, %v1212_v58  ;;  %v1358_v46 = vrot.slane %v5158_v32, %v6497_v20  ;;  %v5160_v58 = vld [vmem:[%s8404_s26 + $0x5] ss:$8 sm:$0xf]  ;;  %vm2350_vm15 = vcmask 973824  }
 0x280   :  { %v1246_v29 = vmul.f32 %v1238_v14, %v1216_v21  ;;  %v1441_v19 = vrot.slane %v5160_v58, %v6598_v5 }
 0x281   :  { %v6600_v6 = vpop.permute.xlu0 %1337 }
 0x282   :  { %v1252_v10 = vpop.permute.xlu1 %1251 }
 0x283   :  { %v1258_v16 = vsel %vm1257_vm2, %v1250_v48, %v1252_v10  ;;  %v1259_v7 = vsel %vm1257_vm2, %v1252_v10, %v1254_v50 }
 0x284   :  { %v1288_v11 = vmul.f32 %v1274_v62, %v1258_v16  ;;  %v1289_v26 = vmul.f32 %v1278_v15, %v1259_v7  ;;  %v1318_v62 = vrot.slane %v5157_v43, %v6586_v57  ;;  %v1429_v15 = vrot.slane %v5160_v58, %v6497_v20 }
 0x285   :  { %v6610_v22 = vpop.permute.xlu0 %1341  ;;  %v1433_v16 = vrot.slane %v5160_v58, %v6586_v57  ;;  %v1370_v7 = vrot.slane %v5158_v32, %v6598_v5 }
 0x286   :  { %v1256_v24 = vpop.permute.xlu1 %1255  ;;  %v1583_v12 = vpack.c.bf16 %v1288_v11, %v1244_v17  ;;  %v1584_v40 = vpack.c.bf16 %v1289_v26, %v1245_v30 }
 0x287   :  { %v1260_v27 = vsel %vm1257_vm2, %v1254_v50, %v1256_v24  ;;  %v1353_v50 = vsel %vm1345_vm0, 0.0, %v6600_v6 }
 0x288   :  { %v1290_v1 = vmul.f32 %v1282_v18, %v1260_v27  ;;  %1660 = vmatprep.subr.bf16.mxu0 %v1583_v12  ;;  %v1375_v34 = vmul.f32 %v1358_v46, %v1353_v50 }
 0x289   :  { %1661 = vmatpush1.bf16.msra.mxu0 %v1582_v25  ;;  %v6617_v31 = vpop.permute.xlu0 %1500 }
 0x28a   :  { %v1296_v33 = vpop.permute.xlu1 %1295  ;;  %v1585_v35 = vpack.c.bf16 %v1290_v1, %v1246_v29  ;;  %v1586_v21 = vpack.c.bf16 %v1375_v34, %v1331_v39  ;;  %v5161_v29 = vld [vmem:[%s8404_s26 + $0x6] ss:$8 sm:$0xf] }
 0x28b   :  { %v1302_v10 = vsel %vm1301_vm5, %v6575_v52, %v1296_v33  ;;  %v1437_v52 = vrot.slane %v5160_v58, %v6594_v2  ;;  %v1303_v12 = vsel %vm1301_vm5, %v1296_v33, %v6580_v55  ;;  %v1473_v44 = vrot.slane %v5161_v29, %v6497_v20 }
 0x28c   :  { %1713 = vmatprep.subr.bf16.mxu1 %v1585_v35  ;;  %v1332_v11 = vmul.f32 %v1318_v62, %v1302_v10  ;;  %v1477_v54 = vrot.slane %v5161_v29, %v6586_v57 }
 0x28d   :  { %1714 = vmatpush1.bf16.msra.mxu1 %v1584_v40  ;;  %v6630_v48 = vpop.permute.xlu0 %1452  ;;  %v1333_v40 = vmul.f32 %v1322_v9, %v1303_v12 }
 0x28e   :  { %v1300_v53 = vpop.permute.xlu1 %1299 }
 0x28f   :  { %v1304_v23 = vsel %vm1301_vm5, %v6580_v55, %v1300_v53 }
 0x290   :  { %v1334_v37 = vmul.f32 %v1326_v36, %v1304_v23  ;;  %v5163_v36 = vld [vmem:[%s8404_s26 + $0x20] ss:$8 sm:$0xf] }
 0x291   :  { %v6656_v13 = vpop.permute.xlu0 %1540 }
 0x292   :  { %v1340_v14 = vpop.permute.xlu1 %1339 }
 0x293   :  { %v1346_v17 = vsel %vm1345_vm0, %v6600_v6, %v1340_v14  ;;  %v1347_v18 = vsel %vm1345_vm0, %v1340_v14, %v6610_v22  ;;  %v6673_v6 = vld [vmem:[%s8404_s26 + $0x7] ss:$8 sm:$0xf]  ;;  %s8409_s26 = smov 1  }
 0x294   :  { %v1376_v8 = vmul.f32 %v1362_v63, %v1346_v17  ;;  %v1377_v1 = vmul.f32 %v1366_v38, %v1347_v18  ;;  %v1521_v33 = vrot.slane %v6673_v6, %v6586_v57  ;;  %v1529_v63 = vrot.slane %v6673_v6, %v6598_v5 }
 0x295   :  { %v1411_v24 = vpop.permute.xlu0 %1410 }
 0x296   :  { %v1417_v25 = vsel %vm1416_vm3, %v6569_v47, %v1411_v24  ;;  %v1418_v26 = vsel %vm1416_vm3, %v1411_v24, %v6567_v45  ;;  %v1344_v27 = vpop.permute.xlu1 %1343  ;;  %v1587_v28 = vpack.c.bf16 %v1376_v8, %v1332_v11  ;;  %v1517_v47 = vrot.slane %v6673_v6, %v6497_v20 }
 0x297   :  { %v1446_v30 = vmul.f32 %v1429_v15, %v1417_v25  ;;  %v1447_v32 = vmul.f32 %v1433_v16, %v1418_v26  ;;  %v1348_v35 = vsel %vm1345_vm0, %v6610_v22, %v1344_v27  ;;  %v1588_v58 = vpack.c.bf16 %v1377_v1, %v1333_v40 }
 0x298   :  { %v1378_v55 = vmul.f32 %v1370_v7, %v1348_v35  ;;  %1662 = vmatprep.subr.bf16.mxu0 %v1587_v28  ;;  %v1561_v11 = vrot.slane %v5163_v36, %v6497_v20  ;;  %v1569_v28 = vrot.slane %v5163_v36, %v6594_v2 }
 0x299   :  { %v1590_v41 = vpack.c.bf16 %v1446_v30, %v6636_v56  ;;  %1663 = vmatpush1.bf16.msra.mxu0 %v1586_v21  ;;  %v1415_v42 = vpop.permute.xlu0 %1414  ;;  %v1591_v43 = vpack.c.bf16 %v1447_v32, %v1403_v60 }
 0x29a   :  { %v1419_v22 = vsel %vm1416_vm3, %v6567_v45, %v1415_v42  ;;  %v1424_v46 = vsel %vm1416_vm3, %v1415_v42, 0.0  ;;  %v1499_v50 = vpop.permute.xlu1 %1498  ;;  %v1589_v53 = vpack.c.bf16 %v1378_v55, %v1334_v37  ;;  %v1525_v45 = vrot.slane %v6673_v6, %v6594_v2  ;;  %v5619_v42 = vld [vmem:[%s8405_s0 + $0x40] sm:$0xff]  }
 0x29b   :  { %v1448_v61 = vmul.f32 %v1437_v52, %v1419_v22  ;;  %v1449_v62 = vmul.f32 %v1441_v19, %v1424_v46  ;;  %v1505_v56 = vsel %vm1504_vm4, %v6573_v51, %v1499_v50  ;;  %1664 = vmatprep.subr.bf16.mxu0 %v1591_v43  ;;  %v1506_v60 = vsel %vm1504_vm4, %v1499_v50, %v6617_v31  ;;  %v5620_v22 = vld [vmem:[%s8405_s0 + $0xc0] sm:$0xff]  }
 0x29c   :  { %1715 = vmatprep.subr.bf16.mxu1 %v1589_v53  ;;  %v1481_v51 = vrot.slane %v5161_v29, %v6594_v2  ;;  %v1534_v38 = vmul.f32 %v1517_v47, %v1505_v56  ;;  %v1535_v39 = vmul.f32 %v1521_v33, %v1506_v60  ;;  %v1565_v6 = vrot.slane %v5163_v36, %v6586_v57  ;;  %v5617_v50 = vld [vmem:[%s8406_s4] sm:$0xff]   ;;  %v5625_v56 = vld [vmem:[%s8405_s0 + $0x8] sm:$0xff]  }
 0x29d   :  { %v1592_v34 = vpack.c.bf16 %v1448_v61, %v6642_v59  ;;  %1665 = vmatpush1.bf16.msra.mxu0 %v1590_v41  ;;  %1716 = vmatpush1.bf16.msra.mxu1 %v1588_v58  ;;  %v1455_v9 = vpop.permute.xlu0 %1454  ;;  %v1593_v10 = vpack.c.bf16 %v1449_v62, %v6650_v3  ;;  %v1485_v59 = vrot.slane %v5161_v29, %v6598_v5  ;;  %v5622_v58 = vld [vmem:[%s8405_s0 + $0x80] sm:$0xff]   ;;  %v5623_v61 = vld [vmem:[%s8405_s0 + $0x48] sm:$0xff]  }
 0x29e   :  { %v1461_v14 = vsel %vm1460_vm6, %v6630_v48, %v1455_v9  ;;  %v1462_v15 = vsel %vm1460_vm6, %v1455_v9, %v6571_v49  ;;  %v1503_v16 = vpop.permute.xlu1 %1502  ;;  %v1573_v29 = vrot.slane %v5163_v36, %v6598_v5  ;;  %v5624_v62 = vld [vmem:[%s8405_s0 + $0xc8] sm:$0xff]   ;;  %v5630_v9 = vld [vmem:[%s8405_s0 + $0x90] sm:$0xff]   ;;  %v5633_v36 = vld [vmem:[%s8405_s0 + $0x18] sm:$0xff]  }
 0x29f   :  { %v1490_v17 = vmul.f32 %v1473_v44, %v1461_v14  ;;  %v1491_v7 = vmul.f32 %v1477_v54, %v1462_v15  ;;  %v1507_v3 = vsel %vm1504_vm4, %v6617_v31, %v1503_v16  ;;  %1717 = vmatprep.subr.bf16.mxu1 %v1593_v10  ;;  %v1512_v52 = vsel %vm1504_vm4, %v1503_v16, 0.0  ;;  %v5621_v54 = vld [vmem:[%s8405_s0] sm:$0xff]   ;;  %v5626_v60 = vld [vmem:[%s8405_s0 + $0x88] sm:$0xff]   ;;  %v5631_v10 = vld [vmem:[%s8405_s0 + $0x58] sm:$0xff]  }
 0x2a0   :  { %v1536_v19 = vmul.f32 %v1525_v45, %v1507_v3  ;;  %v1537_v31 = vmul.f32 %v1529_v63, %v1512_v52  ;;  %v5627_v45 = vld [vmem:[%s8405_s0 + $0x50] sm:$0xff]   ;;  %v5618_v63 = vld [vmem:[%s8406_s4 + $0x8] sm:$0xff]   ;;  %v5635_v14 = vld [vmem:[%s8405_s0 + $0x60] sm:$0xff]   ;;  %s8351_s4 = smov 120   ;;  %vm5738_vm4 = vmmov 0  }
 0x2a1   :  { %v1594_v18 = vpack.c.bf16 %v1534_v38, %v1490_v17  ;;  %1718 = vmatpush1.bf16.msra.mxu1 %v1592_v34  ;;  %v1459_v48 = vpop.permute.xlu0 %1458  ;;  %v1595_v8 = vpack.c.bf16 %v1535_v39, %v1491_v7  ;;  %v5629_v34 = vld [vmem:[%s8405_s0 + $0x10] sm:$0xff]   ;;  %v5634_v38 = vld [vmem:[%s8405_s0 + $0x98] sm:$0xff]   ;;  %v5636_v15 = vld [vmem:[%s8405_s0 + $0xe0] sm:$0xff]  }
 0x2a2   :  { %v1463_v21 = vsel %vm1460_vm6, %v6571_v49, %v1459_v48  ;;  %v1468_v23 = vsel %vm1460_vm6, %v1459_v48, 0.0  ;;  %v1543_v24 = vpop.permute.xlu1 %1542  ;;  %v5637_v16 = vld [vmem:[%s8405_s0 + $0x20] sm:$0xff]   ;;  %v5639_v39 = vld [vmem:[%s8405_s0 + $0x68] sm:$0xff]   ;;  %v5643_v52 = vld [vmem:[%s8405_s0 + $0x70] sm:$0xff]   ;;  %vm3971_vm6 = vcmask 255169  }
 0x2a3   :  { %v1492_v12 = vmul.f32 %v1481_v51, %v1463_v21  ;;  %v1493_v25 = vmul.f32 %v1485_v59, %v1468_v23  ;;  %v1549_v26 = vsel %vm1548_vm7, %v6656_v13, %v1543_v24  ;;  %1666 = vmatprep.subr.bf16.mxu0 %v1595_v8  ;;  %v5632_v51 = vld [vmem:[%s8405_s0 + $0xd8] sm:$0xff]   ;;  %v5638_v59 = vld [vmem:[%s8405_s0 + $0xa0] sm:$0xff]   ;;  %v5640_v17 = vld [vmem:[%s8405_s0 + $0xe8] sm:$0xff]  }
 0x2a4   :  { %v1578_v27 = vmul.f32 %v1561_v11, %v1549_v26  ;;  %1667 = vmatpush1.bf16.msra.mxu0 %v1594_v18  ;;  %v5641_v7 = vld [vmem:[%s8405_s0 + $0x28] sm:$0xff]   ;;  %v5644_v11 = vld [vmem:[%s8405_s0 + $0xf0] sm:$0xff]   ;;  %v5647_v8 = vld [vmem:[%s8405_s0 + $0x78] sm:$0xff]  }
 0x2a5   :  { %v1596_v1 = vpack.c.bf16 %v1536_v19, %v1492_v12  ;;  %v1545_v49 = vpop.permute.xlu0 %1544  ;;  %v1597_v30 = vpack.c.bf16 %v1537_v31, %v1493_v25  ;;  %v5642_v3 = vld [vmem:[%s8405_s0 + $0xa8] sm:$0xff]   ;;  %v5645_v18 = vld [vmem:[%s8405_s0 + $0x30] sm:$0xff]   ;;  %v5648_v19 = vld [vmem:[%s8405_s0 + $0xf8] sm:$0xff]  }
 0x2a6   :  { %v1550_v32 = vsel %vm1548_vm7, %v1543_v24, %v1545_v49  ;;  %v1547_v35 = vpop.permute.xlu1 %1546  ;;  %v1598_v37 = vpack.c.bf16 %v1578_v27, %v1578_v27  ;;  %v5646_v48 = vld [vmem:[%s8405_s0 + $0xb0] sm:$0xff]   ;;  %v5649_v21 = vld [vmem:[%s8405_s0 + $0x38] sm:$0xff]  }
 0x2a7   :  { %v1579_v55 = vmul.f32 %v1565_v6, %v1550_v32  ;;  %v1551_v47 = vsel %vm1548_vm7, %v1545_v49, %v1547_v35  ;;  %v1556_v33 = vsel %vm1548_vm7, %v1547_v35, 0.0  ;;  %1719 = vmatprep.subr.bf16.mxu1 %v1597_v30  ;;  %v5650_v23 = vld [vmem:[%s8405_s0 + $0xb8] sm:$0xff]   ;;  %vm3443_vm7 = vcmask 123969  }
 0x2a8   :  { %v1580_v13 = vmul.f32 %v1569_v28, %v1551_v47  ;;  %v1581_v40 = vmul.f32 %v1573_v29, %v1556_v33  ;;  %1720 = vmatpush1.bf16.msra.mxu1 %v1596_v1  ;;  %v1649_v46 = vsel %vm1647_vm8, %v1598_v37, 0 }
 0x2a9   :  { %v1599_v41 = vpack.c.bf16 %v1579_v55, %v1579_v55 }
 0x2aa   :  { %v1600_v43 = vpack.c.bf16 %v1580_v13, %v1580_v13  ;;  %v1601_v44 = vpack.c.bf16 %v1581_v40, %v1581_v40 }
 0x2ab   :  { %5166 = vmatprep.subr.msk.bf16.mxu0 %vm1647_vm8, %v1599_v41 }
 0x2ac   :  { %5169 = vmatprep.subr.msk.bf16.mxu1 %vm1647_vm8, %v1601_v44  ;;  %1669 = vmatpush1.bf16.msra.mxu0 %v1649_v46  ;;  %v1655_v53 = vsel %vm1647_vm8, %v1600_v43, 0  ;;  %vm3948_vm8 = vcmask 188544  }
 0x2ad   :  { %1722 = vmatpush1.bf16.msra.mxu1 %v1655_v53  ;;  %5275 = vmatprep.subr.bf16.mxu0 %v5619_v42 }
 0x2ae   :  { %5303 = vmatprep.subr.bf16.mxu1 %v5620_v22 }
 0x2af   :  { %5167 = vmatmul.mubr.msk.bf16.vlgmr.msra.gmra.mrb[4].mxu0 %vm1640_vm12, %v5617_v50 }
 0x2b0   :  { %5170 = vmatmul.mubr.msk.bf16.vlgmr.msra.gmra.mrb[4].mxu1 %vm1640_vm12, %v5617_v50  ;;  %1702 = vmatprep.mubr.bf16.mxu0 %v5721_v0 }
 0x2b1   :  { %1755 = vmatprep.mubr.bf16.mxu1 %v5721_v0  ;;  %5276 = vmatpush3.bf16.msra.mxu0 %v5621_v54  ;;  %v5628_v0 = vld [vmem:[%s8405_s0 + $0xd0] sm:$0xff]  }
 0x2b2   :  { %5304 = vmatpush3.bf16.msra.mxu1 %v5622_v58  ;;  %5277 = vmatprep.subr.bf16.mxu0 %v5623_v61 }
 0x2b3   :  { %5305 = vmatprep.subr.bf16.mxu1 %v5624_v62 }
 0x2b5   :  { %5278 = vmatpush3.bf16.msra.mxu0 %v5625_v56 }
 0x2b6   :  { %5306 = vmatpush3.bf16.msra.mxu1 %v5626_v60  ;;  %5279 = vmatprep.subr.bf16.mxu0 %v5627_v45  ;;  %v1613_v24 = vpop.permute.xlu0 %1612 }
 0x2b7   :  { %5168 = vmatmul.mubr.msk.bf16.gmra.mrb[8].mxu0 %vm1640_vm12, %v5618_v63  ;;  %5307 = vmatprep.subr.bf16.mxu1 %v5628_v0  ;;  %v1618_v6 = vpop.permute.xlu1 %1617 }
 0x2b8   :  { %5171 = vmatmul.mubr.msk.bf16.gmra.mrb[8].mxu1 %vm1640_vm12, %v5618_v63  ;;  %vm3422_vm12 = vcmask 57344  }
 0x2b9   :  { %5280 = vmatpush3.bf16.msra.mxu0 %v5629_v34 }
 0x2ba   :  { %5308 = vmatpush3.bf16.msra.mxu1 %v5630_v9  ;;  %5281 = vmatprep.subr.bf16.mxu0 %v5631_v10  ;;  %v1623_v22 = vpop.permute.xlu0 %1622 }
 0x2bb   :  { %5309 = vmatprep.subr.bf16.mxu1 %v5632_v51  ;;  %v1628_v54 = vpop.permute.xlu1 %1627 }
 0x2bd   :  { %5282 = vmatpush3.bf16.msra.mxu0 %v5633_v36 }
 0x2be   :  { %5310 = vmatpush3.bf16.msra.mxu1 %v5634_v38  ;;  %5283 = vmatprep.subr.bf16.mxu0 %v5635_v14 }
 0x2bf   :  { %5311 = vmatprep.subr.bf16.mxu1 %v5636_v15 }
 0x2c1   :  { %5284 = vmatpush3.bf16.msra.mxu0 %v5637_v16 }
 0x2c2   :  { %5312 = vmatpush3.bf16.msra.mxu1 %v5638_v59  ;;  %5285 = vmatprep.subr.bf16.mxu0 %v5639_v39 }
 0x2c3   :  { %5313 = vmatprep.subr.bf16.mxu1 %v5640_v17 }
 0x2c5   :  { %5286 = vmatpush3.bf16.msra.mxu0 %v5641_v7 }
 0x2c6   :  { %5314 = vmatpush3.bf16.msra.mxu1 %v5642_v3  ;;  %5287 = vmatprep.subr.bf16.mxu0 %v5643_v52 }
 0x2c7   :  { %5315 = vmatprep.subr.bf16.mxu1 %v5644_v11 }
 0x2c9   :  { %5288 = vmatpush3.bf16.msra.mxu0 %v5645_v18 }
 0x2ca   :  { %5316 = vmatpush3.bf16.msra.mxu1 %v5646_v48  ;;  %5289 = vmatprep.subr.bf16.mxu0 %v5647_v8 }
 0x2cb   :  { %5317 = vmatprep.subr.bf16.mxu1 %v5648_v19 }
 0x2cd   :  { %5290 = vmatpush3.bf16.msra.mxu0 %v5649_v21 }
 0x2ce   :  { %5318 = vmatpush3.bf16.msra.mxu1 %v5650_v23 }
 0x382   :  { %v1694_v31 = vpop.f32.mrb[4].mxu0 }
 0x383   :  { %v1695_v12 = vadd.f32 %v1694_v31, %v1613_v24  ;;  %v1747_v25 = vpop.f32.mrb[4].mxu1  ;;  %v1696_v26 = vpop.f32.mrb[5].mxu0 }
 0x384   :  { %v1748_v27 = vadd.f32 %v1747_v25, %v1613_v24  ;;  %v1697_v28 = vadd.f32 %v1696_v26, %v1613_v24  ;;  %v1749_v29 = vpop.f32.mrb[5].mxu1  ;;  %v1698_v1 = vpop.f32.mrb[6].mxu0 }
 0x385   :  { %v1750_v49 = vadd.f32 %v1749_v29, %v1613_v24  ;;  %v1699_v30 = vadd.f32 %v1698_v1, %v1618_v6  ;;  %v1751_v32 = vpop.f32.mrb[6].mxu1  ;;  %v1700_v35 = vpop.f32.mrb[7].mxu0  ;;  %v1766_v33 = vmax.f32 %v1695_v12, 0.0 }
 0x386   :  { %v1752_v37 = vadd.f32 %v1751_v32, %v1618_v6  ;;  %v1701_v55 = vadd.f32 %v1700_v35, %v1618_v6  ;;  %v1753_v47 = vpop.f32.mrb[7].mxu1  ;;  %v1768_v41 = vmax.f32 %v1748_v27, 0.0  ;;  %v1767_v42 = vmax.f32 %v1697_v28, 0.0 }
 0x387   :  { %v1770_v13 = vmax.f32 %v1699_v30, 0.0  ;;  %v1754_v40 = vadd.f32 %v1753_v47, %v1618_v6  ;;  %v1769_v46 = vmax.f32 %v1750_v49, 0.0 }
 0x388   :  { %v1772_v43 = vmax.f32 %v1752_v37, 0.0  ;;  %v1771_v44 = vmax.f32 %v1701_v55, 0.0  ;;  %v5208_v37 = vld [vmem:[%s8407_s1 + $0x4] ss:$0 sm:$0xff] }
 0x389   :  { %v1782_v50 = vpack.c.bf16 %v1770_v13, %v1766_v33  ;;  %v1773_v53 = vmax.f32 %v1754_v40, 0.0 }
 0x38a   :  { %v1784_v58 = vpack.c.bf16 %v1772_v43, %v1768_v41  ;;  %v1783_v61 = vpack.c.bf16 %v1771_v44, %v1767_v42  ;;  %v1704_v62 = vpop.f32.mrb[8].mxu0 }
 0x38b   :  { %v1785_v56 = vpack.c.bf16 %v1773_v53, %v1769_v46  ;;  %v1705_v60 = vadd.f32 %v1704_v62, %v1623_v22  ;;  %v1757_v45 = vpop.f32.mrb[8].mxu1  ;;  %v1706_v63 = vpop.f32.mrb[9].mxu0 }
 0x38c   :  { %v1758_v0 = vadd.f32 %v1757_v45, %v1623_v22  ;;  %v1707_v34 = vadd.f32 %v1706_v63, %v1623_v22  ;;  %v1759_v9 = vpop.f32.mrb[9].mxu1  ;;  %v1708_v10 = vpop.f32.mrb[10].mxu0  ;;  %2078 = vmatprep.mubr.bf16.mxu0 %v1783_v61 }
 0x38d   :  { %v1760_v51 = vadd.f32 %v1759_v9, %v1623_v22  ;;  %v1709_v36 = vadd.f32 %v1708_v10, %v1628_v54  ;;  %v1761_v38 = vpop.f32.mrb[10].mxu1  ;;  %2127 = vmatprep.mubr.bf16.mxu1 %v1785_v56  ;;  %v1710_v14 = vpop.f32.mrb[11].mxu0  ;;  %2079 = vmatmul.mubr.bf16.vlgmr.msra.gmra.mrb[12].mxu0 %v1782_v50  ;;  %v1774_v39 = vmax.f32 %v1705_v60, 0.0  ;;  %v2397_v9 = vld [vmem:[%s8321_s8] sm:$0xff]  ;;  %v2398_v10 = vld [vmem:[%s8321_s8 + $0x8] sm:$0xff] }
 0x38e   :  { %v1762_v15 = vadd.f32 %v1761_v38, %v1628_v54  ;;  %v1711_v16 = vadd.f32 %v1710_v14, %v1628_v54  ;;  %v1763_v59 = vpop.f32.mrb[11].mxu1  ;;  %2128 = vmatmul.mubr.bf16.vlgmr.msra.gmra.mrb[12].mxu1 %v1784_v58  ;;  %v1776_v3 = vmax.f32 %v1758_v0, 0.0  ;;  %v1775_v52 = vmax.f32 %v1707_v34, 0.0  ;;  %v5653_v0 = vld [vmem:[%s8408_s5 + $0x4] ss:$12 sps:$4 sm:$0xff]   ;;  %v2402_v14 = vld [vmem:[%s8321_s8 + $0x28] sm:$0xff] }
 0x38f   :  { %v1778_v17 = vmax.f32 %v1709_v36, 0.0  ;;  %v1764_v7 = vadd.f32 %v1763_v59, %v1628_v54  ;;  %v1777_v48 = vmax.f32 %v1760_v51, 0.0  ;;  %v5657_v34 = vld [vmem:[%s8408_s5 + $0x8] ss:$12 sps:$4 sm:$0xff]   ;;  %v2400_v36 = vld [vmem:[%s8321_s8 + $0x18] sm:$0xff]  ;;  %v2401_v38 = vld [vmem:[%s8321_s8 + $0x20] sm:$0xff] }
 0x390   :  { %v1780_v11 = vmax.f32 %v1762_v15, 0.0  ;;  %v1779_v18 = vmax.f32 %v1711_v16, 0.0  ;;  %v2399_v51 = vld [vmem:[%s8321_s8 + $0x10] sm:$0xff]  ;;  %v2404_v16 = vld [vmem:[%s8321_s8 + $0x38] sm:$0xff]  ;;  %v2668_v59 = vld [vmem:[%s8322_s10] sm:$0xff] }
 0x391   :  { %v1786_v8 = vpack.c.bf16 %v1778_v17, %v1774_v39  ;;  %v1781_v19 = vmax.f32 %v1764_v7, 0.0  ;;  %v2403_v15 = vld [vmem:[%s8321_s8 + $0x30] sm:$0xff]  ;;  %v2669_v39 = vld [vmem:[%s8322_s10 + $0x8] sm:$0xff]  ;;  %v2671_v7 = vld [vmem:[%s8322_s10 + $0x18] sm:$0xff] }
 0x392   :  { %v1788_v21 = vpack.c.bf16 %v1780_v11, %v1776_v3  ;;  %v1787_v23 = vpack.c.bf16 %v1779_v18, %v1775_v52  ;;  %v2670_v17 = vld [vmem:[%s8322_s10 + $0x10] sm:$0xff]  ;;  %v2672_v3 = vld [vmem:[%s8322_s10 + $0x20] sm:$0xff]  ;;  %v2673_v52 = vld [vmem:[%s8322_s10 + $0x28] sm:$0xff] }
 0x393   :  { %v1789_v24 = vpack.c.bf16 %v1781_v19, %v1777_v48  ;;  %v2674_v11 = vld [vmem:[%s8322_s10 + $0x30] sm:$0xff]  ;;  %v2675_v18 = vld [vmem:[%s8322_s10 + $0x38] sm:$0xff]  ;;  %v2834_v48 = vld [vmem:[%s8323_s12] sm:$0xff]  ;;  %s5745_s10 = smov 5  }
 0x394   :  { %2086 = vmatprep.mubr.bf16.mxu0 %v1787_v23  ;;  %v2836_v19 = vld [vmem:[%s8323_s12 + $0x10] sm:$0xff]  ;;  %v2838_v23 = vld [vmem:[%s8323_s12 + $0x20] sm:$0xff] }
 0x395   :  { %2135 = vmatprep.mubr.bf16.mxu1 %v1789_v24  ;;  %2087 = vmatmul.mubr.bf16.gmra.mrb[16].mxu0 %v1786_v8  ;;  %v2835_v8 = vld [vmem:[%s8323_s12 + $0x8] sm:$0xff] }
 0x396   :  { %2136 = vmatmul.mubr.bf16.gmra.mrb[16].mxu1 %v1788_v21  ;;  %2550 = vmatprep.mubr.bf16.mxu0 %v5653_v0  ;;  %v2837_v21 = vld [vmem:[%s8323_s12 + $0x18] sm:$0xff]  ;;  %v2839_v24 = vld [vmem:[%s8323_s12 + $0x28] sm:$0xff] }
 0x397   :  { %5439 = vmatprep.mubr.msk.bf16.mxu1 %vm2505_vm11, %v5657_v34  ;;  %v5205_v34 = vld [vmem:[%s8407_s1 + $0x1] ss:$0 sm:$0xff] }
 0x460   :  { %v5291_v6 = vpop.f32.mrb[12].mxu0 }
 0x461   :  { %v5319_v31 = vpop.f32.mrb[12].mxu1  ;;  %v5292_v12 = vpop.f32.mrb[13].mxu0 }
 0x462   :  { %v5293_v25 = vadd.f32 %v5292_v12, %v5291_v6  ;;  %v5320_v26 = vpop.f32.mrb[13].mxu1  ;;  %v5294_v27 = vpop.f32.mrb[14].mxu0  ;;  %v2840_v6 = vld [vmem:[%s8323_s12 + $0x30] sm:$0xff]  ;;  %v3125_v12 = vld [vmem:[%s8324_s15] sm:$0x3]  ;;  %s8434_s15 = smov 120  }
 0x463   :  { %v5321_v28 = vadd.f32 %v5320_v26, %v5319_v31  ;;  %v5322_v29 = vpop.f32.mrb[14].mxu1  ;;  %v5295_v1 = vpop.f32.mrb[15].mxu0  ;;  %v2841_v31 = vld [vmem:[%s8323_s12 + $0x38] sm:$0xff]  ;;  %v5204_v26 = vld [vmem:[%s8407_s1] ss:$0 sm:$0xff] }
 0x464   :  { %v5296_v49 = vadd.f32 %v5295_v1, %v5294_v27  ;;  %v5323_v30 = vpop.f32.mrb[15].mxu1 }
 0x465   :  { %v2130_v32 = vadd.f32 %v5321_v28, %v5293_v25  ;;  %v5324_v35 = vadd.f32 %v5323_v30, %v5322_v29 }
 0x467   :  { %v2133_v55 = vadd.f32 %v5324_v35, %v5296_v49  ;;  %2149 = vrot.lane.b32.xlu0 %v2130_v32, %s8347_s24  ;;  %v2256_v40 = vmul.f32 %v5208_v37, %v2130_v32 }
 0x468   :  { %v5297_v47 = vpop.f32.mrb[16].mxu0 }
 0x469   :  { %v5325_v33 = vpop.f32.mrb[16].mxu1  ;;  %2151 = vrot.lane.b32.xlu1 %v2133_v55, %s8347_s24  ;;  %v5298_v13 = vpop.f32.mrb[17].mxu0  ;;  %v2257_v41 = vmul.f32 %v5208_v37, %v2133_v55 }
 0x46a   :  { %v5299_v42 = vadd.f32 %v5298_v13, %v5297_v47  ;;  %v5326_v43 = vpop.f32.mrb[17].mxu1  ;;  %v5300_v44 = vpop.f32.mrb[18].mxu0 }
 0x46b   :  { %v5327_v22 = vadd.f32 %v5326_v43, %v5325_v33  ;;  %v5328_v46 = vpop.f32.mrb[18].mxu1  ;;  %2261 = vrot.lane.b32.xlu0 %v2130_v32, %s8349_s6  ;;  %v5301_v50 = vpop.f32.mrb[19].mxu0  ;;  %v2371_v53 = vpack.c.bf16 %v2257_v41, %v2256_v40 }
 0x46c   :  { %v5302_v54 = vadd.f32 %v5301_v50, %v5300_v44  ;;  %v5329_v58 = vpop.f32.mrb[19].mxu1 }
 0x46d   :  { %v2138_v61 = vadd.f32 %v5327_v22, %v5299_v42  ;;  %v5330_v62 = vadd.f32 %v5329_v58, %v5328_v46  ;;  %2263 = vrot.lane.b32.xlu1 %v2133_v55, %s8349_s6  ;;  %5331 = vmatprep.subr.bf16.mxu0 %v2371_v53  ;;  %v5209_v53 = vld [vmem:[%s8407_s1 + $0x5] ss:$0 sm:$0xff] }
 0x46f   :  { %v2141_v56 = vadd.f32 %v5330_v62, %v5302_v54  ;;  %2175 = vrot.lane.b32.xlu0 %v2130_v32, %s5732_s27  ;;  %v6846_v60 = vmul.f32 %v5208_v37, %v2138_v61 }
 0x471   :  { %2177 = vrot.lane.b32.xlu1 %v2133_v55, %s5732_s27  ;;  %v6849_v45 = vmul.f32 %v5208_v37, %v2141_v56 }
 0x473   :  { %2286 = vrot.lane.b32.xlu0 %v2130_v32, %s8353_s7  ;;  %v2372_v63 = vpack.c.bf16 %v6849_v45, %v6846_v60 }
 0x475   :  { %2288 = vrot.lane.b32.xlu1 %v2133_v55, %s8353_s7 }
 0x477   :  { %2201 = vrot.lane.b32.xlu0 %v2130_v32, %s8345_s28 }
 0x479   :  { %2203 = vrot.lane.b32.xlu1 %v2133_v55, %s8345_s28 }
 0x47b   :  { %2312 = vrot.lane.b32.xlu0 %v2130_v32, %s8351_s4 }
 0x47d   :  { %2314 = vrot.lane.b32.xlu1 %v2133_v55, %s8351_s4 }
 0x47f   :  { %2227 = vrot.lane.b32.xlu0 %v2130_v32, %s8355_s3 }
 0x481   :  { %2229 = vrot.lane.b32.xlu1 %v2133_v55, %s8355_s3 }
 0x483   :  { %2153 = vrot.lane.b32.xlu0 %v2138_v61, %s8347_s24 }
 0x485   :  { %2155 = vrot.lane.b32.xlu1 %v2141_v56, %s8347_s24 }
 0x487   :  { %2265 = vrot.lane.b32.xlu0 %v2138_v61, %s8349_s6 }
 0x489   :  { %2267 = vrot.lane.b32.xlu1 %v2141_v56, %s8349_s6 }
 0x48b   :  { %2179 = vrot.lane.b32.xlu0 %v2138_v61, %s5732_s27 }
 0x48d   :  { %2181 = vrot.lane.b32.xlu1 %v2141_v56, %s5732_s27 }
 0x48f   :  { %2290 = vrot.lane.b32.xlu0 %v2138_v61, %s8353_s7 }
 0x491   :  { %2292 = vrot.lane.b32.xlu1 %v2141_v56, %s8353_s7 }
 0x493   :  { %2205 = vrot.lane.b32.xlu0 %v2138_v61, %s8345_s28 }
 0x495   :  { %2207 = vrot.lane.b32.xlu1 %v2141_v56, %s8345_s28 }
 0x497   :  { %2316 = vrot.lane.b32.xlu0 %v2138_v61, %s8351_s4 }
 0x499   :  { %2318 = vrot.lane.b32.xlu1 %v2141_v56, %s8351_s4  ;;  %s5743_s4 = smov 2  }
 0x49b   :  { %2231 = vrot.lane.b32.xlu0 %v2138_v61, %s8355_s3 }
 0x49d   :  { %2233 = vrot.lane.b32.xlu1 %v2141_v56, %s8355_s3 }
 0x49f   :  { %2338 = vrot.lane.b32.xlu0 %v2130_v32, %s5736_s25 }
 0x4a1   :  { %2340 = vrot.lane.b32.xlu1 %v2133_v55, %s5736_s25 }
 0x4a3   :  { %2342 = vrot.lane.b32.xlu0 %v2138_v61, %s5736_s25 }
 0x4a5   :  { %2344 = vrot.lane.b32.xlu1 %v2141_v56, %s5736_s25  ;;  %s8410_s25 = smov 121  }
 0x4a7   :  { %2407 = vperm.xlu0 %5609, %v2397_v9  }
 0x4a9   :  { %2412 = vperm.xlu1 %5610, %v2398_v10  }
 0x4ab   :  { %2417 = vperm.xlu0 %5609, %v2399_v51  }
 0x4ad   :  { %2422 = vperm.xlu1 %5610, %v2400_v36  }
 0x4af   :  { %2427 = vperm.xlu0 %5609, %v2401_v38  }
 0x4b1   :  { %2432 = vperm.xlu1 %5610, %v2402_v14  }
 0x4b3   :  { %2437 = vperm.xlu0 %5609, %v2403_v15  }
 0x4b5   :  { %2442 = vperm.xlu1 %5610, %v2404_v16  }
 0x4b7   :  { %2678 = vperm.xlu0 %5609, %v2668_v59  }
 0x4b9   :  { %2683 = vperm.xlu1 %5610, %v2669_v39  }
 0x4bb   :  { %2688 = vperm.xlu0 %5609, %v2670_v17  }
 0x4bd   :  { %2693 = vperm.xlu1 %5610, %v2671_v7  }
 0x4bf   :  { %2698 = vperm.xlu0 %5609, %v2672_v3  }
 0x4c1   :  { %2703 = vperm.xlu1 %5610, %v2673_v52  }
 0x4c3   :  { %2708 = vperm.xlu0 %5609, %v2674_v11   ;;  %v5210_v11 = vld [vmem:[%s8407_s1 + $0x6] ss:$0 sm:$0xff] }
 0x4c5   :  { %2713 = vperm.xlu1 %5610, %v2675_v18  }
 0x4c7   :  { %2844 = vperm.xlu0 %5609, %v2834_v48  }
 0x4c9   :  { %2849 = vperm.xlu1 %5610, %v2835_v8  }
 0x4cb   :  { %2854 = vperm.xlu0 %5609, %v2836_v19  }
 0x4cd   :  { %2859 = vperm.xlu1 %5610, %v2837_v21  }
 0x4cf   :  { %2864 = vperm.xlu0 %5609, %v2838_v23  }
 0x4d1   :  { %2869 = vperm.xlu1 %5610, %v2839_v24  }
 0x4d3   :  { %2874 = vperm.xlu0 %5609, %v2840_v6  }
 0x4d5   :  { %2879 = vperm.xlu1 %5610, %v2841_v31  }
 0x4d7   :  { %3128 = vperm.xlu0 %5609, %v3125_v12  }
 0x4d9   :  { %v2150_v25 = vpop.permute.xlu0 %2149 }
 0x4da   :  { %v2162_v27 = vsel %vm2161_vm9, 0.0, %v2150_v25  ;;  %v5206_v25 = vld [vmem:[%s8407_s1 + $0x2] ss:$0 sm:$0xff] }
 0x4db   :  { %v2152_v28 = vpop.permute.xlu1 %2151  ;;  %v2170_v1 = vmul.f32 %v5204_v26, %v2162_v27 }
 0x4dc   :  { %v2163_v29 = vsel %vm2161_vm9, 0.0, %v2152_v28 }
 0x4dd   :  { %v2171_v49 = vmul.f32 %v5204_v26, %v2163_v29  ;;  %v2262_v30 = vpop.permute.xlu0 %2261 }
 0x4de   :  { %v2273_v54 = vsel %vm1416_vm3, %v2262_v30, 0.0 }
 0x4df   :  { %v2363_v32 = vpack.c.bf16 %v2171_v49, %v2170_v1  ;;  %v2264_v35 = vpop.permute.xlu1 %2263  ;;  %v2281_v0 = vmul.f32 %v5209_v53, %v2273_v54 }
 0x4e0   :  { %v2274_v22 = vsel %vm1416_vm3, %v2264_v35, 0.0 }
 0x4e1   :  { %v2176_v37 = vpop.permute.xlu0 %2175  ;;  %5332 = vmatpush3.bf16.msra.mxu0 %v2363_v32  ;;  %v2282_v61 = vmul.f32 %v5209_v53, %v2274_v22 }
 0x4e2   :  { %5333 = vmatprep.subr.bf16.mxu0 %v2372_v63  ;;  %v2188_v9 = vsel %vm2187_vm13, 0.0, %v2176_v37 }
 0x4e3   :  { %v2178_v55 = vpop.permute.xlu1 %2177  ;;  %v2373_v15 = vpack.c.bf16 %v2282_v61, %v2281_v0  ;;  %v2196_v16 = vmul.f32 %v5205_v34, %v2188_v9 }
 0x4e4   :  { %v2189_v62 = vsel %vm2187_vm13, 0.0, %v2178_v55 }
 0x4e5   :  { %v2287_v47 = vpop.permute.xlu0 %2286  ;;  %v2197_v51 = vmul.f32 %v5205_v34, %v2189_v62 }
 0x4e6   :  { %v2299_v18 = vsel %vm2298_vm10, %v2287_v47, 0.0 }
 0x4e7   :  { %v2289_v33 = vpop.permute.xlu1 %2288  ;;  %v2365_v52 = vpack.c.bf16 %v2197_v51, %v2196_v16  ;;  %v2307_v12 = vmul.f32 %v5210_v11, %v2299_v18 }
 0x4e8   :  { %v2300_v59 = vsel %vm2298_vm10, %v2289_v33, 0.0 }
 0x4e9   :  { %v2202_v13 = vpop.permute.xlu0 %2201  ;;  %v2308_v19 = vmul.f32 %v5210_v11, %v2300_v59 }
 0x4eb   :  { %v2204_v40 = vpop.permute.xlu1 %2203  ;;  %v2375_v30 = vpack.c.bf16 %v2308_v19, %v2307_v12 }
 0x4ec   :  { %v2215_v21 = vsel %vm2213_vm14, 0.0, %v2204_v40  ;;  %v5211_v40 = vld [vmem:[%s8407_s1 + $0x7] ss:$0 sm:$0xff] }
 0x4ed   :  { %v6965_v41 = vpop.permute.xlu0 %2312  ;;  %v2223_v28 = vmul.f32 %v5206_v25, %v2215_v21 }
 0x4ee   :  { %v2325_v22 = vsel %vm2324_vm1, %v6965_v41, 0.0 }
 0x4ef   :  { %v2315_v42 = vpop.permute.xlu1 %2314 }
 0x4f0   :  { %v2326_v35 = vsel %vm2324_vm1, %v2315_v42, 0.0 }
 0x4f1   :  { %v6967_v43 = vpop.permute.xlu0 %2227 }
 0x4f2   :  { %v2239_v41 = vsel %vm1345_vm0, 0.0, %v6967_v43 }
 0x4f3   :  { %v6969_v44 = vpop.permute.xlu1 %2229 }
 0x4f4   :  { %v2240_v42 = vsel %vm1345_vm0, 0.0, %v6969_v44 }
 0x4f5   :  { %v2154_v46 = vpop.permute.xlu0 %2153 }
 0x4f6   :  { %v2164_v50 = vsel %vm2161_vm9, 0.0, %v2154_v46 }
 0x4f7   :  { %v2156_v58 = vpop.permute.xlu1 %2155  ;;  %v2172_v60 = vmul.f32 %v5204_v26, %v2164_v50 }
 0x4f8   :  { %v2165_v56 = vsel %vm2161_vm9, 0.0, %v2156_v58 }
 0x4f9   :  { %v2173_v45 = vmul.f32 %v5204_v26, %v2165_v56  ;;  %v2266_v63 = vpop.permute.xlu0 %2265  ;;  %v2214_v26 = vsel %vm2213_vm14, 0.0, %v2202_v13  ;;  %v2333_v56 = vmul.f32 %v5211_v40, %v2325_v22 }
 0x4fa   :  { %v2275_v10 = vsel %vm1416_vm3, %v2266_v63, 0.0  ;;  %v2222_v32 = vmul.f32 %v5206_v25, %v2214_v26 }
 0x4fb   :  { %v2364_v36 = vpack.c.bf16 %v2173_v45, %v2172_v60  ;;  %v2268_v38 = vpop.permute.xlu1 %2267  ;;  %v2283_v39 = vmul.f32 %v5209_v53, %v2275_v10  ;;  %v5207_v60 = vld [vmem:[%s8407_s1 + $0x3] ss:$0 sm:$0xff] }
 0x4fc   :  { %v2276_v14 = vsel %vm1416_vm3, %v2268_v38, 0.0  ;;  %v2367_v13 = vpack.c.bf16 %v2223_v28, %v2222_v32  ;;  %v2248_v63 = vmul.f32 %v5207_v60, %v2240_v42  ;;  %v2247_v10 = vmul.f32 %v5207_v60, %v2239_v41  ;;  %v5661_v32 = vld [vmem:[%s8408_s5 + $0x30] ss:$12 sps:$4 sm:$0xff]  }
 0x4fd   :  { %v2284_v17 = vmul.f32 %v5209_v53, %v2276_v14  ;;  %v2180_v7 = vpop.permute.xlu0 %2179  ;;  %5334 = vmatpush3.bf16.msra.mxu0 %v2364_v36  ;;  %v2334_v53 = vmul.f32 %v5211_v40, %v2326_v35  ;;  %v5663_v35 = vld [vmem:[%s8408_s5 + $0x50] ss:$12 sps:$4 sm:$0xff]   ;;  %vm2736_vm3 = vcmask 523264  }
 0x4fe   :  { %v2190_v3 = vsel %vm2187_vm13, 0.0, %v2180_v7  ;;  %5335 = vmatprep.subr.bf16.mxu0 %v2373_v15  ;;  %v2369_v15 = vpack.c.bf16 %v2248_v63, %v2247_v10 }
 0x4ff   :  { %v2182_v48 = vpop.permute.xlu1 %2181  ;;  %v2374_v8 = vpack.c.bf16 %v2284_v17, %v2283_v39  ;;  %v2198_v24 = vmul.f32 %v5205_v34, %v2190_v3  ;;  %v2377_v9 = vpack.c.bf16 %v2334_v53, %v2333_v56  ;;  %v5212_v3 = vld [vmem:[%s8407_s1 + $0x8] ss:$0 sm:$0xff]  ;;  %s5744_s1 = smov 3  }
 0x500   :  { %v2191_v23 = vsel %vm2187_vm13, 0.0, %v2182_v48 }
 0x501   :  { %v2199_v6 = vmul.f32 %v5205_v34, %v2191_v23  ;;  %v2291_v31 = vpop.permute.xlu0 %2290  ;;  %5336 = vmatpush3.bf16.msra.mxu0 %v2365_v52 }
 0x502   :  { %v2301_v27 = vsel %vm2298_vm10, %v2291_v31, 0.0  ;;  %5337 = vmatprep.subr.bf16.mxu0 %v2374_v8  ;;  %v5651_v8 = vld [vmem:[%s8408_s5] ss:$12 sps:$4 sm:$0xff]  }
 0x503   :  { %v2366_v29 = vpack.c.bf16 %v2199_v6, %v2198_v24  ;;  %v2293_v1 = vpop.permute.xlu1 %2292  ;;  %v2309_v37 = vmul.f32 %v5210_v11, %v2301_v27  ;;  %v5654_v24 = vld [vmem:[%s8408_s5 + $0x1c] ss:$12 sps:$4 sm:$0xff]  }
 0x504   :  { %v2302_v49 = vsel %vm2298_vm10, %v2293_v1, 0.0  ;;  %v5658_v1 = vld [vmem:[%s8408_s5 + $0x20] ss:$12 sps:$4 sm:$0xff]  }
 0x505   :  { %v2310_v55 = vmul.f32 %v5210_v11, %v2302_v49  ;;  %v2206_v47 = vpop.permute.xlu0 %2205  ;;  %5338 = vmatpush3.bf16.msra.mxu0 %v2366_v29  ;;  %v5656_v29 = vld [vmem:[%s8408_s5 + $0x18] ss:$12 sps:$4 sm:$0xff]   ;;  %v5659_v49 = vld [vmem:[%s8408_s5 + $0x34] ss:$12 sps:$4 sm:$0xff]  }
 0x506   :  { %v2216_v33 = vsel %vm2213_vm14, 0.0, %v2206_v47  ;;  %5339 = vmatprep.subr.bf16.mxu0 %v2375_v30  ;;  %v5662_v30 = vld [vmem:[%s8408_s5 + $0x38] ss:$12 sps:$4 sm:$0xff]  }
 0x507   :  { %v2208_v46 = vpop.permute.xlu1 %2207  ;;  %v2376_v50 = vpack.c.bf16 %v2310_v55, %v2309_v37  ;;  %v2224_v58 = vmul.f32 %v5206_v25, %v2216_v33  ;;  %v5664_v37 = vld [vmem:[%s8408_s5 + $0x4c] ss:$12 sps:$4 sm:$0xff]   ;;  %v5666_v55 = vld [vmem:[%s8408_s5 + $0x48] ss:$12 sps:$4 sm:$0xff]   ;;  %v5667_v47 = vld [vmem:[%s8325_s9] sm:$0xff]   ;;  %s8444_s5 = smov 127  }
 0x508   :  { %v2217_v54 = vsel %vm2213_vm14, 0.0, %v2208_v46 }
 0x509   :  { %v2225_v61 = vmul.f32 %v5206_v25, %v2217_v54  ;;  %v2317_v62 = vpop.permute.xlu0 %2316  ;;  %5340 = vmatpush3.bf16.msra.mxu0 %v2367_v13 }
 0x50a   :  { %v2327_v45 = vsel %vm2324_vm1, %v2317_v62, 0.0  ;;  %5341 = vmatprep.subr.bf16.mxu0 %v2376_v50 }
 0x50b   :  { %v2368_v0 = vpack.c.bf16 %v2225_v61, %v2224_v58  ;;  %v2319_v44 = vpop.permute.xlu1 %2318  ;;  %v2335_v51 = vmul.f32 %v5211_v40, %v2327_v45 }
 0x50c   :  { %v2328_v34 = vsel %vm2324_vm1, %v2319_v44, 0.0 }
 0x50d   :  { %v2336_v36 = vmul.f32 %v5211_v40, %v2328_v34  ;;  %v2232_v38 = vpop.permute.xlu0 %2231  ;;  %5342 = vmatpush3.bf16.msra.mxu0 %v2368_v0 }
 0x50e   :  { %v2241_v14 = vsel %vm1345_vm0, 0.0, %v2232_v38  ;;  %5343 = vmatprep.subr.bf16.mxu0 %v2377_v9 }
 0x50f   :  { %v2234_v16 = vpop.permute.xlu1 %2233  ;;  %v2378_v43 = vpack.c.bf16 %v2336_v36, %v2335_v51  ;;  %v2249_v39 = vmul.f32 %v5207_v60, %v2241_v14 }
 0x510   :  { %v2242_v59 = vsel %vm1345_vm0, 0.0, %v2234_v16 }
 0x511   :  { %v2250_v17 = vmul.f32 %v5207_v60, %v2242_v59  ;;  %v2339_v7 = vpop.permute.xlu0 %2338  ;;  %5344 = vmatpush3.bf16.msra.mxu0 %v2369_v15 }
 0x512   :  { %v2351_v52 = vsel %vm2350_vm15, %v2339_v7, 0.0  ;;  %5345 = vmatprep.subr.bf16.mxu0 %v2378_v43 }
 0x513   :  { %v2370_v11 = vpack.c.bf16 %v2250_v17, %v2249_v39  ;;  %v2341_v18 = vpop.permute.xlu1 %2340  ;;  %v2359_v19 = vmul.f32 %v5212_v3, %v2351_v52 }
 0x514   :  { %v2352_v48 = vsel %vm2350_vm15, %v2341_v18, 0.0 }
 0x515   :  { %v2360_v21 = vmul.f32 %v5212_v3, %v2352_v48  ;;  %v2343_v23 = vpop.permute.xlu0 %2342  ;;  %5346 = vmatpush3.bf16.msra.mxu0 %v2370_v11 }
 0x516   :  { %v2353_v6 = vsel %vm2350_vm15, %v2343_v23, 0.0 }
 0x517   :  { %v2345_v31 = vpop.permute.xlu1 %2344  ;;  %v2379_v12 = vpack.c.bf16 %v2360_v21, %v2359_v19  ;;  %v2361_v26 = vmul.f32 %v5212_v3, %v2353_v6 }
 0x518   :  { %v2354_v25 = vsel %vm2350_vm15, %v2345_v31, 0.0  ;;  %2551 = vmatmul.mubr.bf16.vlgmr.msra.gmra.mrb[20].mxu0 %v5651_v8 }
 0x519   :  { %v2362_v27 = vmul.f32 %v5212_v3, %v2354_v25  ;;  %5435 = vmatprep.subr.bf16.mxu1 %v2379_v12  ;;  %2558 = vmatprep.mubr.bf16.mxu0 %v5654_v24 }
 0x51a   :  { %5436 = vmatpush3.bf16.msra.mxu1 %v2379_v12 }
 0x51b   :  { %v2380_v28 = vpack.c.bf16 %v2362_v27, %v2361_v26 }
 0x51d   :  { %5437 = vmatprep.subr.bf16.mxu1 %v2380_v28 }
 0x51e   :  { %5438 = vmatpush3.bf16.msra.mxu1 %v2380_v28 }
 0x520   :  { %2559 = vmatmul.mubr.bf16.gmra.mrb[24].mxu0 %v5656_v29 }
 0x521   :  { %5440 = vmatmul.mubr.msk.bf16.vlgmr.msra.gmra.mrb[20].mxu1 %vm2505_vm11, %v5658_v1  ;;  %2566 = vmatprep.mubr.bf16.mxu0 %v5659_v49 }
 0x522   :  { %5443 = vmatprep.mubr.msk.bf16.mxu1 %vm2505_vm11, %v5662_v30 }
 0x526   :  { %v2408_v40 = vpop.permute.xlu0 %2407 }
 0x528   :  { %2567 = vmatmul.mubr.bf16.gmra.mrb[28].mxu0 %v5661_v32  ;;  %v2413_v42 = vpop.permute.xlu1 %2412 }
 0x529   :  { %5444 = vmatmul.mubr.msk.bf16.gmra.mrb[24].mxu1 %vm2505_vm11, %v5663_v35  ;;  %2574 = vmatprep.mubr.bf16.mxu0 %v5664_v37 }
 0x52a   :  { %5455 = vmatprep.mubr.msk.bf16.mxu1 %vm2736_vm3, %v5667_v47  ;;  %v2418_v54 = vpop.permute.xlu0 %2417 }
 0x52c   :  { %v2423_v36 = vpop.permute.xlu1 %2422 }
 0x52e   :  { %v2428_v59 = vpop.permute.xlu0 %2427 }
 0x530   :  { %2575 = vmatmul.mubr.bf16.gmra.mrb[32].mxu0 %v5666_v55  ;;  %v2433_v25 = vpop.permute.xlu1 %2432 }
 0x532   :  { %v2438_v37 = vpop.permute.xlu0 %2437 }
 0x5eb   :  { %v5347_v33 = vpop.f32.mrb[20].mxu0 }
 0x5ec   :  { %v5348_v13 = vpop.f32.mrb[21].mxu0 }
 0x5ed   :  { %v5349_v22 = vadd.f32 %v5348_v13, %v5347_v33  ;;  %v5350_v46 = vpop.f32.mrb[22].mxu0 }
 0x5ee   :  { %v5351_v50 = vpop.f32.mrb[23].mxu0 }
 0x5ef   :  { %v5352_v53 = vadd.f32 %v5351_v50, %v5350_v46  ;;  %v2553_v56 = vadd.f32 %v5349_v22, %v2408_v40  ;;  %v2443_v40 = vpop.permute.xlu1 %2442 }
 0x5f1   :  { %v2556_v34 = vadd.f32 %v5352_v53, %v2413_v42 }
 0x5f3   :  { %v5353_v58 = vpop.f32.mrb[24].mxu0 }
 0x5f4   :  { %v5354_v61 = vpop.f32.mrb[25].mxu0  ;;  %v5441_v62 = vpop.f32.mrb[20].mxu1 }
 0x5f5   :  { %v5355_v60 = vadd.f32 %v5354_v61, %v5353_v58  ;;  %v5356_v41 = vpop.f32.mrb[26].mxu0  ;;  %v2617_v45 = vpop.f32.mrb[21].mxu1  ;;  %v5668_v58 = vld [vmem:[%s8325_s9 + $0x8] sm:$0xff]   ;;  %v5669_v61 = vld [vmem:[%s8325_s9 + $0x10] sm:$0xff]  }
 0x5f6   :  { %v2618_v63 = vadd.f32 %v2617_v45, %v2553_v56  ;;  %v5357_v0 = vpop.f32.mrb[27].mxu0  ;;  %v5442_v44 = vpop.f32.mrb[22].mxu1  ;;  %v5671_v56 = vld [vmem:[%s8326_s11] sm:$0xff]   ;;  %v5677_v45 = vld [vmem:[%s8327_s13 + $0x10] sm:$0xff]  }
 0x5f7   :  { %v2561_v9 = vadd.f32 %v5355_v60, %v2418_v54  ;;  %v5358_v10 = vadd.f32 %v5357_v0, %v5356_v41  ;;  %v2620_v51 = vpop.f32.mrb[23].mxu1  ;;  %v5675_v60 = vld [vmem:[%s8327_s13] sm:$0xff]   ;;  %v5676_v41 = vld [vmem:[%s8327_s13 + $0x8] sm:$0xff]  }
 0x5f8   :  { %v2621_v38 = vadd.f32 %v2620_v51, %v2556_v34  ;;  %v2648_v16 = vmax.f32 %v2618_v63, 0.0  ;;  %5479 = vmatprep.subr.bf16.mxu0 %v5675_v60  ;;  %v5678_v63 = vld [vmem:[%s8327_s13 + $0x18] sm:$0xff]   ;;  %v5679_v0 = vld [vmem:[%s8327_s13 + $0x20] sm:$0xff]   ;;  %v2679_v34 = vpop.permute.xlu0 %2678 }
 0x5f9   :  { %v2626_v14 = vadd.f32 %v5441_v62, %v2561_v9  ;;  %v2564_v15 = vadd.f32 %v5358_v10, %v2423_v36  ;;  %v5670_v62 = vld [vmem:[%s8325_s9 + $0x18] sm:$0xff]   ;;  %5480 = vmatpush3.bf16.msra.mxu0 %v5675_v60  ;;  %v2684_v9 = vpop.permute.xlu1 %2683  ;;  %s5740_s9 = smov 122  }
 0x5fa   :  { %v2649_v43 = vmax.f32 %v2621_v38, 0.0  ;;  %5481 = vmatprep.subr.bf16.mxu0 %v5676_v41 }
 0x5fb   :  { %v2629_v39 = vadd.f32 %v5442_v44, %v2564_v15  ;;  %v5359_v17 = vpop.f32.mrb[28].mxu0  ;;  %v2650_v11 = vmax.f32 %v2626_v14, 0.0  ;;  %v5680_v44 = vld [vmem:[%s8327_s13 + $0x28] sm:$0xff]  }
 0x5fc   :  { %v2656_v7 = vpack.c.bf16 %v2649_v43, %v2648_v16  ;;  %v5360_v3 = vpop.f32.mrb[29].mxu0  ;;  %v5445_v52 = vpop.f32.mrb[24].mxu1 }
 0x5fd   :  { %v2651_v18 = vmax.f32 %v2629_v39, 0.0  ;;  %v5361_v48 = vadd.f32 %v5360_v3, %v5359_v17  ;;  %v5362_v8 = vpop.f32.mrb[30].mxu0  ;;  %v2633_v19 = vpop.f32.mrb[25].mxu1  ;;  %5482 = vmatpush3.bf16.msra.mxu0 %v5676_v41 }
 0x5fe   :  { %v5363_v21 = vpop.f32.mrb[31].mxu0  ;;  %5447 = vmatprep.subr.bf16.mxu1 %v2656_v7  ;;  %v5446_v23 = vpop.f32.mrb[26].mxu1  ;;  %5483 = vmatprep.subr.bf16.mxu0 %v5677_v45 }
 0x5ff   :  { %v2657_v24 = vpack.c.bf16 %v2651_v18, %v2650_v11  ;;  %v5364_v6 = vadd.f32 %v5363_v21, %v5362_v8  ;;  %5448 = vmatpush3.bf16.msra.mxu1 %v2656_v7  ;;  %v2569_v31 = vadd.f32 %v5361_v48, %v2428_v59  ;;  %v2636_v12 = vpop.f32.mrb[27].mxu1  ;;  %v2689_v10 = vpop.permute.xlu0 %2688 }
 0x600   :  { %v2694_v51 = vpop.permute.xlu1 %2693 }
 0x601   :  { %v2634_v26 = vadd.f32 %v2633_v19, %v2569_v31  ;;  %5449 = vmatprep.subr.bf16.mxu1 %v2657_v24  ;;  %v2572_v27 = vadd.f32 %v5364_v6, %v2433_v25  ;;  %5484 = vmatpush3.bf16.msra.mxu0 %v5677_v45 }
 0x602   :  { %5485 = vmatprep.subr.bf16.mxu0 %v5678_v63 }
 0x603   :  { %v2637_v28 = vadd.f32 %v2636_v12, %v2572_v27  ;;  %v5365_v29 = vpop.f32.mrb[32].mxu0  ;;  %5450 = vmatpush3.bf16.msra.mxu1 %v2657_v24  ;;  %v2652_v49 = vmax.f32 %v2634_v26, 0.0  ;;  %v2699_v15 = vpop.permute.xlu0 %2698 }
 0x604   :  { %v5366_v1 = vpop.f32.mrb[33].mxu0  ;;  %v2704_v17 = vpop.permute.xlu1 %2703 }
 0x605   :  { %v2653_v30 = vmax.f32 %v2637_v28, 0.0  ;;  %v5367_v32 = vadd.f32 %v5366_v1, %v5365_v29  ;;  %v5368_v35 = vpop.f32.mrb[34].mxu0  ;;  %5486 = vmatpush3.bf16.msra.mxu0 %v5678_v63 }
 0x606   :  { %v5369_v55 = vpop.f32.mrb[35].mxu0  ;;  %5487 = vmatprep.subr.bf16.mxu0 %v5679_v0 }
 0x607   :  { %v2658_v47 = vpack.c.bf16 %v2653_v30, %v2652_v49  ;;  %v2577_v33 = vadd.f32 %v5367_v32, %v2438_v37  ;;  %v5370_v13 = vadd.f32 %v5369_v55, %v5368_v35  ;;  %v2709_v8 = vpop.permute.xlu0 %2708  ;;  %v5672_v35 = vld [vmem:[%s8326_s11 + $0x8] sm:$0xff]   ;;  %v5673_v37 = vld [vmem:[%s8326_s11 + $0x10] sm:$0xff]   ;;  %v5674_v55 = vld [vmem:[%s8326_s11 + $0x18] sm:$0xff]   ;;  %s5749_s11 = smov 12  }
 0x608   :  { %v2714_v6 = vpop.permute.xlu1 %2713 }
 0x609   :  { %v2642_v22 = vadd.f32 %v5445_v52, %v2577_v33  ;;  %v2580_v46 = vadd.f32 %v5370_v13, %v2443_v40  ;;  %5451 = vmatprep.subr.bf16.mxu1 %v2658_v47  ;;  %5488 = vmatpush3.bf16.msra.mxu0 %v5679_v0  ;;  %v5682_v33 = vld [vmem:[%s8327_s13 + $0x38] sm:$0xff]   ;;  %v5683_v13 = vld [vmem:[%s8328_s16] sm:$0xff]  }
 0x60a   :  { %5452 = vmatpush3.bf16.msra.mxu1 %v2658_v47  ;;  %5489 = vmatprep.subr.bf16.mxu0 %v5680_v44  ;;  %v5681_v47 = vld [vmem:[%s8327_s13 + $0x30] sm:$0xff]   ;;  %s5742_s13 = smov 125  }
 0x60b   :  { %v2645_v50 = vadd.f32 %v5446_v23, %v2580_v46  ;;  %v2654_v53 = vmax.f32 %v2642_v22, 0.0  ;;  %v2845_v40 = vpop.permute.xlu0 %2844 }
 0x60c   :  { %v2850_v22 = vpop.permute.xlu1 %2849 }
 0x60d   :  { %v2655_v42 = vmax.f32 %v2645_v50, 0.0  ;;  %5490 = vmatpush3.bf16.msra.mxu0 %v5680_v44 }
 0x60e   :  { %5491 = vmatprep.subr.bf16.mxu0 %v5681_v47 }
 0x60f   :  { %v2659_v54 = vpack.c.bf16 %v2655_v42, %v2654_v53  ;;  %v2855_v46 = vpop.permute.xlu0 %2854 }
 0x610   :  { %v2860_v50 = vpop.permute.xlu1 %2859 }
 0x611   :  { %5453 = vmatprep.subr.bf16.mxu1 %v2659_v54  ;;  %5492 = vmatpush3.bf16.msra.mxu0 %v5681_v47  ;;  %v7217_v47 = vld [vmem:[%s8331_s18 + $0x10] sm:$0xff] }
 0x612   :  { %5454 = vmatpush3.bf16.msra.mxu1 %v2659_v54  ;;  %5493 = vmatprep.subr.bf16.mxu0 %v5682_v33 }
 0x614   :  { %v2870_v41 = vpop.permute.xlu1 %2869 }
 0x615   :  { %5456 = vmatmul.mubr.msk.bf16.vlgmr.msra.gmra.mrb[28].mxu1 %vm2736_vm3, %v5668_v58  ;;  %5494 = vmatpush3.bf16.msra.mxu0 %v5682_v33  ;;  %v2865_v58 = vpop.permute.xlu0 %2864  ;;  %v3842_v33 = vmul.f32 0.0, %v7217_v47 }
 0x616   :  { %5459 = vmatprep.mubr.msk.bf16.mxu1 %vm2736_vm3, %v5669_v61  ;;  %5515 = vmatprep.subr.bf16.mxu0 %v5683_v13 }
 0x61d   :  { %5460 = vmatmul.mubr.msk.bf16.gmra.mrb[32].mxu1 %vm2736_vm3, %v5670_v62 }
 0x61e   :  { %5471 = vmatprep.mubr.msk.bf16.mxu1 %vm2736_vm3, %v5671_v56 }
 0x6e8   :  { %v5457_v36 = vpop.f32.mrb[28].mxu1 }
 0x6e9   :  { %v2792_v38 = vadd.f32 %v5457_v36, %v2689_v10  ;;  %v2783_v14 = vpop.f32.mrb[29].mxu1  ;;  %v2875_v10 = vpop.permute.xlu0 %2874 }
 0x6ea   :  { %v2784_v16 = vadd.f32 %v2783_v14, %v2679_v34  ;;  %v5458_v43 = vpop.f32.mrb[30].mxu1 }
 0x6eb   :  { %v2795_v59 = vadd.f32 %v5458_v43, %v2694_v51  ;;  %v2786_v39 = vpop.f32.mrb[31].mxu1  ;;  %v2816_v3 = vmax.f32 %v2792_v38, 0.0 }
 0x6ec   :  { %v2787_v7 = vadd.f32 %v2786_v39, %v2684_v9  ;;  %v2814_v11 = vmax.f32 %v2784_v16, 0.0  ;;  %v2880_v16 = vpop.permute.xlu1 %2879 }
 0x6ed   :  { %v2817_v52 = vmax.f32 %v2795_v59, 0.0 }
 0x6ee   :  { %v2815_v18 = vmax.f32 %v2787_v7, 0.0 }
 0x6ef   :  { %v7096_v48 = vpack.c.bf16 %v2817_v52, %v2816_v3 }
 0x6f0   :  { %v7098_v19 = vpack.c.bf16 %v2815_v18, %v2814_v11  ;;  %v5461_v21 = vpop.f32.mrb[32].mxu1  ;;  %v5685_v11 = vld [vmem:[%s8328_s16 + $0x10] sm:$0xff]  }
 0x6f1   :  { %v2808_v23 = vadd.f32 %v5461_v21, %v2709_v8  ;;  %v2799_v24 = vpop.f32.mrb[33].mxu1 }
 0x6f2   :  { %v2800_v31 = vadd.f32 %v2799_v24, %v2699_v15  ;;  %v5462_v12 = vpop.f32.mrb[34].mxu1  ;;  %5463 = vmatprep.subr.bf16.mxu1 %v7098_v19  ;;  %v5684_v15 = vld [vmem:[%s8328_s16 + $0x8] sm:$0xff]   ;;  %v5686_v24 = vld [vmem:[%s8328_s16 + $0x18] sm:$0xff]  }
 0x6f3   :  { %v2811_v25 = vadd.f32 %v5462_v12, %v2714_v6  ;;  %v2802_v26 = vpop.f32.mrb[35].mxu1  ;;  %5464 = vmatpush3.bf16.msra.mxu1 %v7098_v19  ;;  %v2820_v28 = vmax.f32 %v2808_v23, 0.0  ;;  %v5687_v6 = vld [vmem:[%s8328_s16 + $0x20] sm:$0xff]   ;;  %v5689_v12 = vld [vmem:[%s8328_s16 + $0x30] sm:$0xff]  }
 0x6f4   :  { %v2803_v27 = vadd.f32 %v2802_v26, %v2704_v17  ;;  %5465 = vmatprep.subr.bf16.mxu1 %v7096_v48  ;;  %v2818_v1 = vmax.f32 %v2800_v31, 0.0  ;;  %v5688_v31 = vld [vmem:[%s8328_s16 + $0x28] sm:$0xff]   ;;  %v7162_v26 = vcvt.s32.f32 %v6073_v4 }
 0x6f5   :  { %v2821_v29 = vmax.f32 %v2811_v25, 0.0  ;;  %v8357_v25 = vmov 0.0   ;;  %v3481_v4 = vld [vmem:[%s8330_s19 + $0x8] sm:$0xff] }
 0x6f6   :  { %v2819_v49 = vmax.f32 %v2803_v27, 0.0  ;;  %3449 = vrot.lane.b32.xlu0 %v7162_v26, %s5732_s27  ;;  %v3482_v27 = vld [vmem:[%s8330_s19 + $0x10] sm:$0xff] }
 0x6f7   :  { %v7103_v30 = vpack.c.bf16 %v2821_v29, %v2820_v28  ;;  %5466 = vmatpush3.bf16.msra.mxu1 %v7096_v48  ;;  %v3483_v28 = vld [vmem:[%s8330_s19 + $0x18] sm:$0xff]  ;;  %v3484_v29 = vld [vmem:[%s8330_s19 + $0x20] sm:$0xff] }
 0x6f8   :  { %v7106_v32 = vpack.c.bf16 %v2819_v49, %v2818_v1  ;;  %v3485_v1 = vld [vmem:[%s8330_s19 + $0x28] sm:$0xff]  ;;  %v3486_v49 = vld [vmem:[%s8330_s19 + $0x30] sm:$0xff] }
 0x6fa   :  { %5467 = vmatprep.subr.bf16.mxu1 %v7106_v32 }
 0x6fb   :  { %5468 = vmatpush3.bf16.msra.mxu1 %v7106_v32 }
 0x6fc   :  { %5469 = vmatprep.subr.bf16.mxu1 %v7103_v30 }
 0x6ff   :  { %5470 = vmatpush3.bf16.msra.mxu1 %v7103_v30 }
 0x700   :  { %5503 = vmatprep.subr.bf16.mxu1 %v8357_v25 }
 0x702   :  { %5472 = vmatmul.mubr.msk.bf16.vlgmr.msra.gmra.mrb[36].mxu1 %vm2736_vm3, %v5672_v35  ;;  %v3487_v35 = vld [vmem:[%s8330_s19 + $0x38] sm:$0xff] }
 0x703   :  { %5475 = vmatprep.mubr.msk.bf16.mxu1 %vm2736_vm3, %v5673_v37  ;;  %v7209_v37 = vld [vmem:[%s8331_s18 + $0x8] sm:$0xff] }
 0x70a   :  { %5476 = vmatmul.mubr.msk.bf16.gmra.mrb[40].mxu1 %vm2736_vm3, %v5674_v55  ;;  %v3841_v55 = vmul.f32 0.0, %v7209_v37 }
 0x70b   :  { %5511 = vmatprep.mubr.msk.bf16.mxu1 %vm5738_vm4, %v8357_v25 }
 0x7d5   :  { %v5473_v53 = vpop.f32.mrb[36].mxu1 }
 0x7d6   :  { %v2957_v42 = vadd.f32 %v5473_v53, %v2855_v46  ;;  %v2948_v54 = vpop.f32.mrb[37].mxu1 }
 0x7d7   :  { %v2949_v61 = vadd.f32 %v2948_v54, %v2845_v40  ;;  %v5474_v62 = vpop.f32.mrb[38].mxu1 }
 0x7d8   :  { %v2960_v56 = vadd.f32 %v5474_v62, %v2860_v50  ;;  %v2951_v60 = vpop.f32.mrb[39].mxu1  ;;  %v2981_v63 = vmax.f32 %v2957_v42, 0.0  ;;  %v7241_v50 = vld [vmem:[%s8331_s18 + $0x28] sm:$0xff]  ;;  %v7249_v42 = vld [vmem:[%s8331_s18 + $0x30] sm:$0xff] }
 0x7d9   :  { %v2952_v45 = vadd.f32 %v2951_v60, %v2850_v22  ;;  %v2979_v44 = vmax.f32 %v2949_v61, 0.0  ;;  %v7233_v22 = vld [vmem:[%s8331_s18 + $0x20] sm:$0xff]  ;;  %v3845_v53 = vmul.f32 0.0, %v7241_v50  ;;  %v7254_v54 = vmul.f32 0.0, %v7249_v42 }
 0x7da   :  { %v2982_v0 = vmax.f32 %v2960_v56, 0.0  ;;  %v3844_v46 = vmul.f32 0.0, %v7233_v22 }
 0x7db   :  { %v2980_v34 = vmax.f32 %v2952_v45, 0.0 }
 0x7dc   :  { %v2988_v9 = vpack.c.bf16 %v2982_v0, %v2981_v63 }
 0x7dd   :  { %v2987_v51 = vpack.c.bf16 %v2980_v34, %v2979_v44  ;;  %v5477_v36 = vpop.f32.mrb[40].mxu1 }
 0x7de   :  { %v2973_v38 = vadd.f32 %v5477_v36, %v2875_v10  ;;  %v2964_v14 = vpop.f32.mrb[41].mxu1  ;;  %v3120_v36 = vld [vmem:[%s8332_s14] sm:$0x1] }
 0x7df   :  { %v2965_v43 = vadd.f32 %v2964_v14, %v2865_v58  ;;  %v5478_v59 = vpop.f32.mrb[42].mxu1  ;;  %5495 = vmatprep.mubr.bf16.mxu0 %v2987_v51  ;;  %v7259_v58 = vld [vmem:[%s8331_s18 + $0x38] sm:$0xff] }
 0x7e0   :  { %v2976_v39 = vadd.f32 %v5478_v59, %v2880_v16  ;;  %v2967_v17 = vpop.f32.mrb[43].mxu1  ;;  %5496 = vmatmul.mubr.bf16.vlgmr.msra.gmra.mrb[36].mxu0 %v2988_v9  ;;  %v2985_v3 = vmax.f32 %v2973_v38, 0.0  ;;  %v7263_v61 = vmul.f32 0.0, %v7259_v58  ;;  %v5691_v38 = vld [vmem:[%s8329_s17] sm:$0xff]  }
 0x7e1   :  { %v2968_v7 = vadd.f32 %v2967_v17, %v2870_v41  ;;  %5516 = vmatpush3.bf16.msra.mxu0 %v5683_v13  ;;  %v2983_v18 = vmax.f32 %v2965_v43, 0.0  ;;  %v7225_v13 = vld [vmem:[%s8331_s18 + $0x18] sm:$0xff] }
 0x7e2   :  { %v2986_v52 = vmax.f32 %v2976_v39, 0.0  ;;  %5517 = vmatprep.subr.bf16.mxu0 %v5684_v15  ;;  %v3843_v40 = vmul.f32 0.0, %v7225_v13 }
 0x7e3   :  { %v2984_v8 = vmax.f32 %v2968_v7, 0.0 }
 0x7e4   :  { %v2990_v21 = vpack.c.bf16 %v2986_v52, %v2985_v3 }
 0x7e5   :  { %v2989_v23 = vpack.c.bf16 %v2984_v8, %v2983_v18  ;;  %5518 = vmatpush3.bf16.msra.mxu0 %v5684_v15  ;;  %v5692_v8 = vld [vmem:[%s8329_s17 + $0x8] sm:$0xff]  }
 0x7e6   :  { %5519 = vmatprep.subr.bf16.mxu0 %v5685_v11 }
 0x7e7   :  { %5499 = vmatprep.mubr.bf16.mxu0 %v2989_v23  ;;  %v5694_v23 = vld [vmem:[%s8329_s17 + $0x18] sm:$0xff]  }
 0x7e8   :  { %5500 = vmatmul.mubr.bf16.gmra.mrb[40].mxu0 %v2990_v21  ;;  %v5693_v21 = vld [vmem:[%s8329_s17 + $0x10] sm:$0xff]   ;;  %s5748_s17 = smov 4  }
 0x7e9   :  { %5520 = vmatpush3.bf16.msra.mxu0 %v5685_v11  ;;  %5531 = vmatprep.mubr.bf16.mxu0 %v7098_v19  ;;  %v5690_v19 = vld [vmem:[%s8328_s16 + $0x38] sm:$0xff]   ;;  %s5739_s16 = smov 24  }
 0x7ea   :  { %5521 = vmatprep.subr.bf16.mxu0 %v5686_v24  ;;  %3976 = vrot.lane.b32.xlu1 %v7162_v26, %s5739_s16 }
 0x7ed   :  { %5522 = vmatpush3.bf16.msra.mxu0 %v5686_v24  ;;  %v3129_v24 = vpop.permute.xlu0 %3128 }
 0x7ee   :  { %5523 = vmatprep.subr.bf16.mxu0 %v5687_v6  ;;  %3953 = vrot.lane.b32.xlu1 %v7162_v26, %s5725_s30 }
 0x7f1   :  { %5524 = vmatpush3.bf16.msra.mxu0 %v5687_v6 }
 0x7f2   :  { %5525 = vmatprep.subr.bf16.mxu0 %v5688_v31  ;;  %4016 = vrot.lane.b32.xlu1 %v3481_v4, %s8409_s26 }
 0x7f5   :  { %5526 = vmatpush3.bf16.msra.mxu0 %v5688_v31 }
 0x7f6   :  { %5527 = vmatprep.subr.bf16.mxu0 %v5689_v12  ;;  %4020 = vrot.lane.b32.xlu1 %v3483_v28, %s8409_s26 }
 0x7f9   :  { %5528 = vmatpush3.bf16.msra.mxu0 %v5689_v12 }
 0x7fa   :  { %5529 = vmatprep.subr.bf16.mxu0 %v5690_v19  ;;  %4024 = vrot.lane.b32.xlu1 %v3485_v1, %s8409_s26 }
 0x7fd   :  { %5530 = vmatpush3.bf16.msra.mxu0 %v5690_v19 }
 0x7fe   :  { %4028 = vrot.lane.b32.xlu1 %v3487_v35, %s8409_s26 }
 0x800   :  { %5532 = vmatmul.mubr.bf16.vlgmr.msra.gmra.mrb[44].mxu0 %v7096_v48  ;;  %v3480_v48 = vld [vmem:[%s8330_s19] sm:$0xff] }
 0x801   :  { %5535 = vmatprep.mubr.bf16.mxu0 %v7106_v32  ;;  %4014 = vrot.lane.b32.xlu0 %v3480_v48, %s8409_s26 }
 0x802   :  { %3858 = vrot.lane.b32.xlu1 %v3841_v55, %s8410_s25 }
 0x805   :  { %4018 = vrot.lane.b32.xlu0 %v3482_v27, %s8409_s26 }
 0x806   :  { %4392 = vrot.lane.b32.xlu1 %v3841_v55, %s5740_s9 }
 0x808   :  { %5536 = vmatmul.mubr.bf16.gmra.mrb[48].mxu0 %v7103_v30  ;;  %v7198_v30 = vld [vmem:[%s8331_s18] sm:$0xff] }
 0x809   :  { %4022 = vrot.lane.b32.xlu0 %v3484_v29, %s8409_s26  ;;  %v3840_v32 = vmul.f32 0.0, %v7198_v30 }
 0x80a   :  { %3862 = vrot.lane.b32.xlu1 %v3843_v40, %s8410_s25 }
 0x80d   :  { %4026 = vrot.lane.b32.xlu0 %v3486_v49, %s8409_s26 }
 0x80e   :  { %4396 = vrot.lane.b32.xlu1 %v3843_v40, %s5740_s9 }
 0x811   :  { %3856 = vrot.lane.b32.xlu0 %v3840_v32, %s8410_s25 }
 0x812   :  { %3866 = vrot.lane.b32.xlu1 %v3845_v53, %s8410_s25 }
 0x815   :  { %4390 = vrot.lane.b32.xlu0 %v3840_v32, %s5740_s9 }
 0x816   :  { %4400 = vrot.lane.b32.xlu1 %v3845_v53, %s5740_s9 }
 0x819   :  { %3860 = vrot.lane.b32.xlu0 %v3842_v33, %s8410_s25 }
 0x81a   :  { %3870 = vrot.lane.b32.xlu1 %v7263_v61, %s8410_s25 }
 0x81d   :  { %4394 = vrot.lane.b32.xlu0 %v3842_v33, %s5740_s9 }
 0x821   :  { %3864 = vrot.lane.b32.xlu0 %v3844_v46, %s8410_s25 }
 0x825   :  { %4398 = vrot.lane.b32.xlu0 %v3844_v46, %s5740_s9 }
 0x829   :  { %3868 = vrot.lane.b32.xlu0 %v7254_v54, %s8410_s25 }
 0x85c   :  { %v3977_v53 = vpop.permute.xlu1 %3976 }
 0x8b3   :  { %v5497_v62 = vpop.f32.mrb[36].mxu0 }
 0x8b4   :  { %v3089_v56 = vpop.f32.mrb[37].mxu0 }
 0x8b5   :  { %v5498_v60 = vpop.f32.mrb[38].mxu0 }
 0x8b6   :  { %v3122_v41 = vpack.c.bf16 %v5498_v60, %v5497_v62  ;;  %v3092_v45 = vpop.f32.mrb[39].mxu0  ;;  %v3450_v62 = vpop.permute.xlu0 %3449 }
 0x8b7   :  { %v3121_v63 = vpack.c.bf16 %v3092_v45, %v3089_v56 }
 0x8b9   :  { %5504 = vmatpush3.bf16.msra.mxu1 %v3121_v63 }
 0x8ba   :  { %5505 = vmatprep.subr.bf16.mxu1 %v8357_v25  ;;  %v7327_v56 = vpop.permute.xlu0 %4014 }
 0x8bb   :  { %v5501_v0 = vpop.f32.mrb[40].mxu0 }
 0x8bc   :  { %v3105_v44 = vpop.f32.mrb[41].mxu0 }
 0x8bd   :  { %v5502_v34 = vpop.f32.mrb[42].mxu0  ;;  %5506 = vmatpush3.bf16.msra.mxu1 %v3122_v41 }
 0x8be   :  { %v3124_v9 = vpack.c.bf16 %v5502_v34, %v5501_v0  ;;  %v3108_v10 = vpop.f32.mrb[43].mxu0  ;;  %5507 = vmatprep.subr.bf16.mxu1 %v8357_v25  ;;  %v7331_v41 = vpop.permute.xlu0 %4018 }
 0x8bf   :  { %v3123_v51 = vpack.c.bf16 %v3108_v10, %v3105_v44 }
 0x8c1   :  { %5508 = vmatpush3.bf16.msra.mxu1 %v3123_v51 }
 0x8c2   :  { %5509 = vmatprep.subr.bf16.mxu1 %v8357_v25  ;;  %v7335_v63 = vpop.permute.xlu0 %4022 }
 0x8c3   :  { %8417 = vst [vmem:[#allocation8_spill] sm:$0xff] %v7335_v63 }
 0x8c5   :  { %5510 = vmatpush3.bf16.msra.mxu1 %v3124_v9 }
 0x8c6   :  { %v7339_v44 = vpop.permute.xlu0 %4026 }
 0x8c7   :  { %8419 = vst [vmem:[#allocation10_spill] sm:$0xff] %v7339_v44 }
 0x8c8   :  { %5512 = vmatmul.mubr.msk.bf16.vlgmr.msra.gmra.mrb[44].mxu1 %vm2736_vm3, %v3120_v36 }
 0x8c9   :  { %5547 = vmatprep.mubr.msk.bf16.mxu1 %vm2736_vm3, %v5691_v38 }
 0x8ca   :  { %v7343_v9 = vpop.permute.xlu0 %3856 }
 0x8ce   :  { %v7347_v51 = vpop.permute.xlu0 %4390 }
 0x8d2   :  { %v7351_v38 = vpop.permute.xlu0 %3860 }
 0x8d3   :  { %v5533_v14 = vpop.f32.mrb[44].mxu0  ;;  %8421 = vst [vmem:[#allocation12_spill] sm:$0xff] %v7351_v38 }
 0x8d4   :  { %v3272_v15 = vpop.f32.mrb[45].mxu0 }
 0x8d5   :  { %v5534_v16 = vpop.f32.mrb[46].mxu0 }
 0x8d6   :  { %v3312_v43 = vpack.c.bf16 %v5534_v16, %v5533_v14  ;;  %v3275_v59 = vpop.f32.mrb[47].mxu0 }
 0x8d7   :  { %v3311_v39 = vpack.c.bf16 %v3275_v59, %v3272_v15  ;;  %v7355_v15 = vpop.permute.xlu0 %4394 }
 0x8d8   :  { %8423 = vst [vmem:[#allocation14_spill] sm:$0xff] %v7355_v15 }
 0x8d9   :  { %5539 = vmatprep.subr.bf16.mxu1 %v3311_v39 }
 0x8da   :  { %5540 = vmatpush3.bf16.msra.mxu1 %v3311_v39 }
 0x8db   :  { %v5537_v17 = vpop.f32.mrb[48].mxu0  ;;  %5541 = vmatprep.subr.bf16.mxu1 %v3312_v43 }
 0x8dc   :  { %v3288_v7 = vpop.f32.mrb[49].mxu0 }
 0x8dd   :  { %v5538_v3 = vpop.f32.mrb[50].mxu0 }
 0x8de   :  { %v3314_v52 = vpack.c.bf16 %v5538_v3, %v5537_v17  ;;  %v3291_v11 = vpop.f32.mrb[51].mxu0  ;;  %5542 = vmatpush3.bf16.msra.mxu1 %v3312_v43  ;;  %v7359_v43 = vpop.permute.xlu0 %3864 }
 0x8df   :  { %v3313_v18 = vpack.c.bf16 %v3291_v11, %v3288_v7  ;;  %8425 = vst [vmem:[#allocation16_spill] sm:$0xff] %v7359_v43 }
 0x8e1   :  { %5543 = vmatprep.subr.bf16.mxu1 %v3313_v18 }
 0x8e2   :  { %5544 = vmatpush3.bf16.msra.mxu1 %v3313_v18  ;;  %v7363_v39 = vpop.permute.xlu0 %4398 }
 0x8e3   :  { %5545 = vmatprep.subr.bf16.mxu1 %v3314_v52  ;;  %8427 = vst [vmem:[#allocation18_spill] sm:$0xff] %v7363_v39 }
 0x8e6   :  { %5546 = vmatpush3.bf16.msra.mxu1 %v3314_v52  ;;  %v7367_v7 = vpop.permute.xlu0 %3868 }
 0x8e7   :  { %5555 = vmatprep.subr.bf16.mxu1 %v8357_v25  ;;  %8429 = vst [vmem:[#allocation20_spill] sm:$0xff] %v7367_v7 }
 0x8e9   :  { %5548 = vmatmul.mubr.msk.bf16.vlgmr.msra.gmra.mrb[48].mxu1 %vm2736_vm3, %v5692_v8 }
 0x8ea   :  { %5551 = vmatprep.mubr.msk.bf16.mxu1 %vm2736_vm3, %v5693_v21 }
 0x8f1   :  { %5552 = vmatmul.mubr.msk.bf16.gmra.mrb[52].mxu1 %vm2736_vm3, %v5694_v23 }
 0x8f2   :  { %5563 = vmatprep.mubr.msk.bf16.mxu1 %vm5738_vm4, %v8357_v25 }
 0x99b   :  { %v3168_v6 = vpop.f32.mrb[44].mxu1 }
 0x99c   :  { %v7295_v31 = vadd.f32 %v3168_v6, %v3129_v24  ;;  %v5513_v12 = vpop.f32.mrb[45].mxu1 }
 0x99d   :  { %v3171_v19 = vpop.f32.mrb[46].mxu1 }
 0x99e   :  { %8411 = vst [vmem:[#allocation2_spill] sm:$0xff] %v7295_v31  ;;  %v5514_v48 = vpop.f32.mrb[47].mxu1  ;;  %v3972_v4 = vsel %vm3971_vm6, %v7295_v31, -inf  ;;  %v3444_v27 = vsel %vm3443_vm7, %v7295_v31, -inf  ;;  %v3949_v28 = vsel %vm3948_vm8, %v7295_v31, -inf  ;;  %v3423_v29 = vsel %vm3422_vm12, %v7295_v31, -inf }
 0x99f   :  { %3973 = vmax.xlane.f32.xlu0 %v3972_v4  ;;  %3445 = vmax.xlane.f32.xlu1 %v3444_v27 }
 0x9a3   :  { %3950 = vmax.xlane.f32.xlu1 %v3949_v28  ;;  %3424 = vmax.xlane.f32.xlu0 %v3423_v29 }
 0x9b4   :  { %4404 = vrot.lane.b32.xlu1 %v7263_v61, %s5740_s9  ;;  %v3954_v61 = vpop.permute.xlu1 %3953 }
 0x9b9   :  { %4402 = vrot.lane.b32.xlu0 %v7254_v54, %s5740_s9  ;;  %v7325_v54 = vpop.permute.xlu1 %4016 }
 0x9bc   :  { %v7309_v1 = vpop.f32.mrb[48].mxu1 }
 0x9bd   :  { %v7311_v49 = vpop.f32.mrb[49].mxu1  ;;  %v7329_v60 = vpop.permute.xlu1 %4020 }
 0x9be   :  { %v7313_v32 = vpop.f32.mrb[50].mxu1 }
 0x9bf   :  { %v7315_v35 = vpop.f32.mrb[51].mxu1 }
 0x9c1   :  { %v7333_v45 = vpop.permute.xlu1 %4024 }
 0x9c2   :  { %8416 = vst [vmem:[#allocation7_spill] sm:$0xff] %v7333_v45 }
 0x9c4   :  { %v7317_v55 = vpop.f32.mrb[52].mxu1 }
 0x9c5   :  { %8412 = vst [vmem:[#allocation3_spill] sm:$0xff] %v7317_v55  ;;  %v7319_v33 = vpop.f32.mrb[53].mxu1  ;;  %v7337_v0 = vpop.permute.xlu1 %4028 }
 0x9c6   :  { %8413 = vst [vmem:[#allocation4_spill] sm:$0xff] %v7319_v33  ;;  %v7321_v40 = vpop.f32.mrb[54].mxu1  ;;  %8418 = vst [vmem:[#allocation9_spill] sm:$0xff] %v7337_v0 }
 0x9c7   :  { %8414 = vst [vmem:[#allocation5_spill] sm:$0xff] %v7321_v40  ;;  %v7323_v46 = vpop.f32.mrb[55].mxu1 }
 0x9c8   :  { %8415 = vst [vmem:[#allocation6_spill] sm:$0xff] %v7323_v46  ;;  %v4038_v46 = vadd.f32 %v7327_v56, %v7311_v49 }
 0x9c9   :  { %v7341_v34 = vpop.permute.xlu1 %3858 }
 0x9cd   :  { %v7345_v10 = vpop.permute.xlu1 %4392 }
 0x9d1   :  { %v7349_v36 = vpop.permute.xlu1 %3862 }
 0x9d2   :  { %8420 = vst [vmem:[#allocation11_spill] sm:$0xff] %v7349_v36 }
 0x9d5   :  { %v7353_v14 = vpop.permute.xlu1 %4396 }
 0x9d6   :  { %8422 = vst [vmem:[#allocation13_spill] sm:$0xff] %v7353_v14 }
 0x9d9   :  { %v7357_v16 = vpop.permute.xlu1 %3866 }
 0x9da   :  { %8424 = vst [vmem:[#allocation15_spill] sm:$0xff] %v7357_v16 }
 0x9dd   :  { %v7361_v59 = vpop.permute.xlu1 %4400 }
 0x9de   :  { %8426 = vst [vmem:[#allocation17_spill] sm:$0xff] %v7361_v59 }
 0x9e1   :  { %v7365_v17 = vpop.permute.xlu1 %3870 }
 0x9e2   :  { %8428 = vst [vmem:[#allocation19_spill] sm:$0xff] %v7365_v17 }
 0xa2c   :  { %v3974_v3 = vpop.xlane.xlu0 %3973  ;;  %v3446_v52 = vpop.xlane.xlu1 %3445 }
 0xa2d   :  { %vm3975_vm11 = vcmp.ge.f32.partialorder %v7295_v31, %v3974_v3  ;;  %vm3447_vm10 = vcmp.ge.f32.partialorder %v7295_v31, %v3446_v52 }
 0xa2e   :  { %v3979_v11 = vsel %vm3975_vm11, %v3977_v53, 8.0  ;;  %v3452_v18 = vsel %vm3447_vm10, %v3450_v62, 8.0  ;;  %vm4643_vm10 = vcmask 23552  }
 0xa2f   :  { %v3980_v8 = vsel %vm3971_vm6, %v3979_v11, inf  ;;  %v3453_v21 = vsel %vm3443_vm7, %v3452_v18, inf  ;;  %vm3464_vm7 = vcmask 60418  }
 0xa30   :  { %3981 = vmin.xlane.f32.xlu1 %v3980_v8  ;;  %v3951_v23 = vpop.xlane.xlu1 %3950  ;;  %3454 = vmin.xlane.f32.xlu0 %v3453_v21  ;;  %v3425_v24 = vpop.xlane.xlu0 %3424 }
 0xa31   :  { %vm3952_vm1 = vcmp.ge.f32.partialorder %v7295_v31, %v3951_v23  ;;  %vm3426_vm15 = vcmp.ge.f32.partialorder %v7295_v31, %v3425_v24 }
 0xa32   :  { %v3427_v6 = vsel %vm3426_vm15, %v7162_v26, 8.0  ;;  %v3956_v19 = vsel %vm3952_vm1, %v3954_v61, 8.0  ;;  %v3413_v61 = vld [vmem:[%s8333_s22] sm:$0xf]  ;;  %s5741_s22 = smov 124   ;;  %vm4645_vm1 = vcmask 31744  }
 0xa33   :  { %v3428_v12 = vsel %vm3422_vm12, %v3427_v6, inf  ;;  %v3957_v48 = vsel %vm3948_vm8, %v3956_v19, inf  ;;  %vm3439_vm12 = vcmask 58368   ;;  %vm4647_vm15 = vcmask 39936  }
 0xa34   :  { %3429 = vmin.xlane.f32.xlu0 %v3428_v12  ;;  %v7378_v4 = vpop.permute.xlu1 %4404  ;;  %v7380_v27 = vpop.permute.xlu0 %4402 }
 0xa35   :  { %8430 = vst [vmem:[#allocation21_spill] sm:$0xff] %v7378_v4  ;;  %8431 = vst [vmem:[#allocation22_spill] sm:$0xff] %v7380_v27 }
 0xa38   :  { %3958 = vmin.xlane.f32.xlu0 %v3957_v48 }
 0xabd   :  { %v3982_v28 = vpop.xlane.xlu1 %3981  ;;  %v3455_v29 = vpop.xlane.xlu0 %3454 }
 0xabe   :  { %vm3983_vm4 = vcmp.eq.f32.partialorder %v7162_v26, %v3982_v28  ;;  %vm3456_vm6 = vcmp.eq.f32.partialorder %v7162_v26, %v3455_v29 }
 0xabf   :  { %v5273_v53 = vsel %vm3983_vm4, 1.0, %v8357_v25  ;;  %v5271_v62 = vsel %vm3456_vm6, 1.0, %v8357_v25  ;;  %vm4649_vm4 = vcmask 48128   ;;  %vm4654_vm6 = vcmask 80896  }
 0xac0   :  { %v3989_v3 = vrot.slane %v5273_v53, %v6586_v57  ;;  %v3462_v52 = vrot.slane %v5271_v62, %v6586_v57 }
 0xac1   :  { %v3430_v11 = vpop.xlane.xlu0 %3429 }
 0xac2   :  { %vm3431_vm8 = vcmp.eq.f32.partialorder %v7162_v26, %v3430_v11  ;;  %v3990_v18 = vmul.f32 %v3989_v3, %v3413_v61  ;;  %v3463_v8 = vmul.f32 %v3462_v52, %v3413_v61 }
 0xac3   :  { %v5270_v21 = vsel %vm3431_vm8, 1.0, %v8357_v25  ;;  %vm4658_vm8 = vcmask 97280  }
 0xac4   :  { %v3437_v23 = vrot.slane %v5270_v21, %v6497_v20  ;;  %v3991_v24 = vsel %vm3464_vm7, %v3990_v18, 0.0  ;;  %v3465_v6 = vsel %vm3464_vm7, %v3463_v8, 0.0  ;;  %vm4656_vm7 = vcmask 89088  }
 0xac5   :  { %3992 = vadd.xlane.f32.xlu0 %v3991_v24  ;;  %3466 = vadd.xlane.f32.xlu1 %v3465_v6  ;;  %v3959_v12 = vpop.xlane.xlu0 %3958 }
 0xac6   :  { %vm3960_vm11 = vcmp.eq.f32.partialorder %v7162_v26, %v3959_v12  ;;  %v3438_v19 = vmul.f32 %v3437_v23, %v3413_v61 }
 0xac7   :  { %v5272_v48 = vsel %vm3960_vm11, 1.0, %v8357_v25  ;;  %vm4720_vm11 = vcmask 220160  }
 0xac8   :  { %v3966_v28 = vrot.slane %v5272_v48, %v6497_v20  ;;  %v3440_v29 = vsel %vm3439_vm12, %v3438_v19, 0.0 }
 0xac9   :  { %3441 = vadd.xlane.f32.xlu1 %v3440_v29 }
 0xaca   :  { %v3967_v53 = vmul.f32 %v3966_v28, %v3413_v61 }
 0xacc   :  { %v3968_v62 = vsel %vm3439_vm12, %v3967_v53, 0.0  ;;  %vm4718_vm12 = vcmask 154624  }
 0xacd   :  { %3969 = vadd.xlane.f32.xlu0 %v3968_v62 }
 0xb52   :  { %v7397_v3 = vpop.xlane.xlu1 %3466  ;;  %v7399_v52 = vpop.xlane.xlu0 %3992 }
 0xb53   :  { %v7427_v28 = vrot.slane %v7397_v3, %v6594_v2 }
 0xb55   :  { %v3893_v62 = vmul.f32 %v7427_v28, %v7209_v37 }
 0xb56   :  { %v7401_v11 = vpop.xlane.xlu1 %3441 }
 0xb57   :  { %8432 = vst [vmem:[#allocation23_spill] sm:$0xff] %v7401_v11  ;;  %v3683_v18 = vrot.slane %v7401_v11, %v6497_v20 }
 0xb59   :  { %v3685_v26 = vmul.f32 %v3683_v18, %v7209_v37  ;;  %v3684_v8 = vmul.f32 %v3683_v18, %v7198_v30  ;;  %v3687_v6 = vmul.f32 %v3683_v18, %v7225_v13  ;;  %v3686_v12 = vmul.f32 %v3683_v18, %v7217_v47 }
 0xb5a   :  { %v7407_v21 = vpop.xlane.xlu0 %3969  ;;  %v3689_v29 = vmul.f32 %v3683_v18, %v7241_v50  ;;  %v3688_v53 = vmul.f32 %v3683_v18, %v7233_v22 }
 0xb5b   :  { %8433 = vst [vmem:[#allocation24_spill] sm:$0xff] %v7407_v21  ;;  %v4233_v61 = vrot.slane %v7407_v21, %v6497_v20  ;;  %3702 = vrot.lane.b32.xlu1 %v3685_v26, %s5741_s22  ;;  %3700 = vrot.lane.b32.xlu0 %v3684_v8, %s5741_s22  ;;  %v3892_v26 = vmul.f32 %v7427_v28, %v7198_v30 }
 0xb5c   :  { %v7441_v8 = vrot.slane %v7399_v52, %v6594_v2  ;;  %v3691_v2 = vmul.f32 %v3683_v18, %v7259_v58 }
 0xb5d   :  { %v4235_v23 = vmul.f32 %v4233_v61, %v7209_v37  ;;  %v4234_v24 = vmul.f32 %v4233_v61, %v7198_v30  ;;  %v4237_v19 = vmul.f32 %v4233_v61, %v7225_v13  ;;  %v4236_v48 = vmul.f32 %v4233_v61, %v7217_v47 }
 0xb5f   :  { %4252 = vrot.lane.b32.xlu1 %v4235_v23, %s5742_s13  ;;  %4250 = vrot.lane.b32.xlu0 %v4234_v24, %s5742_s13  ;;  %v4239_v23 = vmul.f32 %v4233_v61, %v7241_v50  ;;  %v4238_v24 = vmul.f32 %v4233_v61, %v7233_v22 }
 0xb63   :  { %3706 = vrot.lane.b32.xlu1 %v3687_v6, %s5741_s22  ;;  %3704 = vrot.lane.b32.xlu0 %v3686_v12, %s5741_s22  ;;  %v4427_v6 = vmul.f32 %v7441_v8, %v7209_v37  ;;  %v4426_v12 = vmul.f32 %v7441_v8, %v7198_v30 }
 0xb67   :  { %4256 = vrot.lane.b32.xlu1 %v4237_v19, %s5742_s13  ;;  %4254 = vrot.lane.b32.xlu0 %v4236_v48, %s5742_s13  ;;  %v3690_v19 = vmul.f32 %v3683_v18, %v7249_v42  ;;  %v3895_v48 = vmul.f32 %v7427_v28, %v7225_v13  ;;  %v4429_v18 = vmul.f32 %v7441_v8, %v7225_v13 }
 0xb6b   :  { %3710 = vrot.lane.b32.xlu1 %v3689_v29, %s5741_s22  ;;  %3708 = vrot.lane.b32.xlu0 %v3688_v53, %s5741_s22  ;;  %v3894_v29 = vmul.f32 %v7427_v28, %v7217_v47  ;;  %v4241_v53 = vmul.f32 %v4233_v61, %v7259_v58 }
 0xb6f   :  { %3910 = vrot.lane.b32.xlu1 %v3893_v62, %s8434_s15  ;;  %3908 = vrot.lane.b32.xlu0 %v3892_v26, %s8434_s15  ;;  %v4240_v62 = vmul.f32 %v4233_v61, %v7249_v42  ;;  %v4428_v26 = vmul.f32 %v7441_v8, %v7217_v47  ;;  %v3896_v61 = vmul.f32 %v7427_v28, %v7233_v22 }
 0xb73   :  { %4260 = vrot.lane.b32.xlu1 %v4239_v23, %s5742_s13  ;;  %4258 = vrot.lane.b32.xlu0 %v4238_v24, %s5742_s13  ;;  %v3897_v23 = vmul.f32 %v7427_v28, %v7241_v50  ;;  %v3473_v24 = vrot.slane %v7397_v3, 3 }
 0xb77   :  { %4444 = vrot.lane.b32.xlu1 %v4427_v6, %s8410_s25  ;;  %4442 = vrot.lane.b32.xlu0 %v4426_v12, %s8410_s25  ;;  %v3999_v6 = vrot.slane %v7399_v52, 3  ;;  %v4431_v12 = vmul.f32 %v7441_v8, %v7241_v50 }
 0xb7b   :  { %3714 = vrot.lane.b32.xlu1 %v3691_v2, %s5741_s22  ;;  %3712 = vrot.lane.b32.xlu0 %v3690_v19, %s5741_s22  ;;  %v4430_v2 = vmul.f32 %v7441_v8, %v7233_v22  ;;  %v7486_v19 = vmul.f32 %v3473_v24, %v7401_v11  ;;  %v4002_v24 = vrot.slane %v7399_v52, 1 }
 0xb7d   :  { %8435 = vst [vmem:[#allocation25_spill] sm:$0xff] %v7486_v19  ;;  %v7521_v25 = vmul.f32 %v4002_v24, %v7407_v21  ;;  %v7538_v24 = vsub.f32 0.0, %v7397_v3 }
 0xb7f   :  { %3914 = vrot.lane.b32.xlu1 %v3895_v48, %s8434_s15  ;;  %3912 = vrot.lane.b32.xlu0 %v3894_v29, %s8434_s15  ;;  %v7489_v48 = vmul.f32 %v3999_v6, %v7407_v21  ;;  %v7492_v29 = vrot.slane %v7397_v3, 2  ;;  %8441 = vst [vmem:[#allocation31_spill] sm:$0xff] %v7521_v25  ;;  %8445 = vst [vmem:[#allocation34_spill] sm:$0xff] %v7538_v24 }
 0xb81   :  { %8436 = vst [vmem:[#allocation26_spill] sm:$0xff] %v7489_v48  ;;  %8437 = vst [vmem:[#allocation27_spill] sm:$0xff] %v7492_v29 }
 0xb83   :  { %4264 = vrot.lane.b32.xlu1 %v4241_v53, %s5742_s13  ;;  %4262 = vrot.lane.b32.xlu0 %v4240_v62, %s5742_s13  ;;  %v3476_v53 = vrot.slane %v7397_v3, 1  ;;  %v7499_v62 = vmul.f32 %v7492_v29, %v7401_v11 }
 0xb85   :  { %8438 = vst [vmem:[#allocation28_spill] sm:$0xff] %v7499_v62 }
 0xb87   :  { %4448 = vrot.lane.b32.xlu1 %v4429_v18, %s8410_s25  ;;  %4446 = vrot.lane.b32.xlu0 %v4428_v26, %s8410_s25  ;;  %v7502_v18 = vsub.f32 0.0, %v7401_v11  ;;  %v3571_v26 = vrot.slane %v7486_v19, %v6497_v20 }
 0xb89   :  { %8439 = vst [vmem:[#allocation29_spill] sm:$0xff] %v7502_v18  ;;  %v3519_v6 = vrot.slane %v7502_v18, %v6586_v57 }
 0xb8b   :  { %3918 = vrot.lane.b32.xlu1 %v3897_v23, %s8434_s15  ;;  %3916 = vrot.lane.b32.xlu0 %v3896_v61, %s8434_s15  ;;  %v4121_v23 = vrot.slane %v7489_v48, %v6497_v20  ;;  %v7509_v61 = vmul.f32 %v3476_v53, %v7401_v11  ;;  %v7524_v53 = vrot.slane %v7399_v52, 2  ;;  %v3520_v29 = vmul.f32 %v3519_v6, %v7198_v30 }
 0xb8c   :  { %v3524_v3 = vmul.f32 %v3519_v6, %v7233_v22 }
 0xb8d   :  { %8440 = vst [vmem:[#allocation30_spill] sm:$0xff] %v7509_v61  ;;  %8442 = vst [vmem:[#allocation32_spill] sm:$0xff] %v7524_v53 }
 0xb8f   :  { %4452 = vrot.lane.b32.xlu1 %v4431_v12, %s8410_s25  ;;  %4450 = vrot.lane.b32.xlu0 %v4430_v2, %s8410_s25  ;;  %v3627_v12 = vrot.slane %v7509_v61, %v6586_v57  ;;  %v3735_v2 = vrot.slane %v7499_v62, %v6586_v57 }
 0xb93   :  { %3573 = vrot.lane.b32.xlu1 %v3571_v26, %s5743_s4  ;;  %4123 = vrot.lane.b32.xlu0 %v4121_v23, %s5743_s4  ;;  %v7530_v26 = vmul.f32 %v7524_v53, %v7407_v21  ;;  %v4177_v23 = vrot.slane %v7521_v25, %v6586_v57  ;;  %v3791_v53 = vrot.slane %v7538_v24, %v6598_v5  ;;  %v7548_v25 = vsub.f32 0.0, %v7399_v52 }
 0xb94   :  { %v3525_v52 = vmul.f32 %v3519_v6, %v7241_v50 }
 0xb95   :  { %8443 = vst [vmem:[#allocation33_spill] sm:$0xff] %v7530_v26  ;;  %8446 = vst [vmem:[#allocation35_spill] sm:$0xff] %v7548_v25 }
 0xb97   :  { %3629 = vrot.lane.b32.xlu1 %v3627_v12, %s5744_s1  ;;  %3737 = vrot.lane.b32.xlu0 %v3735_v2, %s5745_s10  ;;  %v4285_v12 = vrot.slane %v7530_v26, %v6586_v57  ;;  %v3522_v2 = vmul.f32 %v3519_v6, %v7217_v47 }
 0xb9b   :  { %4179 = vrot.lane.b32.xlu1 %v4177_v23, %s5744_s1  ;;  %3536 = vrot.lane.b32.xlu0 %v3520_v29, %s8444_s5  ;;  %v3521_v29 = vmul.f32 %v3519_v6, %v7209_v37  ;;  %v4341_v23 = vrot.slane %v7548_v25, %v6598_v5  ;;  %v3526_v5 = vmul.f32 %v3519_v6, %v7249_v42 }
 0xb9d   :  { %v4342_v31 = vmul.f32 %v4341_v23, %v7198_v30 }
 0xb9f   :  { %4287 = vrot.lane.b32.xlu1 %v4285_v12, %s5745_s10  ;;  %3540 = vrot.lane.b32.xlu0 %v3522_v2, %s8444_s5  ;;  %v3523_v12 = vmul.f32 %v3519_v6, %v7225_v13  ;;  %v3792_v2 = vmul.f32 %v3791_v53, %v7198_v30 }
 0xba3   :  { %3538 = vrot.lane.b32.xlu1 %v3521_v29, %s8444_s5  ;;  %3544 = vrot.lane.b32.xlu0 %v3524_v3, %s8444_s5  ;;  %v3793_v29 = vmul.f32 %v3791_v53, %v7209_v37  ;;  %v4343_v3 = vmul.f32 %v4341_v23, %v7209_v37 }
 0xba7   :  { %3542 = vrot.lane.b32.xlu1 %v3523_v12, %s8444_s5  ;;  %3808 = vrot.lane.b32.xlu0 %v3792_v2, %s5740_s9  ;;  %v3794_v12 = vmul.f32 %v3791_v53, %v7217_v47  ;;  %v3527_v2 = vmul.f32 %v3519_v6, %v7259_v58  ;;  %v3797_v6 = vmul.f32 %v3791_v53, %v7241_v50 }
 0xbab   :  { %3546 = vrot.lane.b32.xlu1 %v3525_v52, %s8444_s5  ;;  %4358 = vrot.lane.b32.xlu0 %v4342_v31, %s5746_s29  ;;  %v4344_v31 = vmul.f32 %v4341_v23, %v7217_v47  ;;  %v3795_v52 = vmul.f32 %v3791_v53, %v7225_v13 }
 0xbaf   :  { %3810 = vrot.lane.b32.xlu1 %v3793_v29, %s5740_s9  ;;  %3548 = vrot.lane.b32.xlu0 %v3526_v5, %s8444_s5  ;;  %v3796_v29 = vmul.f32 %v3791_v53, %v7233_v22  ;;  %v4345_v5 = vmul.f32 %v4341_v23, %v7225_v13 }
 0xbb3   :  { %4360 = vrot.lane.b32.xlu1 %v4343_v3, %s5746_s29  ;;  %3812 = vrot.lane.b32.xlu0 %v3794_v12, %s5740_s9  ;;  %v4346_v3 = vmul.f32 %v4341_v23, %v7233_v22  ;;  %v3798_v12 = vmul.f32 %v3791_v53, %v7249_v42 }
 0xbb7   :  { %3550 = vrot.lane.b32.xlu1 %v3527_v2, %s8444_s5  ;;  %4362 = vrot.lane.b32.xlu0 %v4344_v31, %s5746_s29  ;;  %v4347_v2 = vmul.f32 %v4341_v23, %v7241_v50  ;;  %v4348_v31 = vmul.f32 %v4341_v23, %v7249_v42 }
 0xbbb   :  { %3814 = vrot.lane.b32.xlu1 %v3795_v52, %s5740_s9  ;;  %3816 = vrot.lane.b32.xlu0 %v3796_v29, %s5740_s9  ;;  %v4049_v52 = vrot.slane %v7530_v26, %v6497_v20  ;;  %v3799_v29 = vmul.f32 %v3791_v53, %v7259_v58 }
 0xbbd   :  { %v4052_v25 = vmul.f32 %v4049_v52, %v7217_v47  ;;  %v4057_v48 = vmul.f32 %v4049_v52, %v7259_v58 }
 0xbbf   :  { %4364 = vrot.lane.b32.xlu1 %v4345_v5, %s5746_s29  ;;  %4366 = vrot.lane.b32.xlu0 %v4346_v3, %s5746_s29  ;;  %v4050_v5 = vmul.f32 %v4049_v52, %v7198_v30 }
 0xbc3   :  { %3818 = vrot.lane.b32.xlu1 %v3797_v6, %s5740_s9  ;;  %3820 = vrot.lane.b32.xlu0 %v3798_v12, %s5740_s9  ;;  %v4349_v12 = vmul.f32 %v4341_v23, %v7259_v58 }
 0xbc7   :  { %4368 = vrot.lane.b32.xlu1 %v4347_v2, %s5746_s29  ;;  %4370 = vrot.lane.b32.xlu0 %v4348_v31, %s5746_s29  ;;  %v4051_v31 = vmul.f32 %v4049_v52, %v7209_v37 }
 0xbcb   :  { %3822 = vrot.lane.b32.xlu1 %v3799_v29, %s5740_s9  ;;  %4066 = vrot.lane.b32.xlu0 %v4050_v5, %s8409_s26  ;;  %v4054_v29 = vmul.f32 %v4049_v52, %v7233_v22 }
 0xbcd   :  { %v7598_v3 = vpop.permute.xlu1 %3702  ;;  %v7600_v6 = vpop.permute.xlu0 %3700 }
 0xbcf   :  { %4372 = vrot.lane.b32.xlu1 %v4349_v12, %s5746_s29  ;;  %4070 = vrot.lane.b32.xlu0 %v4052_v25, %s8409_s26  ;;  %v4053_v12 = vmul.f32 %v4049_v52, %v7225_v13  ;;  %v4056_v25 = vmul.f32 %v4049_v52, %v7249_v42 }
 0xbd1   :  { %v7606_v2 = vpop.permute.xlu1 %4252  ;;  %v7608_v53 = vpop.permute.xlu0 %4250 }
 0xbd3   :  { %4068 = vrot.lane.b32.xlu1 %v4051_v31, %s8409_s26  ;;  %4074 = vrot.lane.b32.xlu0 %v4054_v29, %s8409_s26  ;;  %v4055_v31 = vmul.f32 %v4049_v52, %v7241_v50 }
 0xbd5   :  { %v7614_v5 = vpop.permute.xlu1 %3706  ;;  %v7616_v23 = vpop.permute.xlu0 %3704 }
 0xbd7   :  { %4072 = vrot.lane.b32.xlu1 %v4053_v12, %s8409_s26  ;;  %4078 = vrot.lane.b32.xlu0 %v4056_v25, %s8409_s26 }
 0xbd9   :  { %v7622_v24 = vpop.permute.xlu1 %4256  ;;  %v7624_v26 = vpop.permute.xlu0 %4254 }
 0xbda   :  { %8447 = vst [vmem:[#allocation36_spill] sm:$0xff] %v7622_v24  ;;  %8448 = vst [vmem:[#allocation37_spill] sm:$0xff] %v7624_v26  ;;  %v4039_v24 = vadd.f32 %v7325_v54, %v7315_v35 }
 0xbdb   :  { %4076 = vrot.lane.b32.xlu1 %v4055_v31, %s8409_s26 }
 0xbdd   :  { %v7628_v29 = vpop.permute.xlu1 %3710  ;;  %v7630_v11 = vpop.permute.xlu0 %3708 }
 0xbde   :  { %8449 = vst [vmem:[#allocation38_spill] sm:$0xff] %v7628_v29  ;;  %8450 = vst [vmem:[#allocation39_spill] sm:$0xff] %v7630_v11 }
 0xbdf   :  { %4080 = vrot.lane.b32.xlu1 %v4057_v48, %s8409_s26  ;;  %s5747_s26 = smov 126  }
 0xbe1   :  { %v7634_v18 = vpop.permute.xlu1 %3910  ;;  %v7636_v12 = vpop.permute.xlu0 %3908 }
 0xbe5   :  { %v7638_v25 = vpop.permute.xlu1 %4260  ;;  %v7640_v61 = vpop.permute.xlu0 %4258 }
 0xbe6   :  { %8451 = vst [vmem:[#allocation40_spill] sm:$0xff] %v7638_v25  ;;  %8452 = vst [vmem:[#allocation41_spill] sm:$0xff] %v7640_v61 }
 0xbe9   :  { %v7642_v19 = vpop.permute.xlu1 %4444  ;;  %v7644_v27 = vpop.permute.xlu0 %4442 }
 0xbed   :  { %v7646_v31 = vpop.permute.xlu1 %3714  ;;  %v7648_v4 = vpop.permute.xlu0 %3712 }
 0xbee   :  { %8453 = vst [vmem:[#allocation42_spill] sm:$0xff] %v7646_v31  ;;  %8454 = vst [vmem:[#allocation43_spill] sm:$0xff] %v7648_v4 }
 0xbf1   :  { %v7650_v7 = vpop.permute.xlu1 %3914  ;;  %v7652_v52 = vpop.permute.xlu0 %3912 }
 0xbf2   :  { %8455 = vst [vmem:[#allocation44_spill] sm:$0xff] %v7650_v7  ;;  %8456 = vst [vmem:[#allocation45_spill] sm:$0xff] %v7652_v52 }
 0xbf5   :  { %v7654_v48 = vpop.permute.xlu1 %4264  ;;  %v7656_v17 = vpop.permute.xlu0 %4262 }
 0xbf6   :  { %8457 = vst [vmem:[#allocation46_spill] sm:$0xff] %v7654_v48  ;;  %8458 = vst [vmem:[#allocation47_spill] sm:$0xff] %v7656_v17 }
 0xbf9   :  { %v7658_v39 = vpop.permute.xlu1 %4448  ;;  %v7660_v59 = vpop.permute.xlu0 %4446 }
 0xbfa   :  { %8459 = vst [vmem:[#allocation48_spill] sm:$0xff] %v7658_v39  ;;  %8460 = vst [vmem:[#allocation49_spill] sm:$0xff] %v7660_v59 }
 0xbfd   :  { %v7662_v43 = vpop.permute.xlu1 %3918  ;;  %v7664_v16 = vpop.permute.xlu0 %3916 }
 0xbfe   :  { %8461 = vst [vmem:[#allocation50_spill] sm:$0xff] %v7662_v43  ;;  %8462 = vst [vmem:[#allocation51_spill] sm:$0xff] %v7664_v16 }
 0xc01   :  { %v7666_v61 = vpop.permute.xlu1 %4452  ;;  %v7668_v31 = vpop.permute.xlu0 %4450 }
 0xc02   :  { %8463 = vst [vmem:[#allocation52_spill] sm:$0xff] %v7666_v61  ;;  %8464 = vst [vmem:[#allocation53_spill] sm:$0xff] %v7668_v31 }
 0xc05   :  { %v7670_v4 = vpop.permute.xlu1 %3573  ;;  %v7676_v48 = vpop.permute.xlu0 %4123 }
 0xc06   :  { %v3577_v25 = vmul.f32 %v7670_v4, %v7209_v37  ;;  %v3576_v17 = vmul.f32 %v7670_v4, %v7198_v30  ;;  %v4127_v31 = vmul.f32 %v7676_v48, %v7209_v37  ;;  %v4126_v61 = vmul.f32 %v7676_v48, %v7198_v30 }
 0xc07   :  { %v3579_v11 = vmul.f32 %v7670_v4, %v7225_v13  ;;  %v3583_v52 = vmul.f32 %v7670_v4, %v7259_v58 }
 0xc08   :  { %3594 = vrot.lane.b32.xlu1 %v3577_v25, %s5747_s26  ;;  %3592 = vrot.lane.b32.xlu0 %v3576_v17, %s5747_s26 }
 0xc09   :  { %v7680_v16 = vpop.permute.xlu1 %3629 }
 0xc0a   :  { %v3633_v43 = vmul.f32 %v7680_v16, %v7209_v37  ;;  %v3632_v25 = vmul.f32 %v7680_v16, %v7198_v30  ;;  %v3635_v40 = vmul.f32 %v7680_v16, %v7225_v13 }
 0xc0c   :  { %4144 = vrot.lane.b32.xlu1 %v4127_v31, %s8444_s5  ;;  %4142 = vrot.lane.b32.xlu0 %v4126_v61, %s8444_s5  ;;  %v7702_v61 = vpop.permute.xlu0 %3737 }
 0xc0d   :  { %v7692_v44 = vpop.permute.xlu1 %4179  ;;  %v3741_v63 = vmul.f32 %v7702_v61, %v7209_v37  ;;  %v3743_v15 = vmul.f32 %v7702_v61, %v7225_v13 }
 0xc0e   :  { %v4183_v17 = vmul.f32 %v7692_v44, %v7209_v37  ;;  %v4182_v31 = vmul.f32 %v7692_v44, %v7198_v30 }
 0xc10   :  { %3650 = vrot.lane.b32.xlu1 %v3633_v43, %s5742_s13  ;;  %3648 = vrot.lane.b32.xlu0 %v3632_v25, %s5742_s13  ;;  %v3578_v43 = vmul.f32 %v7670_v4, %v7217_v47  ;;  %v4129_v25 = vmul.f32 %v7676_v48, %v7225_v13 }
 0xc11   :  { %v7704_v0 = vpop.permute.xlu1 %4287 }
 0xc12   :  { %v4291_v59 = vmul.f32 %v7704_v0, %v7209_v37  ;;  %v4130_v37 = vmul.f32 %v7676_v48, %v7233_v22 }
 0xc14   :  { %4200 = vrot.lane.b32.xlu1 %v4183_v17, %s5747_s26  ;;  %4198 = vrot.lane.b32.xlu0 %v4182_v31, %s5747_s26  ;;  %v4128_v17 = vmul.f32 %v7676_v48, %v7217_v47  ;;  %v7716_v31 = vpop.permute.xlu0 %3536 }
 0xc15   :  { %v7718_v29 = vpop.permute.xlu1 %3538 }
 0xc18   :  { %3598 = vrot.lane.b32.xlu1 %v3579_v11, %s5747_s26  ;;  %3596 = vrot.lane.b32.xlu0 %v3578_v43, %s5747_s26  ;;  %v3634_v11 = vmul.f32 %v7680_v16, %v7217_v47  ;;  %v7728_v43 = vpop.permute.xlu0 %3540 }
 0xc19   :  { %v7730_v55 = vpop.permute.xlu1 %3542 }
 0xc1c   :  { %4148 = vrot.lane.b32.xlu1 %v4129_v25, %s8444_s5  ;;  %4146 = vrot.lane.b32.xlu0 %v4128_v17, %s8444_s5  ;;  %v3740_v25 = vmul.f32 %v7702_v61, %v7198_v30  ;;  %v4185_v17 = vmul.f32 %v7692_v44, %v7225_v13 }
 0xc1d   :  { %v7744_v45 = vpop.permute.xlu1 %3546 }
 0xc1e   :  { %8466 = vst [vmem:[#allocation55_spill] sm:$0xff] %v7744_v45  ;;  %v3581_v45 = vmul.f32 %v7670_v4, %v7241_v50 }
 0xc20   :  { %3654 = vrot.lane.b32.xlu1 %v3635_v40, %s5742_s13  ;;  %3652 = vrot.lane.b32.xlu0 %v3634_v11, %s5742_s13  ;;  %v4184_v40 = vmul.f32 %v7692_v44, %v7217_v47  ;;  %v7742_v11 = vpop.permute.xlu0 %3544 }
 0xc21   :  { %8465 = vst [vmem:[#allocation54_spill] sm:$0xff] %v7742_v11  ;;  %v7756_v39 = vpop.permute.xlu1 %3810 }
 0xc24   :  { %3758 = vrot.lane.b32.xlu1 %v3741_v63, %s5746_s29  ;;  %3756 = vrot.lane.b32.xlu0 %v3740_v25, %s5746_s29  ;;  %v4290_v63 = vmul.f32 %v7704_v0, %v7198_v30  ;;  %v7754_v25 = vpop.permute.xlu0 %3808  ;;  %v4131_v30 = vmul.f32 %v7676_v48, %v7241_v50 }
 0xc28   :  { %4204 = vrot.lane.b32.xlu1 %v4185_v17, %s5747_s26  ;;  %4202 = vrot.lane.b32.xlu0 %v4184_v40, %s5747_s26  ;;  %v3580_v17 = vmul.f32 %v7670_v4, %v7233_v22  ;;  %v7770_v40 = vpop.permute.xlu1 %4360 }
 0xc2c   :  { %4308 = vrot.lane.b32.xlu1 %v4291_v59, %s5741_s22  ;;  %4306 = vrot.lane.b32.xlu0 %v4290_v63, %s5741_s22  ;;  %v7768_v59 = vpop.permute.xlu0 %4358  ;;  %v3637_v63 = vmul.f32 %v7680_v16, %v7241_v50  ;;  %v7782_v11 = vpop.permute.xlu1 %3550 }
 0xc2d   :  { %8468 = vst [vmem:[#allocation57_spill] sm:$0xff] %v7782_v11  ;;  %v4293_v11 = vmul.f32 %v7704_v0, %v7225_v13  ;;  %v4132_v13 = vmul.f32 %v7676_v48, %v7249_v42 }
 0xc30   :  { %3602 = vrot.lane.b32.xlu1 %v3581_v45, %s5747_s26  ;;  %3600 = vrot.lane.b32.xlu0 %v3580_v17, %s5747_s26  ;;  %v3636_v45 = vmul.f32 %v7680_v16, %v7233_v22  ;;  %v7780_v17 = vpop.permute.xlu0 %3548 }
 0xc31   :  { %8467 = vst [vmem:[#allocation56_spill] sm:$0xff] %v7780_v17  ;;  %v7796_v17 = vpop.permute.xlu1 %3814 }
 0xc32   :  { %8470 = vst [vmem:[#allocation59_spill] sm:$0xff] %v7796_v17 }
 0xc34   :  { %4152 = vrot.lane.b32.xlu1 %v4131_v30, %s8444_s5  ;;  %4150 = vrot.lane.b32.xlu0 %v4130_v37, %s8444_s5  ;;  %v3742_v30 = vmul.f32 %v7702_v61, %v7217_v47  ;;  %v4187_v37 = vmul.f32 %v7692_v44, %v7241_v50 }
 0xc35   :  { %v7808_v14 = vpop.permute.xlu1 %4364 }
 0xc36   :  { %8472 = vst [vmem:[#allocation61_spill] sm:$0xff] %v7808_v14 }
 0xc38   :  { %3658 = vrot.lane.b32.xlu1 %v3637_v63, %s5742_s13  ;;  %3656 = vrot.lane.b32.xlu0 %v3636_v45, %s5742_s13  ;;  %v4186_v63 = vmul.f32 %v7692_v44, %v7233_v22  ;;  %v7794_v45 = vpop.permute.xlu0 %3812 }
 0xc39   :  { %8469 = vst [vmem:[#allocation58_spill] sm:$0xff] %v7794_v45 }
 0xc3c   :  { %3762 = vrot.lane.b32.xlu1 %v3743_v15, %s5746_s29  ;;  %3760 = vrot.lane.b32.xlu0 %v3742_v30, %s5746_s29  ;;  %v4292_v15 = vmul.f32 %v7704_v0, %v7217_v47  ;;  %v7806_v30 = vpop.permute.xlu0 %4362  ;;  %v4133_v47 = vmul.f32 %v7676_v48, %v7259_v58 }
 0xc3d   :  { %8471 = vst [vmem:[#allocation60_spill] sm:$0xff] %v7806_v30  ;;  %v7926_v30 = vsub.f32 0.0, %v7407_v21 }
 0xc3f   :  { %8485 = vst [vmem:[#allocation74_spill] sm:$0xff] %v7926_v30  ;;  %v7940_v21 = vrot.slane %v7926_v30, %v6586_v57 }
 0xc40   :  { %4208 = vrot.lane.b32.xlu1 %v4187_v37, %s5747_s26  ;;  %4206 = vrot.lane.b32.xlu0 %v4186_v63, %s5747_s26  ;;  %v3582_v37 = vmul.f32 %v7670_v4, %v7249_v42  ;;  %v7822_v63 = vpop.permute.xlu1 %3818  ;;  %v3639_v4 = vmul.f32 %v7680_v16, %v7259_v58 }
 0xc41   :  { %8474 = vst [vmem:[#allocation63_spill] sm:$0xff] %v7822_v63 }
 0xc44   :  { %4312 = vrot.lane.b32.xlu1 %v4293_v11, %s5741_s22  ;;  %4310 = vrot.lane.b32.xlu0 %v4292_v15, %s5741_s22  ;;  %v7820_v11 = vpop.permute.xlu0 %3816  ;;  %v7834_v48 = vpop.permute.xlu1 %4368 }
 0xc45   :  { %8473 = vst [vmem:[#allocation62_spill] sm:$0xff] %v7820_v11  ;;  %8476 = vst [vmem:[#allocation65_spill] sm:$0xff] %v7834_v48 }
 0xc48   :  { %3606 = vrot.lane.b32.xlu1 %v3583_v52, %s5747_s26  ;;  %3604 = vrot.lane.b32.xlu0 %v3582_v37, %s5747_s26  ;;  %v3638_v52 = vmul.f32 %v7680_v16, %v7249_v42  ;;  %v7832_v15 = vpop.permute.xlu0 %4366  ;;  %v3745_v37 = vmul.f32 %v7702_v61, %v7241_v50  ;;  %v4189_v16 = vmul.f32 %v7692_v44, %v7259_v58 }
 0xc49   :  { %8475 = vst [vmem:[#allocation64_spill] sm:$0xff] %v7832_v15  ;;  %v4295_v15 = vmul.f32 %v7704_v0, %v7241_v50  ;;  %v4296_v50 = vmul.f32 %v7704_v0, %v7249_v42 }
 0xc4c   :  { %4156 = vrot.lane.b32.xlu1 %v4133_v47, %s8444_s5  ;;  %4154 = vrot.lane.b32.xlu0 %v4132_v13, %s8444_s5  ;;  %v3744_v47 = vmul.f32 %v7702_v61, %v7233_v22  ;;  %v4188_v13 = vmul.f32 %v7692_v44, %v7249_v42 }
 0xc50   :  { %3662 = vrot.lane.b32.xlu1 %v3639_v4, %s5742_s13  ;;  %3660 = vrot.lane.b32.xlu0 %v3638_v52, %s5742_s13  ;;  %v7846_v4 = vpop.permute.xlu0 %3820  ;;  %v7848_v52 = vpop.permute.xlu1 %3822  ;;  %s5751_s13 = smov 6  }
 0xc51   :  { %8477 = vst [vmem:[#allocation66_spill] sm:$0xff] %v7846_v4  ;;  %8478 = vst [vmem:[#allocation67_spill] sm:$0xff] %v7848_v52  ;;  %v3747_v4 = vmul.f32 %v7702_v61, %v7259_v58 }
 0xc54   :  { %3766 = vrot.lane.b32.xlu1 %v3745_v37, %s5746_s29  ;;  %3764 = vrot.lane.b32.xlu0 %v3744_v47, %s5746_s29  ;;  %v4294_v37 = vmul.f32 %v7704_v0, %v7233_v22  ;;  %v7858_v47 = vpop.permute.xlu0 %4370  ;;  %v7860_v44 = vpop.permute.xlu1 %4372  ;;  %v4297_v22 = vmul.f32 %v7704_v0, %v7259_v58  ;;  %v4433_v0 = vmul.f32 %v7441_v8, %v7259_v58 }
 0xc55   :  { %8479 = vst [vmem:[#allocation68_spill] sm:$0xff] %v7858_v47  ;;  %8480 = vst [vmem:[#allocation69_spill] sm:$0xff] %v7860_v44 }
 0xc58   :  { %4212 = vrot.lane.b32.xlu1 %v4189_v16, %s5747_s26  ;;  %4210 = vrot.lane.b32.xlu0 %v4188_v13, %s5747_s26  ;;  %v3746_v16 = vmul.f32 %v7702_v61, %v7249_v42  ;;  %v4069_v13 = vpop.permute.xlu1 %4068  ;;  %v3898_v61 = vmul.f32 %v7427_v28, %v7249_v42  ;;  %s5753_s26 = smov 13  }
 0xc5c   :  { %4316 = vrot.lane.b32.xlu1 %v4295_v15, %s5741_s22  ;;  %4314 = vrot.lane.b32.xlu0 %v4294_v37, %s5741_s22  ;;  %v4067_v15 = vpop.permute.xlu0 %4066  ;;  %v3899_v37 = vmul.f32 %v7427_v28, %v7259_v58  ;;  %v4495_v28 = vld [vmem:[%s8334_s21] sm:$0x3] }
 0xc60   :  { %3770 = vrot.lane.b32.xlu1 %v3747_v4, %s5746_s29  ;;  %3768 = vrot.lane.b32.xlu0 %v3746_v16, %s5746_s29  ;;  %v7880_v4 = vpop.permute.xlu0 %4070  ;;  %v7882_v16 = vpop.permute.xlu1 %4072 }
 0xc64   :  { %4320 = vrot.lane.b32.xlu1 %v4297_v22, %s5741_s22  ;;  %4318 = vrot.lane.b32.xlu0 %v4296_v50, %s5741_s22  ;;  %v4432_v22 = vmul.f32 %v7441_v8, %v7249_v42  ;;  %v7893_v50 = vpop.permute.xlu0 %4074  ;;  %s5750_s22 = smov 10  }
 0xc65   :  { %8481 = vst [vmem:[#allocation70_spill] sm:$0xff] %v7893_v50 }
 0xc68   :  { %3922 = vrot.lane.b32.xlu1 %v3899_v37, %s8434_s15  ;;  %3920 = vrot.lane.b32.xlu0 %v3898_v61, %s8434_s15  ;;  %v7895_v37 = vpop.permute.xlu1 %4076  ;;  %v7897_v61 = vpop.permute.xlu0 %4078  ;;  %s5752_s15 = smov 11  }
 0xc69   :  { %8482 = vst [vmem:[#allocation71_spill] sm:$0xff] %v7895_v37  ;;  %8483 = vst [vmem:[#allocation72_spill] sm:$0xff] %v7897_v61  ;;  %v5707_v37 = vld [vmem:[%s8331_s18] sm:$0xff] }
 0xc6a   :  { %v4102_v56 = vmul.f32 %v5707_v37, %v7940_v21 }
 0xc6c   :  { %4456 = vrot.lane.b32.xlu1 %v4433_v0, %s8410_s25  ;;  %4454 = vrot.lane.b32.xlu0 %v4432_v22, %s8410_s25  ;;  %v7899_v47 = vpop.permute.xlu1 %4080  ;;  %v7903_v22 = vrot.slane %v7499_v62, %v6497_v20  ;;  %v5708_v62 = vld [vmem:[%s8331_s18 + $0x8] sm:$0xff] }
 0xc6d   :  { %8484 = vst [vmem:[#allocation73_spill] sm:$0xff] %v7899_v47  ;;  %v5706_v47 = vld [vmem:[%s8330_s19 + $0x8] sm:$0xff] }
 0xc6e   :  { %v3489_v61 = vadd.f32 %v5706_v47, %v7315_v35  ;;  %v3500_v20 = vmul.f32 %v5707_v37, %v7903_v22  ;;  %v3501_v50 = vmul.f32 %v5708_v62, %v7903_v22 }
 0xc70   :  { %4498 = vperm.xlu0 %5609, %v4495_v28   ;;  %v5705_v28 = vld [vmem:[%s8330_s19] sm:$0xff]  ;;  %v3509_v14 = vadd.f32 %v3501_v50, %v3489_v61  ;;  %v4090_v61 = vadd.f32 %v4067_v15, %v4038_v46 }
 0xc71   :  { %v3488_v63 = vadd.f32 %v5705_v28, %v7311_v49  ;;  %v4103_v49 = vmul.f32 %v5708_v62, %v7940_v21 }
 0xc72   :  { %v3561_v36 = vadd.f32 %v7718_v29, %v3509_v14  ;;  %v4110_v17 = vadd.f32 %v4102_v56, %v4090_v61 }
 0xc73   :  { %v3508_v47 = vadd.f32 %v3500_v20, %v3488_v63 }
 0xc75   :  { %v3560_v38 = vadd.f32 %v7716_v31, %v3508_v47  ;;  %v4091_v31 = vadd.f32 %v4069_v13, %v4039_v24 }
 0xc77   :  { %v4111_v45 = vadd.f32 %v4103_v49, %v4091_v31 }
 0xc7a   :  { %v3595_v58 = vpop.permute.xlu1 %3594  ;;  %v3593_v44 = vpop.permute.xlu0 %3592 }
 0xc7b   :  { %v3617_v63 = vadd.f32 %v3595_v58, %v3561_v36  ;;  %v3616_v50 = vadd.f32 %v3593_v44, %v3560_v38 }
 0xc7e   :  { %v4145_v42 = vpop.permute.xlu1 %4144  ;;  %v4143_v8 = vpop.permute.xlu0 %4142 }
 0xc7f   :  { %v4167_v36 = vadd.f32 %v4145_v42, %v4111_v45  ;;  %v4166_v38 = vadd.f32 %v4143_v8, %v4110_v17  ;;  %v5709_v17 = vld [vmem:[%s8330_s19 + $0x10] sm:$0xff] }
 0xc80   :  { %v3490_v45 = vadd.f32 %v5709_v17, %v7309_v1 }
 0xc82   :  { %v3651_v0 = vpop.permute.xlu1 %3650  ;;  %v3649_v52 = vpop.permute.xlu0 %3648 }
 0xc83   :  { %v3673_v20 = vadd.f32 %v3651_v0, %v3617_v63  ;;  %v3672_v14 = vadd.f32 %v3649_v52, %v3616_v50 }
 0xc85   :  { %v3725_v35 = vadd.f32 %v7598_v3, %v3673_v20  ;;  %v3724_v54 = vadd.f32 %v7600_v6, %v3672_v14 }
 0xc86   :  { %v4201_v48 = vpop.permute.xlu1 %4200  ;;  %v4199_v11 = vpop.permute.xlu0 %4198 }
 0xc87   :  { %v4223_v44 = vadd.f32 %v4201_v48, %v4167_v36  ;;  %v4222_v52 = vadd.f32 %v4199_v11, %v4166_v38  ;;  %v4041_v36 = vadd.f32 %v7313_v32, %v7329_v60 }
 0xc89   :  { %v4275_v3 = vadd.f32 %v7606_v2, %v4223_v44  ;;  %v4274_v6 = vadd.f32 %v7608_v53, %v4222_v52  ;;  %v5712_v53 = vld [vmem:[%s8331_s18 + $0x18] sm:$0xff] }
 0xc8a   :  { %v7921_v7 = vpop.permute.xlu1 %3598  ;;  %v7923_v28 = vpop.permute.xlu0 %3596  ;;  %v4105_v52 = vmul.f32 %v5712_v53, %v7940_v21 }
 0xc8e   :  { %v7932_v33 = vpop.permute.xlu1 %4148  ;;  %v7934_v26 = vpop.permute.xlu0 %4146 }
 0xc92   :  { %v3655_v29 = vpop.permute.xlu1 %3654  ;;  %v3653_v47 = vpop.permute.xlu0 %3652 }
 0xc96   :  { %v3759_v57 = vpop.permute.xlu1 %3758  ;;  %v3757_v30 = vpop.permute.xlu0 %3756 }
 0xc97   :  { %v3781_v46 = vadd.f32 %v3759_v57, %v3725_v35  ;;  %v3780_v24 = vadd.f32 %v3757_v30, %v3724_v54  ;;  %v5710_v30 = vld [vmem:[%s8330_s19 + $0x18] sm:$0xff] }
 0xc98   :  { %v3491_v11 = vadd.f32 %v5710_v30, %v7313_v32 }
 0xc99   :  { %v3833_v62 = vadd.f32 %v7756_v39, %v3781_v46  ;;  %v3832_v37 = vadd.f32 %v7754_v25, %v3780_v24  ;;  %v5711_v39 = vld [vmem:[%s8331_s18 + $0x10] sm:$0xff]  ;;  %v3503_v25 = vmul.f32 %v5712_v53, %v7903_v22  ;;  %v4093_v24 = vadd.f32 %v7882_v16, %v4041_v36 }
 0xc9a   :  { %v7946_v15 = vpop.permute.xlu1 %4204  ;;  %v7948_v13 = vpop.permute.xlu0 %4202  ;;  %v3502_v2 = vmul.f32 %v5711_v39, %v7903_v22 }
 0xc9b   :  { %v3881_v42 = vadd.f32 %v7341_v34, %v3833_v62  ;;  %v3880_v8 = vadd.f32 %v7343_v9, %v3832_v37  ;;  %v3511_v20 = vadd.f32 %v3503_v25, %v3491_v11  ;;  %v4104_v62 = vmul.f32 %v5711_v39, %v7940_v21 }
 0xc9c   :  { %v3510_v31 = vadd.f32 %v3502_v2, %v3490_v45  ;;  %v4113_v37 = vadd.f32 %v4105_v52, %v4093_v24 }
 0xc9d   :  { %v3933_v56 = vadd.f32 %v7634_v18, %v3881_v42  ;;  %v3932_v35 = vadd.f32 %v7636_v12, %v3880_v8  ;;  %v4040_v18 = vadd.f32 %v7309_v1, %v7331_v41  ;;  %v8489_v42 = vld [vmem:[#allocation36_spill] sm:$0xff] }
 0xc9e   :  { %v4309_v48 = vpop.permute.xlu1 %4308  ;;  %v4307_v58 = vpop.permute.xlu0 %4306  ;;  %v3562_v54 = vadd.f32 %v7728_v43, %v3510_v31  ;;  %v4169_v17 = vadd.f32 %v7932_v33, %v4113_v37  ;;  %v5715_v31 = vld [vmem:[%s8331_s18 + $0x20] sm:$0xff] }
 0xc9f   :  { %v4331_v0 = vadd.f32 %v4309_v48, %v4275_v3  ;;  %v4330_v63 = vadd.f32 %v4307_v58, %v4274_v6  ;;  %v3941_v43 = vmax.f32 %v3933_v56, 0.0  ;;  %v8488_v48 = vld [vmem:[#allocation58_spill] sm:$0xff]  ;;  %v5716_v56 = vld [vmem:[%s8331_s18 + $0x28] sm:$0xff] }
 0xca0   :  { %v4225_v2 = vadd.f32 %v7946_v15, %v4169_v17 }
 0xca1   :  { %v4383_v50 = vadd.f32 %v7770_v40, %v4331_v0  ;;  %v4382_v61 = vadd.f32 %v7768_v59, %v4330_v63  ;;  %v3563_v40 = vadd.f32 %v7730_v55, %v3511_v20  ;;  %v3940_v55 = vmax.f32 %v3932_v35, 0.0  ;;  %v8490_v0 = vld [vmem:[#allocation37_spill] sm:$0xff]  ;;  %v8491_v63 = vld [vmem:[#allocation4_spill] sm:$0xff] }
 0xca2   :  { %v7974_v14 = vpop.permute.xlu1 %3602  ;;  %v7976_v49 = vpop.permute.xlu0 %3600  ;;  %v4277_v8 = vadd.f32 %v8489_v42, %v4225_v2  ;;  %v3504_v20 = vmul.f32 %v5715_v31, %v7903_v22  ;;  %v3505_v35 = vmul.f32 %v5716_v56, %v7903_v22 }
 0xca3   :  { %v4415_v34 = vadd.f32 %v7345_v10, %v4383_v50  ;;  %v4414_v9 = vadd.f32 %v7347_v51, %v4382_v61  ;;  %v3619_v12 = vadd.f32 %v7921_v7, %v3563_v40  ;;  %v3618_v10 = vadd.f32 %v7923_v28, %v3562_v54  ;;  %v8492_v50 = vld [vmem:[#allocation6_spill] sm:$0xff]  ;;  %v8493_v54 = vld [vmem:[#allocation11_spill] sm:$0xff] }
 0xca5   :  { %v4467_v59 = vadd.f32 %v7642_v19, %v4415_v34  ;;  %v4466_v57 = vadd.f32 %v7644_v27, %v4414_v9  ;;  %v4092_v27 = vadd.f32 %v7880_v4, %v4040_v18  ;;  %v3675_v32 = vadd.f32 %v3655_v29, %v3619_v12  ;;  %v8495_v12 = vld [vmem:[#allocation61_spill] sm:$0xff] }
 0xca6   :  { %v7992_v38 = vpop.permute.xlu1 %4152  ;;  %v7994_v51 = vpop.permute.xlu0 %4150  ;;  %v3674_v60 = vadd.f32 %v3653_v47, %v3618_v10  ;;  %v8486_v47 = vmov 0.0  }
 0xca7   :  { %v4475_v46 = vmax.f32 %v4467_v59, 0.0  ;;  %v4474_v19 = vmax.f32 %v4466_v57, 0.0  ;;  %v4112_v4 = vadd.f32 %v4104_v62, %v4092_v27  ;;  %v3727_v16 = vadd.f32 %v7614_v5, %v3675_v32  ;;  %v8487_v5 = vld [vmem:[#allocation59_spill] sm:$0xff]  ;;  %v8494_v59 = vld [vmem:[#allocation12_spill] sm:$0xff]  ;;  %v8500_v62 = vld [vmem:[#allocation14_spill] sm:$0xff] }
 0xca8   :  { %v3726_v29 = vadd.f32 %v7616_v23, %v3674_v60  ;;  %v8497_v32 = vld [vmem:[#allocation44_spill] sm:$0xff] }
 0xca9   :  { %v4482_v1 = vsel %vm1345_vm0, %v3940_v55, %v4474_v19  ;;  %v4483_v41 = vsel %vm1345_vm0, %v3941_v43, %v4475_v46  ;;  %v4168_v45 = vadd.f32 %v7934_v26, %v4112_v4  ;;  %v5713_v26 = vld [vmem:[%s8330_s19 + $0x20] sm:$0xff]  ;;  %v8496_v43 = vld [vmem:[#allocation60_spill] sm:$0xff] }
 0xcaa   :  { %v8000_v7 = vpop.permute.xlu1 %3658  ;;  %v8002_v28 = vpop.permute.xlu0 %3656  ;;  %v4490_v44 = vpack.c.bf16 %v4483_v41, %v4482_v1  ;;  %v3492_v15 = vadd.f32 %v5713_v26, %v8491_v63  ;;  %v8498_v1 = vld [vmem:[#allocation45_spill] sm:$0xff]  ;;  %v8501_v4 = vld [vmem:[#allocation54_spill] sm:$0xff] }
 0xcab   :  { %v4224_v39 = vadd.f32 %v7948_v13, %v4168_v45  ;;  %v5714_v13 = vld [vmem:[%s8330_s19 + $0x28] sm:$0xff]  ;;  %v8504_v45 = vld [vmem:[#allocation49_spill] sm:$0xff] }
 0xcac   :  { %5556 = vmatpush3.bf16.msra.mxu1 %v4490_v44  ;;  %v3493_v61 = vadd.f32 %v5714_v13, %v8492_v50  ;;  %v3512_v46 = vadd.f32 %v3504_v20, %v3492_v15  ;;  %v8499_v44 = vld [vmem:[#allocation13_spill] sm:$0xff]  ;;  %v5717_v15 = vld [vmem:[%s8330_s19 + $0x30] sm:$0xff]  ;;  %v8507_v13 = vld [vmem:[#allocation3_spill] sm:$0xff] }
 0xcad   :  { %5557 = vmatprep.subr.bf16.mxu1 %v8486_v47  ;;  %v4276_v33 = vadd.f32 %v8490_v0, %v4224_v39  ;;  %v8506_v39 = vld [vmem:[#allocation8_spill] sm:$0xff]  ;;  %v8509_v20 = vld [vmem:[#allocation71_spill] sm:$0xff] }
 0xcae   :  { %v3763_v3 = vpop.permute.xlu1 %3762  ;;  %v3761_v6 = vpop.permute.xlu0 %3760  ;;  %v3513_v19 = vadd.f32 %v3505_v35, %v3493_v61  ;;  %v8508_v61 = vld [vmem:[#allocation70_spill] sm:$0xff] }
 0xcaf   :  { %v3783_v30 = vadd.f32 %v3763_v3, %v3727_v16  ;;  %v3782_v11 = vadd.f32 %v3761_v6, %v3726_v29  ;;  %v3564_v16 = vadd.f32 %v8501_v4, %v3512_v46  ;;  %v8502_v29 = vld [vmem:[#allocation55_spill] sm:$0xff]  ;;  %v8503_v6 = vld [vmem:[#allocation48_spill] sm:$0xff] }
 0xcb0   :  { %v3565_v3 = vadd.f32 %v8502_v29, %v3513_v19 }
 0xcb1   :  { %v3835_v23 = vadd.f32 %v8487_v5, %v3783_v30  ;;  %v3834_v58 = vadd.f32 %v8488_v48, %v3782_v11  ;;  %v8505_v11 = vld [vmem:[#allocation7_spill] sm:$0xff]  ;;  %v4042_v5 = vadd.f32 %v8506_v39, %v8491_v63  ;;  %v3620_v48 = vadd.f32 %v7976_v49, %v3564_v16 }
 0xcb2   :  { %v8013_v53 = vpop.permute.xlu1 %4208  ;;  %v8015_v25 = vpop.permute.xlu0 %4206  ;;  %v4043_v2 = vadd.f32 %v8505_v11, %v8492_v50  ;;  %v3494_v50 = vadd.f32 %v5717_v15, %v8507_v13  ;;  %v8520_v15 = vld [vmem:[#allocation62_spill] sm:$0xff] }
 0xcb3   :  { %v3883_v40 = vadd.f32 %v8493_v54, %v3835_v23  ;;  %v3882_v57 = vadd.f32 %v8494_v59, %v3834_v58  ;;  %v3621_v23 = vadd.f32 %v7974_v14, %v3565_v3  ;;  %v4094_v63 = vadd.f32 %v8508_v61, %v4042_v5  ;;  %v5718_v54 = vld [vmem:[%s8330_s19 + $0x38] sm:$0xff] }
 0xcb4   :  { %v4095_v14 = vadd.f32 %v8509_v20, %v4043_v2  ;;  %v3676_v35 = vadd.f32 %v8002_v28, %v3620_v48  ;;  %v8517_v2 = vld [vmem:[#allocation72_spill] sm:$0xff]  ;;  %v8518_v5 = vld [vmem:[#allocation73_spill] sm:$0xff] }
 0xcb5   :  { %v3935_v60 = vadd.f32 %v8497_v32, %v3883_v40  ;;  %v3934_v41 = vadd.f32 %v8498_v1, %v3882_v57  ;;  %v3677_v49 = vadd.f32 %v8000_v7, %v3621_v23  ;;  %v8510_v40 = vld [vmem:[#allocation5_spill] sm:$0xff]  ;;  %v5719_v57 = vld [vmem:[%s8331_s18 + $0x30] sm:$0xff]  ;;  %v8511_v32 = vld [vmem:[#allocation38_spill] sm:$0xff] }
 0xcb6   :  { %v4313_v34 = vpop.permute.xlu1 %4312  ;;  %v4311_v9 = vpop.permute.xlu0 %4310  ;;  %v3495_v59 = vadd.f32 %v5718_v54, %v8510_v40  ;;  %v5720_v7 = vld [vmem:[%s8331_s18 + $0x38] sm:$0xff]  ;;  %v8512_v1 = vld [vmem:[#allocation39_spill] sm:$0xff]  ;;  %v8524_v54 = vld [vmem:[#allocation16_spill] sm:$0xff] }
 0xcb7   :  { %v4333_v36 = vadd.f32 %v4313_v34, %v4277_v8  ;;  %v4332_v18 = vadd.f32 %v4311_v9, %v4276_v33  ;;  %v3943_v8 = vmax.f32 %v3935_v60, 0.0  ;;  %v3942_v0 = vmax.f32 %v3934_v41, 0.0 }
 0xcb8   :  { %v3507_v28 = vmul.f32 %v5720_v7, %v7903_v22  ;;  %v3729_v60 = vadd.f32 %v8511_v32, %v3677_v49  ;;  %v3728_v41 = vadd.f32 %v8512_v1, %v3676_v35  ;;  %v4109_v61 = vmul.f32 %v5720_v7, %v7940_v21 }
 0xcb9   :  { %v4385_v10 = vadd.f32 %v8495_v12, %v4333_v36  ;;  %v4384_v55 = vadd.f32 %v8496_v43, %v4332_v18  ;;  %v3506_v36 = vmul.f32 %v5719_v57, %v7903_v22  ;;  %v4107_v43 = vmul.f32 %v5716_v56, %v7940_v21  ;;  %v8514_v22 = vld [vmem:[#allocation10_spill] sm:$0xff] }
 0xcba   :  { %v3607_v27 = vpop.permute.xlu1 %3606  ;;  %v3605_v24 = vpop.permute.xlu0 %3604  ;;  %v3515_v4 = vadd.f32 %v3507_v28, %v3495_v59 }
 0xcbb   :  { %v4417_v52 = vadd.f32 %v8499_v44, %v4385_v10  ;;  %v4416_v37 = vadd.f32 %v8500_v62, %v4384_v55  ;;  %v4106_v55 = vmul.f32 %v5715_v31, %v7940_v21  ;;  %v4115_v46 = vadd.f32 %v4107_v43, %v4095_v14  ;;  %v8513_v44 = vld [vmem:[#allocation9_spill] sm:$0xff] }
 0xcbc   :  { %v4044_v62 = vadd.f32 %v8507_v13, %v8514_v22 }
 0xcbd   :  { %v4469_v17 = vadd.f32 %v8503_v6, %v4417_v52  ;;  %v4468_v30 = vadd.f32 %v8504_v45, %v4416_v37  ;;  %v4114_v19 = vadd.f32 %v4106_v55, %v4094_v63  ;;  %v4045_v52 = vadd.f32 %v8510_v40, %v8513_v44 }
 0xcbe   :  { %v8055_v58 = vpop.permute.xlu1 %4156  ;;  %v8057_v42 = vpop.permute.xlu0 %4154  ;;  %v3514_v37 = vadd.f32 %v3506_v36, %v3494_v50  ;;  %v4171_v31 = vadd.f32 %v7992_v38, %v4115_v46  ;;  %v4096_v39 = vadd.f32 %v8517_v2, %v4044_v62  ;;  %v4108_v63 = vmul.f32 %v5719_v57, %v7940_v21  ;;  %v8525_v57 = vld [vmem:[#allocation42_spill] sm:$0xff] }
 0xcbf   :  { %v4477_v33 = vmax.f32 %v4469_v17, 0.0  ;;  %v4476_v26 = vmax.f32 %v4468_v30, 0.0  ;;  %v4170_v29 = vadd.f32 %v7994_v51, %v4114_v19  ;;  %v8515_v17 = vld [vmem:[#allocation56_spill] sm:$0xff]  ;;  %v8516_v30 = vld [vmem:[#allocation57_spill] sm:$0xff]  ;;  %v4097_v23 = vadd.f32 %v8518_v5, %v4045_v52  ;;  %v8530_v52 = vld [vmem:[#allocation51_spill] sm:$0xff] }
 0xcc0   :  { %v3566_v45 = vadd.f32 %v8515_v17, %v3514_v37  ;;  %v3567_v11 = vadd.f32 %v8516_v30, %v3515_v4  ;;  %v4227_v48 = vadd.f32 %v8013_v53, %v4171_v31  ;;  %v4116_v35 = vadd.f32 %v4108_v63, %v4096_v39  ;;  %v8527_v19 = vld [vmem:[#allocation65_spill] sm:$0xff]  ;;  %v8532_v4 = vld [vmem:[#allocation18_spill] sm:$0xff]  ;;  %v8540_v63 = vld [vmem:[#allocation68_spill] sm:$0xff] }
 0xcc1   :  { %v4484_v34 = vsel %vm1345_vm0, %v3942_v0, %v4476_v26  ;;  %v4485_v9 = vsel %vm1345_vm0, %v3943_v8, %v4477_v33  ;;  %v4226_v8 = vadd.f32 %v8015_v25, %v4170_v29  ;;  %v8519_v26 = vld [vmem:[#allocation63_spill] sm:$0xff]  ;;  %v4117_v49 = vadd.f32 %v4109_v61, %v4097_v23  ;;  %v8531_v37 = vld [vmem:[#allocation17_spill] sm:$0xff]  ;;  %v8533_v29 = vld [vmem:[#allocation52_spill] sm:$0xff] }
 0xcc2   :  { %v3663_v18 = vpop.permute.xlu1 %3662  ;;  %v3661_v12 = vpop.permute.xlu0 %3660  ;;  %v4491_v10 = vpack.c.bf16 %v4485_v9, %v4484_v34  ;;  %v3623_v0 = vadd.f32 %v3607_v27, %v3567_v11  ;;  %v3622_v33 = vadd.f32 %v3605_v24, %v3566_v45  ;;  %v8521_v34 = vld [vmem:[#allocation40_spill] sm:$0xff]  ;;  %v8522_v9 = vld [vmem:[#allocation41_spill] sm:$0xff]  ;;  %v8523_v27 = vld [vmem:[#allocation15_spill] sm:$0xff]  ;;  %v4172_v7 = vadd.f32 %v8057_v42, %v4116_v35 }
 0xcc3   :  { %v4279_v53 = vadd.f32 %v8521_v34, %v4227_v48  ;;  %v4278_v25 = vadd.f32 %v8522_v9, %v4226_v8  ;;  %v4173_v28 = vadd.f32 %v8055_v58, %v4117_v49  ;;  %v8535_v45 = vld [vmem:[#allocation46_spill] sm:$0xff]  ;;  %v8536_v11 = vld [vmem:[#allocation47_spill] sm:$0xff] }
 0xcc4   :  { %5558 = vmatpush3.bf16.msra.mxu1 %v4491_v10  ;;  %v3679_v20 = vadd.f32 %v3663_v18, %v3623_v0  ;;  %v3678_v14 = vadd.f32 %v3661_v12, %v3622_v33  ;;  %v8526_v12 = vld [vmem:[#allocation43_spill] sm:$0xff]  ;;  %v8538_v8 = vld [vmem:[#allocation66_spill] sm:$0xff] }
 0xcc5   :  { %5559 = vmatprep.subr.bf16.mxu1 %v8486_v47  ;;  %v8537_v23 = vld [vmem:[#allocation67_spill] sm:$0xff] }
 0xcc6   :  { %v3767_v56 = vpop.permute.xlu1 %3766  ;;  %v3765_v16 = vpop.permute.xlu0 %3764  ;;  %v3731_v18 = vadd.f32 %v8525_v57, %v3679_v20  ;;  %v3730_v43 = vadd.f32 %v8526_v12, %v3678_v14  ;;  %v8541_v9 = vld [vmem:[#allocation19_spill] sm:$0xff] }
 0xcc7   :  { %v3785_v3 = vadd.f32 %v3767_v56, %v3729_v60  ;;  %v3784_v6 = vadd.f32 %v3765_v16, %v3728_v41  ;;  %v8528_v60 = vld [vmem:[#allocation64_spill] sm:$0xff]  ;;  %v8529_v41 = vld [vmem:[#allocation50_spill] sm:$0xff] }
 0xcc9   :  { %v3837_v38 = vadd.f32 %v8519_v26, %v3785_v3  ;;  %v3836_v51 = vadd.f32 %v8520_v15, %v3784_v6  ;;  %v8534_v6 = vld [vmem:[#allocation53_spill] sm:$0xff] }
 0xcca   :  { %v4213_v13 = vpop.permute.xlu1 %4212  ;;  %v4211_v50 = vpop.permute.xlu0 %4210 }
 0xccb   :  { %v3885_v24 = vadd.f32 %v8523_v27, %v3837_v38  ;;  %v3884_v40 = vadd.f32 %v8524_v54, %v3836_v51  ;;  %v4229_v55 = vadd.f32 %v4213_v13, %v4173_v28  ;;  %v4228_v46 = vadd.f32 %v4211_v50, %v4172_v7  ;;  %v8539_v50 = vld [vmem:[#allocation69_spill] sm:$0xff]  ;;  %v8542_v27 = vld [vmem:[#allocation20_spill] sm:$0xff]  ;;  %v8544_v28 = vld [vmem:[#allocation22_spill] sm:$0xff] }
 0xccd   :  { %v3937_v44 = vadd.f32 %v8529_v41, %v3885_v24  ;;  %v3936_v22 = vadd.f32 %v8530_v52, %v3884_v40  ;;  %v4281_v30 = vadd.f32 %v8535_v45, %v4229_v55  ;;  %v4280_v2 = vadd.f32 %v8536_v11, %v4228_v46 }
 0xcce   :  { %v4317_v59 = vpop.permute.xlu1 %4316  ;;  %v4315_v36 = vpop.permute.xlu0 %4314 }
 0xccf   :  { %v4335_v10 = vadd.f32 %v4317_v59, %v4279_v53  ;;  %v4334_v21 = vadd.f32 %v4315_v36, %v4278_v25  ;;  %v3945_v39 = vmax.f32 %v3937_v44, 0.0  ;;  %v3944_v5 = vmax.f32 %v3936_v22, 0.0  ;;  %v8543_v59 = vld [vmem:[#allocation21_spill] sm:$0xff] }
 0xcd1   :  { %v4387_v32 = vadd.f32 %v8527_v19, %v4335_v10  ;;  %v4386_v1 = vadd.f32 %v8528_v60, %v4334_v21 }
 0xcd2   :  { %v3771_v62 = vpop.permute.xlu1 %3770  ;;  %v3769_v58 = vpop.permute.xlu0 %3768 }
 0xcd3   :  { %v4419_v42 = vadd.f32 %v8531_v37, %v4387_v32  ;;  %v4418_v56 = vadd.f32 %v8532_v4, %v4386_v1  ;;  %v3787_v16 = vadd.f32 %v3771_v62, %v3731_v18  ;;  %v3786_v31 = vadd.f32 %v3769_v58, %v3730_v43  ;;  %v4494_v1 = vld [vmem:[%s8335_s20] sm:$0x1]  ;;  %s8550_s20 = smov 9  }
 0xcd5   :  { %v4471_v3 = vadd.f32 %v8533_v29, %v4419_v42  ;;  %v4470_v17 = vadd.f32 %v8534_v6, %v4418_v56  ;;  %v3839_v48 = vadd.f32 %v8537_v23, %v3787_v16  ;;  %v3838_v0 = vadd.f32 %v8538_v8, %v3786_v31  ;;  %v8545_v6 = vld [vmem:[#allocation24_spill] sm:$0xff] }
 0xcd6   :  { %v4321_v33 = vpop.permute.xlu1 %4320  ;;  %v4319_v26 = vpop.permute.xlu0 %4318 }
 0xcd7   :  { %v4479_v38 = vmax.f32 %v4471_v3, 0.0  ;;  %v4478_v15 = vmax.f32 %v4470_v17, 0.0  ;;  %v4337_v51 = vadd.f32 %v4321_v33, %v4281_v30  ;;  %v4336_v13 = vadd.f32 %v4319_v26, %v4280_v2  ;;  %v8546_v30 = vld [vmem:[#allocation74_spill] sm:$0xff]  ;;  %v8547_v26 = vld [vmem:[#allocation25_spill] sm:$0xff] }
 0xcd8   :  { %v3887_v25 = vadd.f32 %v8541_v9, %v3839_v48  ;;  %v3886_v24 = vadd.f32 %v8542_v27, %v3838_v0 }
 0xcd9   :  { %v4389_v61 = vadd.f32 %v8539_v50, %v4337_v51  ;;  %v4388_v20 = vadd.f32 %v8540_v63, %v4336_v13  ;;  %v4486_v14 = vsel %vm1345_vm0, %v3944_v5, %v4478_v15  ;;  %v4487_v49 = vsel %vm1345_vm0, %v3945_v39, %v4479_v38  ;;  %v8548_v38 = vld [vmem:[#allocation30_spill] sm:$0xff]  ;;  %v8549_v51 = vld [vmem:[#allocation28_spill] sm:$0xff] }
 0xcda   :  { %v3923_v35 = vpop.permute.xlu1 %3922  ;;  %v3921_v34 = vpop.permute.xlu0 %3920  ;;  %v4492_v53 = vpack.c.bf16 %v4487_v49, %v4486_v14  ;;  %v4614_v15 = vrot.slane %v8548_v38, 1  ;;  %v4619_v13 = vrot.slane %v8549_v51, 1  ;;  %v4563_v9 = vsub.f32 0.0, %v8549_v51 }
 0xcdb   :  { %v3939_v54 = vadd.f32 %v3923_v35, %v3887_v25  ;;  %v3938_v40 = vadd.f32 %v3921_v34, %v3886_v24  ;;  %v4421_v36 = vadd.f32 %v8543_v59, %v4389_v61  ;;  %v4420_v7 = vadd.f32 %v8544_v28, %v4388_v20  ;;  %v8551_v61 = vld [vmem:[#allocation29_spill] sm:$0xff]  ;;  %v8553_v20 = vld [vmem:[#allocation26_spill] sm:$0xff]  ;;  %v8554_v34 = vld [vmem:[#allocation23_spill] sm:$0xff] }
 0xcdc   :  { %5560 = vmatpush3.bf16.msra.mxu1 %v4492_v53  ;;  %v8555_v25 = vld [vmem:[#allocation33_spill] sm:$0xff] }
 0xcdd   :  { %5561 = vmatprep.subr.bf16.mxu1 %v8486_v47  ;;  %v3947_v12 = vmax.f32 %v3939_v54, 0.0  ;;  %v3946_v43 = vmax.f32 %v3938_v40, 0.0  ;;  %v4800_v27 = vrot.slane %v8555_v25, 1  ;;  %v4582_v54 = vsub.f32 0.0, %v8548_v38 }
 0xcde   :  { %v4457_v10 = vpop.permute.xlu1 %4456  ;;  %v4455_v21 = vpop.permute.xlu0 %4454 }
 0xcdf   :  { %v4473_v57 = vadd.f32 %v4457_v10, %v4421_v36  ;;  %v4472_v18 = vadd.f32 %v4455_v21, %v4420_v7 }
 0xce1   :  { %v4481_v55 = vmax.f32 %v4473_v57, 0.0  ;;  %v4480_v46 = vmax.f32 %v4472_v18, 0.0  ;;  %v8556_v57 = vld [vmem:[#allocation34_spill] sm:$0xff] }
 0xce3   :  { %v4489_v19 = vsel %vm1345_vm0, %v3947_v12, %v4481_v55  ;;  %v4488_v32 = vsel %vm1345_vm0, %v3946_v43, %v4480_v46  ;;  %v4597_v12 = vsub.f32 0.0, %v8556_v57 }
 0xce4   :  { %v4493_v60 = vpack.c.bf16 %v4489_v19, %v4488_v32 }
 0xce6   :  { %5562 = vmatpush3.bf16.msra.mxu1 %v4493_v60 }
 0xce9   :  { %5564 = vmatmul.mubr.msk.bf16.vlgmr.msra.gmra.mrb[56].mxu1 %vm2736_vm3, %v4494_v1  ;;  %vm4641_vm3 = vcmask 15360  }
 0xcef   :  { %v4499_v47 = vpop.permute.xlu0 %4498 }
 0xdbc   :  { %v4538_v41 = vpop.f32.mrb[56].mxu1 }
 0xdbd   :  { %v4539_v44 = vadd.f32 %v4538_v41, %v4499_v47  ;;  %v5565_v52 = vpop.f32.mrb[57].mxu1 }
 0xdbe   :  { %v4541_v22 = vpop.f32.mrb[58].mxu1 }
 0xdbf   :  { %v4544_v62 = vmul.f32 %v4539_v44, %v4539_v44  ;;  %v5566_v58 = vpop.f32.mrb[59].mxu1  ;;  %v8557_v22 = vld [vmem:[#allocation2_spill] sm:$0xff] }
 0xdc1   :  { %v4546_v37 = vrot.slane %v4544_v62, 1 }
 0xdc3   :  { %v4548_v42 = vadd.f32 %v4546_v37, %v4544_v62  ;;  %v4703_v62 = vrot.slane %v8557_v22, 1 }
 0xdc5   :  { %v4549_v4 = vadd.f32 1e-08, %v4548_v42 }
 0xdc7   :  { %5703 = vrsqrt.f32 %v4549_v4 }
 0xdd1   :  { %v5704_v56 = vpop.eup %5703 }
 0xdd2   :  { %v8137_v16 = vmul.f32 %v5704_v56, %v4539_v44  ;;  %v4553_v31 = vrot.slane %v5704_v56, 7 }
 0xdd4   :  { %v4555_v29 = vmul.f32 %v4553_v31, %v4539_v44  ;;  %4728 = vrot.lane.b32.xlu1 %v8137_v16, %s8444_s5  ;;  %v8142_v3 = vrot.slane %v8137_v16, 7  ;;  %v4763_v17 = vmul.f32 %v8137_v16, %v8545_v6  ;;  %v4589_v5 = vrot.slane %v8137_v16, 5 }
 0xdd5   :  { %v4601_v8 = vmul.f32 0.0, %v8137_v16  ;;  %v4584_v53 = vmul.f32 %v8137_v16, %v8554_v34  ;;  %v4557_v24 = vmul.f32 %v8137_v16, %v8549_v51 }
 0xdd6   :  { %4744 = vrot.lane.b32.xlu0 %v8142_v3, %s8444_s5  ;;  %v4765_v45 = vrot.slane %v4763_v17, 7  ;;  %v4732_v11 = vmul.f32 %v4555_v29, %v8546_v30  ;;  %v8151_v2 = vrot.slane %v4555_v29, 1  ;;  %v4592_v23 = vmul.f32 0.0, %v4555_v29 }
 0xdd7   :  { %v4598_v48 = vrot.slane %v4555_v29, 6  ;;  %v4603_v33 = vrot.slane %v4601_v8, 5  ;;  %v4556_v50 = vsub.f32 0.0, %v4555_v29  ;;  %v4558_v63 = vmul.f32 %v4555_v29, %v8551_v61 }
 0xdd8   :  { %4759 = vrot.lane.b32.xlu1 %v4555_v29, %s8444_s5  ;;  %v4734_v39 = vrot.slane %v4732_v11, 1  ;;  %v4594_v0 = vrot.slane %v4592_v23, 6  ;;  %v4571_v35 = vmul.f32 %v8142_v3, %v8551_v61  ;;  %v4567_v40 = vmul.f32 %v8151_v2, %v4563_v9 }
 0xdd9   :  { %v4630_v14 = vrot.slane %v4556_v50, 1  ;;  %v4560_v49 = vrot.slane %v4558_v63, 1  ;;  %v4583_v28 = vmul.f32 %v4582_v54, %v4555_v29  ;;  %v4586_v7 = vrot.slane %v4584_v53, 7 }
 0xdda   :  { %4766 = vrot.lane.b32.xlu0 %v4765_v45, %s8444_s5  ;;  %v4573_v36 = vrot.slane %v4571_v35, 1  ;;  %v4591_v18 = vmul.f32 %v4589_v5, %v8556_v57  ;;  %v4600_v43 = vmul.f32 %v4598_v48, %v4597_v12  ;;  %v4577_v19 = vmul.f32 %v8151_v2, %v8554_v34 }
 0xddb   :  { %v4562_v59 = vadd.f32 %v4560_v49, %v4557_v24  ;;  %v4588_v21 = vadd.f32 %v4586_v7, %v4583_v28  ;;  %v4576_v47 = vmul.f32 %v8142_v3, %v8548_v38  ;;  %v8558_v3 = vld [vmem:[#allocation31_spill] sm:$0xff]  ;;  %v4739_v45 = vsub.f32 0.0, %v8555_v25 }
 0xddc   :  { %4740 = vrot.lane.b32.xlu1 %v8151_v2, %s8444_s5  ;;  %v4575_v10 = vadd.f32 %v4573_v36, %v4567_v40  ;;  %v4596_v46 = vadd.f32 %v4594_v0, %v4591_v18  ;;  %v4605_v60 = vadd.f32 %v4603_v33, %v4600_v43  ;;  %v4579_v1 = vrot.slane %v4577_v19, 7 }
 0xddd   :  { %v4682_v55 = vrot.slane %v4588_v21, 1  ;;  %v4758_v17 = vsub.f32 0.0, %v8558_v3  ;;  %v4624_v28 = vrot.slane %v8556_v57, 3 }
 0xdde   :  { %4735 = vrot.lane.b32.xlu0 %v4734_v39, %s8444_s5  ;;  %v4690_v32 = vrot.slane %v4596_v46, 3  ;;  %v4695_v41 = vrot.slane %v4605_v60, 3  ;;  %v4581_v44 = vadd.f32 %v4579_v1, %v4576_v47  ;;  %v8560_v46 = vld [vmem:[#allocation27_spill] sm:$0xff] }
 0xde0   :  { %4770 = vrot.lane.b32.xlu1 %v4589_v5, %s8444_s5  ;;  %v4677_v52 = vrot.slane %v4581_v44, 1 }
 0xde2   :  { %4779 = vrot.lane.b32.xlu0 %v4598_v48, %s8444_s5 }
 0xde4   :  { %4774 = vrot.lane.b32.xlu1 %v4594_v0, %s8444_s5 }
 0xde6   :  { %4783 = vrot.lane.b32.xlu0 %v4603_v33, %s8444_s5  ;;  %s8552_s5 = smov 7  }
 0xde8   :  { %4610 = vrot.lane.b32.xlu1 %v8547_v26, %s5743_s4 }
 0xdea   :  { %4615 = vrot.lane.b32.xlu0 %v4614_v15, %s5744_s1  ;;  %v4607_v15 = vrot.slane %v8551_v61, 1 }
 0xdec   :  { %4620 = vrot.lane.b32.xlu1 %v4619_v13, %s5745_s10  ;;  %v4640_v53 = vsel %vm1345_vm0, %v8549_v51, %v4607_v15 }
 0xdee   :  { %4626 = vrot.lane.b32.xlu0 %v8137_v16, %s8550_s20 }
 0xdf0   :  { %4673 = vrot.lane.b32.xlu1 %v8547_v26, %s5748_s17 }
 0xdf2   :  { %4634 = vrot.lane.b32.xlu0 %v8151_v2, %s5749_s11 }
 0xdf4   :  { %4686 = vrot.lane.b32.xlu1 %v4619_v13, %s8552_s5  ;;  %v8559_v13 = vld [vmem:[#allocation35_spill] sm:$0xff] }
 0xdf5   :  { %v4778_v49 = vsub.f32 0.0, %v8559_v13 }
 0xdf6   :  { %4842 = vrot.lane.b32.xlu0 %v8553_v20, %s5748_s17 }
 0xdf8   :  { %4631 = vrot.lane.b32.xlu1 %v4630_v14, %s5750_s22 }
 0xdfa   :  { %4855 = vrot.lane.b32.xlu0 %v4800_v27, %s8552_s5 }
 0xdfc   :  { %4666 = vrot.lane.b32.xlu1 %v4562_v59, %s5743_s4 }
 0xe00   :  { %4670 = vrot.lane.b32.xlu1 %v4575_v10, %s5744_s1 }
 0xe04   :  { %4683 = vrot.lane.b32.xlu1 %v4682_v55, %s5751_s13 }
 0xe08   :  { %4691 = vrot.lane.b32.xlu1 %v4690_v32, %s5732_s27 }
 0xe0c   :  { %4696 = vrot.lane.b32.xlu1 %v4695_v41, %s8550_s20 }
 0xe10   :  { %4678 = vrot.lane.b32.xlu1 %v4677_v52, %s5745_s10 }
 0xe14   :  { %4700 = vrot.lane.b32.xlu1 %v8557_v22, %s5752_s15 }
 0xe18   :  { %4704 = vrot.lane.b32.xlu1 %v4703_v62, %s5752_s15 }
 0xe1c   :  { %4637 = vrot.lane.b32.xlu1 %v8137_v16, %s5753_s26 }
 0xe20   :  { %4791 = vrot.lane.b32.xlu1 %v8553_v20, %s5743_s4 }
 0xe24   :  { %4801 = vrot.lane.b32.xlu1 %v4800_v27, %s5745_s10 }
 0xe28   :  { %4810 = vrot.lane.b32.xlu1 %v4630_v14, %s8550_s20 }
 0xe2c   :  { %4816 = vrot.lane.b32.xlu1 %v8137_v16, %s5749_s11 }
 0xe46   :  { %v4729_v58 = vpop.permute.xlu1 %4728 }
 0xe47   :  { %v4731_v31 = vmul.f32 %v4729_v58, %v8555_v25 }
 0xe48   :  { %v4745_v37 = vpop.permute.xlu0 %4744 }
 0xe49   :  { %v4747_v29 = vmul.f32 %v4745_v37, %v8546_v30  ;;  %v4752_v10 = vmul.f32 %v4745_v37, %v8558_v3 }
 0xe4a   :  { %v4760_v42 = vpop.permute.xlu1 %4759 }
 0xe4b   :  { %v4762_v39 = vmul.f32 %v4760_v42, %v4758_v17  ;;  %v4749_v8 = vrot.slane %v4747_v29, 1  ;;  %v4795_v42 = vrot.slane %v8558_v3, 1  ;;  %v5754_v29 = vmov 1.0  }
 0xe4c   :  { %v4767_v4 = vpop.permute.xlu0 %4766  ;;  %v4707_v17 = vsel %vm1345_vm0, 0.0, %v5754_v29 }
 0xe4d   :  { %v4769_v33 = vadd.f32 %v4767_v4, %v4762_v39 }
 0xe4e   :  { %v4741_v56 = vpop.permute.xlu1 %4740 }
 0xe4f   :  { %v4743_v5 = vmul.f32 %v4741_v56, %v4739_v45  ;;  %v4851_v20 = vrot.slane %v4769_v33, 1  ;;  %v4753_v14 = vmul.f32 %v4741_v56, %v8545_v6 }
 0xe50   :  { %v4736_v11 = vpop.permute.xlu0 %4735 }
 0xe51   :  { %v4738_v23 = vadd.f32 %v4736_v11, %v4731_v31  ;;  %v4751_v26 = vadd.f32 %v4749_v8, %v4743_v5  ;;  %v4755_v54 = vrot.slane %v4753_v14, 7 }
 0xe52   :  { %v4771_v48 = vpop.permute.xlu1 %4770 }
 0xe53   :  { %4835 = vrot.lane.b32.xlu0 %v4738_v23, %s5743_s4  ;;  %v4773_v50 = vmul.f32 %v4771_v48, %v8559_v13  ;;  %v4757_v12 = vadd.f32 %v4755_v54, %v4752_v10 }
 0xe54   :  { %v4780_v0 = vpop.permute.xlu0 %4779 }
 0xe55   :  { %v4782_v27 = vmul.f32 %v4780_v0, %v4778_v49 }
 0xe56   :  { %v4775_v38 = vpop.permute.xlu1 %4774 }
 0xe57   :  { %4839 = vrot.lane.b32.xlu0 %v4751_v26, %s5744_s1  ;;  %v4777_v35 = vadd.f32 %v4775_v38, %v4773_v50 }
 0xe58   :  { %v4784_v63 = vpop.permute.xlu0 %4783 }
 0xe59   :  { %v4859_v40 = vrot.slane %v4777_v35, 3  ;;  %v4786_v59 = vadd.f32 %v4784_v63, %v4782_v27 }
 0xe5a   :  { %v4611_v9 = vpop.permute.xlu1 %4610 }
 0xe5b   :  { %v4642_v61 = vsel %vm4641_vm3, %v4640_v53, %v4611_v9  ;;  %4852 = vrot.lane.b32.xlu0 %v4851_v20, %s5751_s13  ;;  %v4864_v43 = vrot.slane %v4786_v59, 3 }
 0xe5c   :  { %v4616_v24 = vpop.permute.xlu0 %4615 }
 0xe5d   :  { %v4644_v36 = vsel %vm4643_vm10, %v4642_v61, %v4616_v24 }
 0xe5e   :  { %v4621_v7 = vpop.permute.xlu1 %4620  ;;  %v4646_v51 = vsel %vm4645_vm1, %v4644_v36, %v8554_v34  ;;  %v4846_v34 = vrot.slane %v4757_v12, 1 }
 0xe5f   :  { %v4648_v21 = vsel %vm4647_vm15, %v4646_v51, %v4621_v7  ;;  %4860 = vrot.lane.b32.xlu0 %v4859_v40, %s5732_s27  ;;  %v8561_v51 = vld [vmem:[#allocation32_spill] sm:$0xff] }
 0xe60   :  { %v4650_v18 = vsel %vm4649_vm4, %v4648_v21, %v4624_v28  ;;  %v4627_v57 = vpop.permute.xlu0 %4626  ;;  %v4788_v21 = vrot.slane %v8546_v30, 1 }
 0xe61   :  { %v4651_v55 = vsel %vm2213_vm14, %v4650_v18, 0.0 }
 0xe62   :  { %v4652_v19 = vsel %vm2187_vm13, %v4651_v55, %v8560_v46  ;;  %v4674_v32 = vpop.permute.xlu1 %4673 }
 0xe63   :  { %v4653_v60 = vsel %vm2161_vm9, %v4652_v19, %v4627_v57  ;;  %4865 = vrot.lane.b32.xlu0 %v4864_v43, %s8550_s20  ;;  %v4819_v19 = vsel %vm1345_vm0, %v8555_v25, %v4788_v21  ;;  %vm4660_vm0 = vcmask 105472  }
 0xe64   :  { %v4635_v44 = vpop.permute.xlu0 %4634 }
 0xe66   :  { %v4687_v1 = vpop.permute.xlu1 %4686 }
 0xe67   :  { %4847 = vrot.lane.b32.xlu0 %v4846_v34, %s5745_s10 }
 0xe68   :  { %v4843_v15 = vpop.permute.xlu0 %4842 }
 0xe6a   :  { %v4632_v47 = vpop.permute.xlu1 %4631 }
 0xe6b   :  { %v4655_v41 = vsel %vm4654_vm6, %v4653_v60, %v4632_v47  ;;  %4868 = vrot.lane.b32.xlu0 %v8557_v22, %s5746_s29 }
 0xe6c   :  { %v4657_v52 = vsel %vm4656_vm7, %v4655_v41, 0.0  ;;  %v4856_v50 = vpop.permute.xlu0 %4855 }
 0xe6d   :  { %v8245_v58 = vsel %vm4658_vm8, %v4657_v52, %v4635_v44 }
 0xe6e   :  { %v4667_v37 = vpop.permute.xlu1 %4666 }
 0xe6f   :  { %4871 = vrot.lane.b32.xlu0 %v4703_v62, %s5746_s29  ;;  %v4708_v45 = vsel %vm4641_vm3, %v4707_v17, %v4667_v37 }
 0xe72   :  { %v4671_v4 = vpop.permute.xlu1 %4670 }
 0xe73   :  { %4796 = vrot.lane.b32.xlu0 %v4795_v42, %s5744_s1  ;;  %v4709_v62 = vsel %vm4643_vm10, %v4708_v45, %v4671_v4 }
 0xe74   :  { %v4710_v3 = vsel %vm4645_vm1, %v4709_v62, %v4674_v32 }
 0xe76   :  { %v4684_v56 = vpop.permute.xlu1 %4683 }
 0xe77   :  { %4807 = vrot.lane.b32.xlu0 %v8137_v16, %s5732_s27 }
 0xe7a   :  { %v4692_v31 = vpop.permute.xlu1 %4691 }
 0xe7b   :  { %4813 = vrot.lane.b32.xlu0 %v8151_v2, %s5752_s15 }
 0xe7e   :  { %v4697_v22 = vpop.permute.xlu1 %4696 }
 0xe82   :  { %v4679_v11 = vpop.permute.xlu1 %4678 }
 0xe83   :  { %v4711_v39 = vsel %vm4647_vm15, %v4710_v3, %v4679_v11 }
 0xe84   :  { %v4712_v5 = vsel %vm4649_vm4, %v4711_v39, %v4684_v56 }
 0xe85   :  { %v4713_v16 = vsel %vm2213_vm14, %v4712_v5, %v4687_v1  ;;  %v4805_v1 = vrot.slane %v8559_v13, 3 }
 0xe86   :  { %v4714_v23 = vsel %vm2187_vm13, %v4713_v16, %v4692_v31  ;;  %v4701_v48 = vpop.permute.xlu1 %4700 }
 0xe87   :  { %v4715_v8 = vsel %vm2161_vm9, %v4714_v23, %v4697_v22 }
 0xe88   :  { %v4716_v2 = vsel %vm4654_vm6, %v4715_v8, %v8560_v46 }
 0xe89   :  { %v4717_v0 = vsel %vm4656_vm7, %v4716_v2, %v4701_v48 }
 0xe8a   :  { %v4705_v33 = vpop.permute.xlu1 %4704 }
 0xe8b   :  { %v4719_v26 = vsel %vm4718_vm12, %v4717_v0, %v4705_v33 }
 0xe8c   :  { %v4721_v38 = vsel %vm4720_vm11, %v4719_v26, 0.0 }
 0xe8d   :  { %4723 = vrot.lane.b32.xlu0 %v4721_v38, %s5725_s30 }
 0xe8e   :  { %v4638_v24 = vpop.permute.xlu1 %4637 }
 0xe8f   :  { %v4661_v31 = vsel %vm4660_vm0, %v8245_v58, %v4638_v24 }
 0xe92   :  { %v4792_v18 = vpop.permute.xlu1 %4791 }
 0xe93   :  { %v4820_v57 = vsel %vm4641_vm3, %v4819_v19, %v4792_v18 }
 0xe96   :  { %v4802_v60 = vpop.permute.xlu1 %4801 }
 0xe9a   :  { %v4811_v37 = vpop.permute.xlu1 %4810 }
 0xe9e   :  { %v4817_v62 = vpop.permute.xlu1 %4816 }
 0xec5   :  { %v4836_v63 = vpop.permute.xlu0 %4835 }
 0xec6   :  { %v4874_v35 = vsel %vm4641_vm3, %v4707_v17, %v4836_v63  ;;  %vm4662_vm3 = vcmask 113664  }
 0xec7   :  { %v4663_v29 = vsel %vm4662_vm3, %v4661_v31, 0.0 }
 0xec8   :  { %v4664_v17 = vsel %vm1301_vm5, %v4663_v29, 0.0 }
 0xec9   :  { %v4840_v20 = vpop.permute.xlu0 %4839 }
 0xeca   :  { %v4875_v9 = vsel %vm4643_vm10, %v4874_v35, %v4840_v20 }
 0xecb   :  { %v4876_v27 = vsel %vm4645_vm1, %v4875_v9, %v4843_v15 }
 0xecd   :  { %v4853_v14 = vpop.permute.xlu0 %4852 }
 0xed1   :  { %v4861_v49 = vpop.permute.xlu0 %4860 }
 0xed5   :  { %v4866_v53 = vpop.permute.xlu0 %4865 }
 0xed9   :  { %v4848_v61 = vpop.permute.xlu0 %4847 }
 0xeda   :  { %v4877_v54 = vsel %vm4647_vm15, %v4876_v27, %v4848_v61 }
 0xedb   :  { %v4878_v40 = vsel %vm4649_vm4, %v4877_v54, %v4853_v14 }
 0xedc   :  { %v4879_v59 = vsel %vm2213_vm14, %v4878_v40, %v4856_v50 }
 0xedd   :  { %v4880_v36 = vsel %vm2187_vm13, %v4879_v59, %v4861_v49  ;;  %v4869_v28 = vpop.permute.xlu0 %4868 }
 0xede   :  { %v4881_v7 = vsel %vm2161_vm9, %v4880_v36, %v4866_v53 }
 0xedf   :  { %v4882_v10 = vsel %vm4654_vm6, %v4881_v7, %v8561_v51 }
 0xee0   :  { %v4883_v12 = vsel %vm4656_vm7, %v4882_v10, %v4869_v28 }
 0xee1   :  { %v4872_v43 = vpop.permute.xlu0 %4871 }
 0xee2   :  { %v4884_v55 = vsel %vm4718_vm12, %v4883_v12, %v4872_v43 }
 0xee3   :  { %v4885_v46 = vsel %vm4720_vm11, %v4884_v55, 0.0 }
 0xee4   :  { %4887 = vrot.lane.b32.xlu0 %v4885_v46, %s5725_s30 }
 0xee5   :  { %v4797_v32 = vpop.permute.xlu0 %4796 }
 0xee6   :  { %v4821_v34 = vsel %vm4643_vm10, %v4820_v57, %v4797_v32 }
 0xee7   :  { %v4822_v30 = vsel %vm4645_vm1, %v4821_v34, %v8545_v6 }
 0xee8   :  { %v4823_v47 = vsel %vm4647_vm15, %v4822_v30, %v4802_v60 }
 0xee9   :  { %v4808_v41 = vpop.permute.xlu0 %4807  ;;  %v4824_v44 = vsel %vm4649_vm4, %v4823_v47, %v4805_v1 }
 0xeea   :  { %v4825_v25 = vsel %vm2213_vm14, %v4824_v44, 0.0 }
 0xeeb   :  { %v4826_v52 = vsel %vm2187_vm13, %v4825_v25, %v8561_v51 }
 0xeec   :  { %v4827_v42 = vsel %vm2161_vm9, %v4826_v52, %v4808_v41 }
 0xeed   :  { %v4828_v4 = vsel %vm4654_vm6, %v4827_v42, %v4811_v37  ;;  %v4814_v56 = vpop.permute.xlu0 %4813 }
 0xeee   :  { %v4829_v6 = vsel %vm4656_vm7, %v4828_v4, 0.0 }
 0xeef   :  { %v4830_v13 = vsel %vm4658_vm8, %v4829_v6, %v4814_v56 }
 0xef0   :  { %v4831_v3 = vsel %vm4660_vm0, %v4830_v13, %v4817_v62 }
 0xef1   :  { %v4832_v11 = vsel %vm4662_vm3, %v4831_v3, 0.0 }
 0xef2   :  { %v4833_v5 = vsel %vm1301_vm5, %v4832_v11, 0.0 }
 0xeff   :  { %v4724_v45 = vpop.permute.xlu0 %4723 }
 0xf00   :  { %v4726_v22 = vsel %vm1257_vm2, %v4664_v17, %v4724_v45 }
 0xf01   :  { %4727 = vst [vmem:[%s8336_s23] sm:$0x1] %v4726_v22 }
 0xf56   :  { %v4888_v39 = vpop.permute.xlu0 %4887 }
 0xf57   :  { %v4890_v16 = vsel %vm1257_vm2, %v4833_v5, %v4888_v39 }
 0xf58   :  { %4891 = vst [vmem:[%s8336_s23 + $0x1] sm:$0x1] %v4890_v16 }

</bundles_post_ra>
